<compile_context>
chip_gen: v5e
topology: v5e:2x2
jax: 0.10.0
libtpu: 0.0.40
codegen_flags: <defaults>
</compile_context>

<pallas_src>
import functools

import jax
import jax.numpy as jnp
from jax.experimental import pallas as pl
from jax.experimental.pallas import tpu as pltpu


# Packed-bias segment offsets (each segment starts 128-lane aligned).
_B1, _B2, _B3, _BS1, _BS2, _BH1, _BH2, _BH3 = 0, 128, 256, 384, 512, 640, 896, 1408
_BIAS_LEN = 1536


# ----------------------------------------------------------------------------
# The fused forward kernel.  All intermediates stay in registers; the kernel
# issues 16 small MXU matmuls and a single output store.
# ----------------------------------------------------------------------------
def _policy_kernel(p1_ref, spd_ref, b_ref, w64_ref, wh2_ref, wh1_ref, ws1_ref,
                   out_ref, *, B, C, ow1, oh2, ow2, oh3, ow3, adim):
    f32 = jnp.float32

    def mm(x, w):
        # Native bf16 MXU path (f32 accumulation) when weights are bf16.
        if w.dtype == jnp.bfloat16 and x.dtype != jnp.bfloat16:
            x = x.astype(jnp.bfloat16)
        return jnp.dot(x, w, preferred_element_type=f32)

    def relu(x):
        return jnp.maximum(x, 0.0)

    # ---- unpack the packed bias vector (static, 128-aligned column views) --
    b1 = b_ref[:, _B1:_B1 + 32]
    b2 = b_ref[:, _B2:_B2 + 64]
    b3 = b_ref[:, _B3:_B3 + 64]
    bs1 = b_ref[:, _BS1:_BS1 + 128]
    bs2 = b_ref[:, _BS2:_BS2 + 64]
    bh1 = b_ref[:, _BH1:_BH1 + 256]
    bh2 = b_ref[:, _BH2:_BH2 + 512]
    bh3 = b_ref[:, _BH3:_BH3 + adim + 1]

    # ---- unpack the 64-lane weight slab (static row views) -----------------
    K1 = 64 * C                                   # conv1 contraction (8*8*C)
    w1 = w64_ref[0:K1, 0:32]
    w2 = w64_ref[K1:K1 + 512, :]
    w3 = w64_ref[K1 + 512:K1 + 1088, :]
    ws2 = w64_ref[K1 + 1088:K1 + 1216, :]
    wh3 = w64_ref[K1 + 1216:K1 + 1728, 0:adim + 1]

    # ---- conv1: one MXU matmul on the precomputed patch matrix -------------
    # a1 rows are ordered (pixel=(oy,ox), batch); columns are the 32 channels.
    a1 = relu(mm(p1_ref[...], w1) + b1)

    # ---- conv2 (k=4, s=2): register-resident im2col, one matmul per pixel --
    a2 = []                                       # per conv2 pixel: (B, 64)
    for oy in range(oh2):
        for ox in range(ow2):
            pieces = []
            for ky in range(4):
                for kx in range(4):
                    pix = (2 * oy + ky) * ow1 + (2 * ox + kx)
                    pieces.append(a1[pix * B:(pix + 1) * B, :])
            patch = jnp.concatenate(pieces, axis=1)           # (B, 512)
            a2.append(relu(mm(patch, w2) + b2))

    # ---- conv3 (k=3, s=1) ---------------------------------------------------
    a3 = []                                       # per conv3 pixel: (B, 64)
    for oy in range(oh3):
        for ox in range(ow3):
            pieces = [a2[(oy + ky) * ow2 + (ox + kx)]
                      for ky in range(3) for kx in range(3)]
            patch = jnp.concatenate(pieces, axis=1)           # (B, 576)
            a3.append(relu(mm(patch, w3) + b3))

    # ---- speed MLP ----------------------------------------------------------
    s = relu(mm(spd_ref[...], ws1_ref[...]) + bs1)
    s = relu(mm(s, ws2) + bs2)                                # (B, 64)

    # ---- merge grid (pixel-major; head-1 weight rows pre-permuted) + speed --
    merged = jnp.concatenate(a3 + [s], axis=1)                # (B, 64*P3 + 64)

    # ---- fused actor|critic heads (block-diagonal layers 2 & 3) ------------
    h1 = relu(mm(merged, wh1_ref[...]) + bh1)                 # (B, 256)
    h2 = relu(mm(h1, wh2_ref[...]) + bh2)                     # (B, 512)
    out = mm(h2, wh3) + bh3                                   # (B, adim+1)
    out_ref[...] = out.astype(out_ref.dtype)                  # single store


# ----------------------------------------------------------------------------
# Shape / padding bookkeeping (mirrors get_padding_size / feature_size).
# ----------------------------------------------------------------------------
def _check_valid(inp, k, s, pad):
    return (inp - k + pad) % s == 0


def _get_padding_size(inp, k, s):
    if _check_valid(inp, k, s, 0):
        return 0
    for pad in range(s):
        if _check_valid(inp, k, s, pad):
            return pad
    raise ValueError("Could not find valid padding size.")


def make_meta(in_channels, H, W, action_dim):
    # nn.ZeroPad2d((left, right, top, bottom)): the module right-pads W by
    # get_padding_size(H,...) and bottom-pads H by get_padding_size(W,...).
    # Keep this quirk in sync with the reference check.
    pad_w = _get_padding_size(H, 8, 4)   # added to W (last dim)
    pad_h = _get_padding_size(W, 8, 4)   # added to H
    Hp, Wp = H + pad_h, W + pad_w
    oh1, ow1 = (Hp - 8) // 4 + 1, (Wp - 8) // 4 + 1
    oh2, ow2 = (oh1 - 4) // 2 + 1, (ow1 - 4) // 2 + 1
    oh3, ow3 = oh2 - 2, ow2 - 2
    assert oh3 >= 1 and ow3 >= 1, "occupancy grid too small for the conv stack"
    merged_size = 64 * oh3 * ow3 + 64
    return dict(C=in_channels, H=H, W=W, pad_h=pad_h, pad_w=pad_w,
                oh1=oh1, ow1=ow1, oh2=oh2, ow2=ow2, oh3=oh3, ow3=ow3,
                merged_size=merged_size, action_dim=action_dim)


# ----------------------------------------------------------------------------
# Parameter construction (PyTorch-equivalent layouts; deterministic).
# ----------------------------------------------------------------------------
def _dense_init(key, fan_in, fan_out):
    kw, kb = jax.random.split(key)
    scale = 1.0 / jnp.sqrt(jnp.float32(fan_in))
    w = jax.random.uniform(kw, (fan_in, fan_out), jnp.float32, -scale, scale)
    b = jax.random.uniform(kb, (fan_out,), jnp.float32, -scale, scale)
    return w, b


def _conv_init(key, cin, cout, k):
    kw, kb = jax.random.split(key)
    fan_in = cin * k * k
    scale = 1.0 / jnp.sqrt(jnp.float32(fan_in))
    w = jax.random.uniform(kw, (cout, cin, k, k), jnp.float32, -scale, scale)
    b = jax.random.uniform(kb, (cout,), jnp.float32, -scale, scale)
    return w, b


def init_params(key, in_channels, H, W, speed_dim, action_dim, std=0.0):
    meta = make_meta(in_channels, H, W, action_dim)
    keys = jax.random.split(key, 11)
    p = {}
    p["conv1_w"], p["conv1_b"] = _conv_init(keys[0], in_channels, 32, 8)
    p["conv2_w"], p["conv2_b"] = _conv_init(keys[1], 32, 64, 4)
    p["conv3_w"], p["conv3_b"] = _conv_init(keys[2], 64, 64, 3)
    p["spd1_w"], p["spd1_b"] = _dense_init(keys[3], speed_dim, 128)
    p["spd2_w"], p["spd2_b"] = _dense_init(keys[4], 128, 64)
    m = meta["merged_size"]
    p["act1_w"], p["act1_b"] = _dense_init(keys[5], m, 128)
    p["act2_w"], p["act2_b"] = _dense_init(keys[6], 128, 256)
    p["act3_w"], p["act3_b"] = _dense_init(keys[7], 256, action_dim)
    p["crt1_w"], p["crt1_b"] = _dense_init(keys[8], m, 128)
    p["crt2_w"], p["crt2_b"] = _dense_init(keys[9], 128, 256)
    p["crt3_w"], p["crt3_b"] = _dense_init(keys[10], 256, 1)
    p["log_std"] = jnp.ones((1, action_dim), jnp.float32) * std
    return p, meta


# ----------------------------------------------------------------------------
# One-time weight prep: conv filters -> matmul matrices in (kh, kw, cin) column
# order; actor/critic heads fused (layer 1 side-by-side, layers 2/3 block-
# diagonal); everything packed into one bias vector + one 64-lane weight slab
# + three natural-width weights (7 total input DMAs incl. activations).
# ----------------------------------------------------------------------------
def prepare_kernel_params(params, meta, use_bf16_mxu=True):
    """use_bf16_mxu=True (recommended on v6e/v7x): weights + conv1 patches in
    bf16, native bf16 MXU path with f32 accumulation.  Pass False for exact
    f32 semantics (and on v5e, whose VPU has no native bf16 support)."""
    wdt = jnp.bfloat16 if use_bf16_mxu else jnp.float32
    f32 = jnp.float32
    P3 = meta["oh3"] * meta["ow3"]
    adim = meta["action_dim"]

    def conv_mat(w):                     # (O, I, kh, kw) -> (kh*kw*I, O)
        return jnp.transpose(w, (2, 3, 1, 0)).reshape(-1, w.shape[0])

    def head1_perm(w):                   # grid rows: c-major -> pixel-major
        g = w[:64 * P3].reshape(64, P3, w.shape[1])
        g = jnp.transpose(g, (1, 0, 2)).reshape(64 * P3, w.shape[1])
        return jnp.concatenate([g, w[64 * P3:]], axis=0)

    w1 = conv_mat(params["conv1_w"])                         # (64*C, 32)
    w2 = conv_mat(params["conv2_w"])                         # (512, 64)
    w3 = conv_mat(params["conv3_w"])                         # (576, 64)

    # fused (actor | critic) head weights
    wh1 = jnp.concatenate([head1_perm(params["act1_w"]),
                           head1_perm(params["crt1_w"])], axis=1)   # (merged,256)
    wh2 = jnp.zeros((256, 512), f32)                                # block-diag
    wh2 = wh2.at[:128, :256].set(params["act2_w"])
    wh2 = wh2.at[128:, 256:].set(params["crt2_w"])
    wh3 = jnp.zeros((512, adim + 1), f32)                           # [mean|value]
    wh3 = wh3.at[:256, :adim].set(params["act3_w"])
    wh3 = wh3.at[256:, adim:].set(params["crt3_w"])

    # one 64-lane-wide weight slab: [w1 | w2 | w3 | speed-fc2 | fused head-3]
    def pad_cols(w, n=64):
        return jnp.pad(w, ((0, 0), (0, n - w.shape[1])))
    w64 = jnp.concatenate([pad_cols(w1), w2, w3, params["spd2_w"],
                           pad_cols(wh3)], axis=0)

    # one packed bias vector, every segment 128-lane aligned
    def seg(b, n):
        return jnp.pad(b, (0, n - b.shape[0]))
    bias = jnp.concatenate([
        seg(params["conv1_b"], 128), seg(params["conv2_b"], 128),
        seg(params["conv3_b"], 128), seg(params["spd1_b"], 128),
        seg(params["spd2_b"], 128),
        seg(jnp.concatenate([params["act1_b"], params["crt1_b"]]), 256),
        seg(jnp.concatenate([params["act2_b"], params["crt2_b"]]), 512),
        seg(jnp.concatenate([params["act3_b"], params["crt3_b"]]), 128),
    ]).reshape(1, -1)
    assert bias.shape == (1, _BIAS_LEN)

    return {
        "w64": w64.astype(wdt),
        "wh2": wh2.astype(wdt),
        "wh1": wh1.astype(wdt),
        "ws1": params["spd1_w"].astype(wdt),
        "bias": bias.astype(f32),
        "log_std": params["log_std"].astype(f32),
    }


# ----------------------------------------------------------------------------
# conv1 im2col (channels-last, done once on the raw input before the kernel).
# Rows ordered (pixel, batch); columns ordered (kh, kw, c).
# ----------------------------------------------------------------------------
def _conv1_patches(occ_padded, k=8, s=4):
    B, C, Hp, Wp = occ_padded.shape
    oh = (Hp - k) // s + 1
    ow = (Wp - k) // s + 1
    xh = jnp.transpose(occ_padded, (0, 2, 3, 1))                  # (B, Hp, Wp, C)
    ih = (jnp.arange(oh) * s)[:, None] + jnp.arange(k)[None, :]   # (oh, k)
    iw = (jnp.arange(ow) * s)[:, None] + jnp.arange(k)[None, :]   # (ow, k)
    p = xh[:, ih]                                                 # (B, oh, k, Wp, C)
    p = p[:, :, :, iw]                                            # (B, oh, k, ow, k, C)
    p = jnp.transpose(p, (1, 3, 0, 2, 4, 5))                      # (oh, ow, B, kh, kw, C)
    return p.reshape(oh * ow * B, k * k * C)


# ----------------------------------------------------------------------------
# Forward pass: one pallas_call.  Returns (mean, std, value).
# ----------------------------------------------------------------------------
def gaussian_policy_forward(kparams, meta, occ_obs, speed_obs):
    B = occ_obs.shape[0]
    assert B == speed_obs.shape[0]
    adim = meta["action_dim"]

    # Only XLA-side prep: right/bottom zero-pad + conv1 im2col.
    occ = jnp.pad(occ_obs.astype(jnp.float32),
                  ((0, 0), (0, 0), (0, meta["pad_h"]), (0, meta["pad_w"])))
    p1 = _conv1_patches(occ)                                      # (oh1*ow1*B, 64*C)
    if kparams["w64"].dtype == jnp.bfloat16:
        p1 = p1.astype(jnp.bfloat16)          # halves the largest activation DMA

    inputs = [p1, speed_obs.astype(jnp.float32), kparams["bias"],
              kparams["w64"], kparams["wh2"], kparams["wh1"], kparams["ws1"]]
    in_specs = [pl.BlockSpec(x.shape, lambda i: (0, 0)) for x in inputs]

    kernel = functools.partial(
        _policy_kernel, B=B, C=meta["C"], ow1=meta["ow1"], oh2=meta["oh2"],
        ow2=meta["ow2"], oh3=meta["oh3"], ow3=meta["ow3"], adim=adim)

    out = pl.pallas_call(
        kernel,
        out_shape=jax.ShapeDtypeStruct((B, adim + 1), jnp.float32),
        grid=(1,),
        in_specs=in_specs,
        out_specs=pl.BlockSpec((B, adim + 1), lambda i: (0, 0)),
        compiler_params=pltpu.CompilerParams(
            dimension_semantics=("arbitrary",)),
    )(*inputs)

    mean = out[:, :adim]
    value = out[:, adim:]
    std = jnp.broadcast_to(jnp.exp(kparams["log_std"]), mean.shape)
    return mean, std, value


# ----------------------------------------------------------------------------
# Plain-JAX reference of the original module (for correctness checking only).
# ----------------------------------------------------------------------------
def _reference_forward(params, meta, occ_obs, speed_obs):
    occ = jnp.pad(occ_obs.astype(jnp.float32),
                  ((0, 0), (0, 0), (0, meta["pad_h"]), (0, meta["pad_w"])))

    def conv(x, w, b, stride):
        y = jax.lax.conv_general_dilated(
            x, w, window_strides=(stride, stride), padding="VALID",
            dimension_numbers=("NCHW", "OIHW", "NCHW"))
        return jax.nn.relu(y + b[None, :, None, None])

    h = conv(occ, params["conv1_w"], params["conv1_b"], 4)
    h = conv(h, params["conv2_w"], params["conv2_b"], 2)
    h = conv(h, params["conv3_w"], params["conv3_b"], 1)
    grid = h.reshape(occ_obs.shape[0], -1)

    s = jax.nn.relu(speed_obs @ params["spd1_w"] + params["spd1_b"])
    s = jax.nn.relu(s @ params["spd2_w"] + params["spd2_b"])
    merged = jnp.concatenate([grid, s], axis=1)

    a = jax.nn.relu(merged @ params["act1_w"] + params["act1_b"])
    a = jax.nn.relu(a @ params["act2_w"] + params["act2_b"])
    mean = a @ params["act3_w"] + params["act3_b"]

    c = jax.nn.relu(merged @ params["crt1_w"] + params["crt1_b"])
    c = jax.nn.relu(c @ params["crt2_w"] + params["crt2_b"])
    value = c @ params["crt3_w"] + params["crt3_b"]
    return mean, value


# ----------------------------------------------------------------------------
if __name__ == "__main__":
    # occ obs Box: (C=4, H=36, W=36) -> conv stack reduces to (64, 1, 1)
    # speed obs Box: (8,), action Box: (3,)
    B, C, H, W = 2, 4, 36, 36
    SPEED_DIM, ACTION_DIM = 8, 3

    key = jax.random.PRNGKey(0)
    k_param, k_occ, k_spd = jax.random.split(key, 3)

    params, meta = init_params(k_param, C, H, W, SPEED_DIM, ACTION_DIM, std=0.0)
    occ_obs = jax.random.normal(k_occ, (B, C, H, W), jnp.float32)
    speed_obs = jax.random.normal(k_spd, (B, SPEED_DIM), jnp.float32)

    ref_mean, ref_value = _reference_forward(params, meta, occ_obs, speed_obs)

    fwd = jax.jit(lambda kp, occ, spd: gaussian_policy_forward(kp, meta, occ, spd))

    # Exact-f32 path: tight correctness check against the plain-JAX reference.
    kp_f32 = prepare_kernel_params(params, meta, use_bf16_mxu=False)
    mean, std, value = fwd(kp_f32, occ_obs, speed_obs)
    jax.block_until_ready((mean, std, value))

    assert mean.shape == (B, ACTION_DIM)
    assert std.shape == (B, ACTION_DIM)
    assert value.shape == (B, 1)
    assert bool(jnp.all(jnp.isfinite(mean))) and bool(jnp.all(jnp.isfinite(value)))
    assert bool(jnp.all(std > 0.0))
    assert bool(jnp.allclose(mean, ref_mean, rtol=2e-3, atol=2e-3)), (
        float(jnp.max(jnp.abs(mean - ref_mean))))
    assert bool(jnp.allclose(value, ref_value, rtol=2e-3, atol=2e-3)), (
        float(jnp.max(jnp.abs(value - ref_value))))

    # bf16-MXU path (recommended default on v6e/v7x): looser tolerance.
    kp_bf16 = prepare_kernel_params(params, meta, use_bf16_mxu=True)
    mean16, std16, value16 = fwd(kp_bf16, occ_obs, speed_obs)
    jax.block_until_ready((mean16, std16, value16))
    assert bool(jnp.all(jnp.isfinite(mean16))) and bool(jnp.all(jnp.isfinite(value16)))
    assert bool(jnp.allclose(mean16, ref_mean, rtol=5e-2, atol=5e-2)), (
        float(jnp.max(jnp.abs(mean16 - ref_mean))))
    assert bool(jnp.allclose(value16, ref_value, rtol=5e-2, atol=5e-2)), (
        float(jnp.max(jnp.abs(value16 - ref_value))))

    print("KERNEL_OK")
</pallas_src>

<mosaic_0001>
module attributes {stable_mosaic.version = 11 : i64} {
  func.func @_policy_kernel(%arg0: i32, %arg1: memref<128x256xf32, #tpu.memory_space<vmem>>, %arg2: memref<2x8xf32, #tpu.memory_space<vmem>>, %arg3: memref<1x1536xf32, #tpu.memory_space<vmem>>, %arg4: memref<1984x64xf32, #tpu.memory_space<vmem>>, %arg5: memref<256x512xf32, #tpu.memory_space<vmem>>, %arg6: memref<128x256xf32, #tpu.memory_space<vmem>>, %arg7: memref<8x128xf32, #tpu.memory_space<vmem>>, %arg8: memref<2x4xf32, #tpu.memory_space<vmem>>) attributes {dimension_semantics = [#tpu.dimension_semantics<arbitrary>], iteration_bounds = array<i64: 1>, scalar_prefetch = 0 : i64, scratch_operands = 0 : i64, tpu.core_type = #tpu.core_type<tc>, window_params = [{pipeline_mode = #tpu.pipeline_mode<synchronous>, transform_indices = @transform_0, window_bounds = array<i64: 128, 256>}, {pipeline_mode = #tpu.pipeline_mode<synchronous>, transform_indices = @transform_1, window_bounds = array<i64: 2, 8>}, {pipeline_mode = #tpu.pipeline_mode<synchronous>, transform_indices = @transform_2, window_bounds = array<i64: 1, 1536>}, {pipeline_mode = #tpu.pipeline_mode<synchronous>, transform_indices = @transform_3, window_bounds = array<i64: 1984, 64>}, {pipeline_mode = #tpu.pipeline_mode<synchronous>, transform_indices = @transform_4, window_bounds = array<i64: 256, 512>}, {pipeline_mode = #tpu.pipeline_mode<synchronous>, transform_indices = @transform_5, window_bounds = array<i64: 128, 256>}, {pipeline_mode = #tpu.pipeline_mode<synchronous>, transform_indices = @transform_6, window_bounds = array<i64: 8, 128>}, {pipeline_mode = #tpu.pipeline_mode<synchronous>, transform_indices = @transform_7, window_bounds = array<i64: 2, 4>}]} {
    %c0 = arith.constant 0 : index
    %c0_0 = arith.constant 0 : index
    %0 = vector.load %arg3[%c0, %c0_0] : memref<1x1536xf32, #tpu.memory_space<vmem>>, vector<1x32xf32>
    %c0_1 = arith.constant 0 : index
    %c128 = arith.constant 128 : index
    %1 = vector.load %arg3[%c0_1, %c128] : memref<1x1536xf32, #tpu.memory_space<vmem>>, vector<1x64xf32>
    %c0_2 = arith.constant 0 : index
    %c256 = arith.constant 256 : index
    %2 = vector.load %arg3[%c0_2, %c256] : memref<1x1536xf32, #tpu.memory_space<vmem>>, vector<1x64xf32>
    %c0_3 = arith.constant 0 : index
    %c384 = arith.constant 384 : index
    %3 = vector.load %arg3[%c0_3, %c384] : memref<1x1536xf32, #tpu.memory_space<vmem>>, vector<1x128xf32>
    %c0_4 = arith.constant 0 : index
    %c512 = arith.constant 512 : index
    %4 = vector.load %arg3[%c0_4, %c512] : memref<1x1536xf32, #tpu.memory_space<vmem>>, vector<1x64xf32>
    %c0_5 = arith.constant 0 : index
    %c640 = arith.constant 640 : index
    %5 = vector.load %arg3[%c0_5, %c640] : memref<1x1536xf32, #tpu.memory_space<vmem>>, vector<1x256xf32>
    %c0_6 = arith.constant 0 : index
    %c896 = arith.constant 896 : index
    %6 = vector.load %arg3[%c0_6, %c896] : memref<1x1536xf32, #tpu.memory_space<vmem>>, vector<1x512xf32>
    %c0_7 = arith.constant 0 : index
    %c1408 = arith.constant 1408 : index
    %7 = vector.load %arg3[%c0_7, %c1408] : memref<1x1536xf32, #tpu.memory_space<vmem>>, vector<1x4xf32>
    %c0_8 = arith.constant 0 : index
    %c0_9 = arith.constant 0 : index
    %8 = vector.load %arg4[%c0_8, %c0_9] : memref<1984x64xf32, #tpu.memory_space<vmem>>, vector<256x32xf32>
    %c256_10 = arith.constant 256 : index
    %c0_11 = arith.constant 0 : index
    %9 = vector.load %arg4[%c256_10, %c0_11] : memref<1984x64xf32, #tpu.memory_space<vmem>>, vector<512x64xf32>
    %c768 = arith.constant 768 : index
    %c0_12 = arith.constant 0 : index
    %10 = vector.load %arg4[%c768, %c0_12] : memref<1984x64xf32, #tpu.memory_space<vmem>>, vector<576x64xf32>
    %c1344 = arith.constant 1344 : index
    %c0_13 = arith.constant 0 : index
    %11 = vector.load %arg4[%c1344, %c0_13] : memref<1984x64xf32, #tpu.memory_space<vmem>>, vector<128x64xf32>
    %c1472 = arith.constant 1472 : index
    %c0_14 = arith.constant 0 : index
    %12 = vector.load %arg4[%c1472, %c0_14] : memref<1984x64xf32, #tpu.memory_space<vmem>>, vector<512x4xf32>
    %c0_15 = arith.constant 0 : index
    %c0_16 = arith.constant 0 : index
    %13 = vector.load %arg1[%c0_15, %c0_16] : memref<128x256xf32, #tpu.memory_space<vmem>>, vector<128x256xf32>
    %cst = arith.constant dense<0.000000e+00> : vector<128x32xf32>
    %14 = tpu.matmul %13, %8, %cst {dimension_numbers = #tpu.dot_dimension_numbers<[1], [0], [0], [1], [0, 0, 1, 1], [], []>} : vector<128x256xf32>, vector<256x32xf32>, vector<128x32xf32> -> vector<128x32xf32>
    %15 = vector.broadcast %0 : vector<1x32xf32> to vector<128x32xf32>
    %16 = arith.addf %14, %15 : vector<128x32xf32>
    %cst_17 = arith.constant 0.000000e+00 : f32
    %17 = vector.broadcast %cst_17 : f32 to vector<128x32xf32>
    %18 = arith.maximumf %16, %17 : vector<128x32xf32>
    %19 = vector.extract_strided_slice %18 {offsets = [0, 0], sizes = [2, 32], strides = [1, 1]} : vector<128x32xf32> to vector<2x32xf32>
    %20 = vector.extract_strided_slice %18 {offsets = [2, 0], sizes = [2, 32], strides = [1, 1]} : vector<128x32xf32> to vector<2x32xf32>
    %21 = vector.extract_strided_slice %18 {offsets = [4, 0], sizes = [2, 32], strides = [1, 1]} : vector<128x32xf32> to vector<2x32xf32>
    %22 = vector.extract_strided_slice %18 {offsets = [6, 0], sizes = [2, 32], strides = [1, 1]} : vector<128x32xf32> to vector<2x32xf32>
    %23 = vector.extract_strided_slice %18 {offsets = [16, 0], sizes = [2, 32], strides = [1, 1]} : vector<128x32xf32> to vector<2x32xf32>
    %24 = vector.extract_strided_slice %18 {offsets = [18, 0], sizes = [2, 32], strides = [1, 1]} : vector<128x32xf32> to vector<2x32xf32>
    %25 = vector.extract_strided_slice %18 {offsets = [20, 0], sizes = [2, 32], strides = [1, 1]} : vector<128x32xf32> to vector<2x32xf32>
    %26 = vector.extract_strided_slice %18 {offsets = [22, 0], sizes = [2, 32], strides = [1, 1]} : vector<128x32xf32> to vector<2x32xf32>
    %27 = vector.extract_strided_slice %18 {offsets = [32, 0], sizes = [2, 32], strides = [1, 1]} : vector<128x32xf32> to vector<2x32xf32>
    %28 = vector.extract_strided_slice %18 {offsets = [34, 0], sizes = [2, 32], strides = [1, 1]} : vector<128x32xf32> to vector<2x32xf32>
    %29 = vector.extract_strided_slice %18 {offsets = [36, 0], sizes = [2, 32], strides = [1, 1]} : vector<128x32xf32> to vector<2x32xf32>
    %30 = vector.extract_strided_slice %18 {offsets = [38, 0], sizes = [2, 32], strides = [1, 1]} : vector<128x32xf32> to vector<2x32xf32>
    %31 = vector.extract_strided_slice %18 {offsets = [48, 0], sizes = [2, 32], strides = [1, 1]} : vector<128x32xf32> to vector<2x32xf32>
    %32 = vector.extract_strided_slice %18 {offsets = [50, 0], sizes = [2, 32], strides = [1, 1]} : vector<128x32xf32> to vector<2x32xf32>
    %33 = vector.extract_strided_slice %18 {offsets = [52, 0], sizes = [2, 32], strides = [1, 1]} : vector<128x32xf32> to vector<2x32xf32>
    %34 = vector.extract_strided_slice %18 {offsets = [54, 0], sizes = [2, 32], strides = [1, 1]} : vector<128x32xf32> to vector<2x32xf32>
    %35 = tpu.concatenate %19, %20, %21, %22, %23, %24, %25, %26, %27, %28, %29, %30, %31, %32, %33, %34 in 1 : vector<2x32xf32>, vector<2x32xf32>, vector<2x32xf32>, vector<2x32xf32>, vector<2x32xf32>, vector<2x32xf32>, vector<2x32xf32>, vector<2x32xf32>, vector<2x32xf32>, vector<2x32xf32>, vector<2x32xf32>, vector<2x32xf32>, vector<2x32xf32>, vector<2x32xf32>, vector<2x32xf32>, vector<2x32xf32> -> vector<2x512xf32>
    %cst_18 = arith.constant dense<0.000000e+00> : vector<2x64xf32>
    %36 = tpu.matmul %35, %9, %cst_18 {dimension_numbers = #tpu.dot_dimension_numbers<[1], [0], [0], [1], [0, 0, 1, 1], [], []>} : vector<2x512xf32>, vector<512x64xf32>, vector<2x64xf32> -> vector<2x64xf32>
    %37 = vector.broadcast %1 : vector<1x64xf32> to vector<2x64xf32>
    %38 = arith.addf %36, %37 : vector<2x64xf32>
    %cst_19 = arith.constant 0.000000e+00 : f32
    %39 = vector.broadcast %cst_19 : f32 to vector<2x64xf32>
    %40 = arith.maximumf %38, %39 : vector<2x64xf32>
    %41 = vector.extract_strided_slice %18 {offsets = [4, 0], sizes = [2, 32], strides = [1, 1]} : vector<128x32xf32> to vector<2x32xf32>
    %42 = vector.extract_strided_slice %18 {offsets = [6, 0], sizes = [2, 32], strides = [1, 1]} : vector<128x32xf32> to vector<2x32xf32>
    %43 = vector.extract_strided_slice %18 {offsets = [8, 0], sizes = [2, 32], strides = [1, 1]} : vector<128x32xf32> to vector<2x32xf32>
    %44 = vector.extract_strided_slice %18 {offsets = [10, 0], sizes = [2, 32], strides = [1, 1]} : vector<128x32xf32> to vector<2x32xf32>
    %45 = vector.extract_strided_slice %18 {offsets = [20, 0], sizes = [2, 32], strides = [1, 1]} : vector<128x32xf32> to vector<2x32xf32>
    %46 = vector.extract_strided_slice %18 {offsets = [22, 0], sizes = [2, 32], strides = [1, 1]} : vector<128x32xf32> to vector<2x32xf32>
    %47 = vector.extract_strided_slice %18 {offsets = [24, 0], sizes = [2, 32], strides = [1, 1]} : vector<128x32xf32> to vector<2x32xf32>
    %48 = vector.extract_strided_slice %18 {offsets = [26, 0], sizes = [2, 32], strides = [1, 1]} : vector<128x32xf32> to vector<2x32xf32>
    %49 = vector.extract_strided_slice %18 {offsets = [36, 0], sizes = [2, 32], strides = [1, 1]} : vector<128x32xf32> to vector<2x32xf32>
    %50 = vector.extract_strided_slice %18 {offsets = [38, 0], sizes = [2, 32], strides = [1, 1]} : vector<128x32xf32> to vector<2x32xf32>
    %51 = vector.extract_strided_slice %18 {offsets = [40, 0], sizes = [2, 32], strides = [1, 1]} : vector<128x32xf32> to vector<2x32xf32>
    %52 = vector.extract_strided_slice %18 {offsets = [42, 0], sizes = [2, 32], strides = [1, 1]} : vector<128x32xf32> to vector<2x32xf32>
    %53 = vector.extract_strided_slice %18 {offsets = [52, 0], sizes = [2, 32], strides = [1, 1]} : vector<128x32xf32> to vector<2x32xf32>
    %54 = vector.extract_strided_slice %18 {offsets = [54, 0], sizes = [2, 32], strides = [1, 1]} : vector<128x32xf32> to vector<2x32xf32>
    %55 = vector.extract_strided_slice %18 {offsets = [56, 0], sizes = [2, 32], strides = [1, 1]} : vector<128x32xf32> to vector<2x32xf32>
    %56 = vector.extract_strided_slice %18 {offsets = [58, 0], sizes = [2, 32], strides = [1, 1]} : vector<128x32xf32> to vector<2x32xf32>
    %57 = tpu.concatenate %41, %42, %43, %44, %45, %46, %47, %48, %49, %50, %51, %52, %53, %54, %55, %56 in 1 : vector<2x32xf32>, vector<2x32xf32>, vector<2x32xf32>, vector<2x32xf32>, vector<2x32xf32>, vector<2x32xf32>, vector<2x32xf32>, vector<2x32xf32>, vector<2x32xf32>, vector<2x32xf32>, vector<2x32xf32>, vector<2x32xf32>, vector<2x32xf32>, vector<2x32xf32>, vector<2x32xf32>, vector<2x32xf32> -> vector<2x512xf32>
    %cst_20 = arith.constant dense<0.000000e+00> : vector<2x64xf32>
    %58 = tpu.matmul %57, %9, %cst_20 {dimension_numbers = #tpu.dot_dimension_numbers<[1], [0], [0], [1], [0, 0, 1, 1], [], []>} : vector<2x512xf32>, vector<512x64xf32>, vector<2x64xf32> -> vector<2x64xf32>
    %59 = vector.broadcast %1 : vector<1x64xf32> to vector<2x64xf32>
    %60 = arith.addf %58, %59 : vector<2x64xf32>
    %cst_21 = arith.constant 0.000000e+00 : f32
    %61 = vector.broadcast %cst_21 : f32 to vector<2x64xf32>
    %62 = arith.maximumf %60, %61 : vector<2x64xf32>
    %63 = vector.extract_strided_slice %18 {offsets = [8, 0], sizes = [2, 32], strides = [1, 1]} : vector<128x32xf32> to vector<2x32xf32>
    %64 = vector.extract_strided_slice %18 {offsets = [10, 0], sizes = [2, 32], strides = [1, 1]} : vector<128x32xf32> to vector<2x32xf32>
    %65 = vector.extract_strided_slice %18 {offsets = [12, 0], sizes = [2, 32], strides = [1, 1]} : vector<128x32xf32> to vector<2x32xf32>
    %66 = vector.extract_strided_slice %18 {offsets = [14, 0], sizes = [2, 32], strides = [1, 1]} : vector<128x32xf32> to vector<2x32xf32>
    %67 = vector.extract_strided_slice %18 {offsets = [24, 0], sizes = [2, 32], strides = [1, 1]} : vector<128x32xf32> to vector<2x32xf32>
    %68 = vector.extract_strided_slice %18 {offsets = [26, 0], sizes = [2, 32], strides = [1, 1]} : vector<128x32xf32> to vector<2x32xf32>
    %69 = vector.extract_strided_slice %18 {offsets = [28, 0], sizes = [2, 32], strides = [1, 1]} : vector<128x32xf32> to vector<2x32xf32>
    %70 = vector.extract_strided_slice %18 {offsets = [30, 0], sizes = [2, 32], strides = [1, 1]} : vector<128x32xf32> to vector<2x32xf32>
    %71 = vector.extract_strided_slice %18 {offsets = [40, 0], sizes = [2, 32], strides = [1, 1]} : vector<128x32xf32> to vector<2x32xf32>
    %72 = vector.extract_strided_slice %18 {offsets = [42, 0], sizes = [2, 32], strides = [1, 1]} : vector<128x32xf32> to vector<2x32xf32>
    %73 = vector.extract_strided_slice %18 {offsets = [44, 0], sizes = [2, 32], strides = [1, 1]} : vector<128x32xf32> to vector<2x32xf32>
    %74 = vector.extract_strided_slice %18 {offsets = [46, 0], sizes = [2, 32], strides = [1, 1]} : vector<128x32xf32> to vector<2x32xf32>
    %75 = vector.extract_strided_slice %18 {offsets = [56, 0], sizes = [2, 32], strides = [1, 1]} : vector<128x32xf32> to vector<2x32xf32>
    %76 = vector.extract_strided_slice %18 {offsets = [58, 0], sizes = [2, 32], strides = [1, 1]} : vector<128x32xf32> to vector<2x32xf32>
    %77 = vector.extract_strided_slice %18 {offsets = [60, 0], sizes = [2, 32], strides = [1, 1]} : vector<128x32xf32> to vector<2x32xf32>
    %78 = vector.extract_strided_slice %18 {offsets = [62, 0], sizes = [2, 32], strides = [1, 1]} : vector<128x32xf32> to vector<2x32xf32>
    %79 = tpu.concatenate %63, %64, %65, %66, %67, %68, %69, %70, %71, %72, %73, %74, %75, %76, %77, %78 in 1 : vector<2x32xf32>, vector<2x32xf32>, vector<2x32xf32>, vector<2x32xf32>, vector<2x32xf32>, vector<2x32xf32>, vector<2x32xf32>, vector<2x32xf32>, vector<2x32xf32>, vector<2x32xf32>, vector<2x32xf32>, vector<2x32xf32>, vector<2x32xf32>, vector<2x32xf32>, vector<2x32xf32>, vector<2x32xf32> -> vector<2x512xf32>
    %cst_22 = arith.constant dense<0.000000e+00> : vector<2x64xf32>
    %80 = tpu.matmul %79, %9, %cst_22 {dimension_numbers = #tpu.dot_dimension_numbers<[1], [0], [0], [1], [0, 0, 1, 1], [], []>} : vector<2x512xf32>, vector<512x64xf32>, vector<2x64xf32> -> vector<2x64xf32>
    %81 = vector.broadcast %1 : vector<1x64xf32> to vector<2x64xf32>
    %82 = arith.addf %80, %81 : vector<2x64xf32>
    %cst_23 = arith.constant 0.000000e+00 : f32
    %83 = vector.broadcast %cst_23 : f32 to vector<2x64xf32>
    %84 = arith.maximumf %82, %83 : vector<2x64xf32>
    %85 = vector.extract_strided_slice %18 {offsets = [32, 0], sizes = [2, 32], strides = [1, 1]} : vector<128x32xf32> to vector<2x32xf32>
    %86 = vector.extract_strided_slice %18 {offsets = [34, 0], sizes = [2, 32], strides = [1, 1]} : vector<128x32xf32> to vector<2x32xf32>
    %87 = vector.extract_strided_slice %18 {offsets = [36, 0], sizes = [2, 32], strides = [1, 1]} : vector<128x32xf32> to vector<2x32xf32>
    %88 = vector.extract_strided_slice %18 {offsets = [38, 0], sizes = [2, 32], strides = [1, 1]} : vector<128x32xf32> to vector<2x32xf32>
    %89 = vector.extract_strided_slice %18 {offsets = [48, 0], sizes = [2, 32], strides = [1, 1]} : vector<128x32xf32> to vector<2x32xf32>
    %90 = vector.extract_strided_slice %18 {offsets = [50, 0], sizes = [2, 32], strides = [1, 1]} : vector<128x32xf32> to vector<2x32xf32>
    %91 = vector.extract_strided_slice %18 {offsets = [52, 0], sizes = [2, 32], strides = [1, 1]} : vector<128x32xf32> to vector<2x32xf32>
    %92 = vector.extract_strided_slice %18 {offsets = [54, 0], sizes = [2, 32], strides = [1, 1]} : vector<128x32xf32> to vector<2x32xf32>
    %93 = vector.extract_strided_slice %18 {offsets = [64, 0], sizes = [2, 32], strides = [1, 1]} : vector<128x32xf32> to vector<2x32xf32>
    %94 = vector.extract_strided_slice %18 {offsets = [66, 0], sizes = [2, 32], strides = [1, 1]} : vector<128x32xf32> to vector<2x32xf32>
    %95 = vector.extract_strided_slice %18 {offsets = [68, 0], sizes = [2, 32], strides = [1, 1]} : vector<128x32xf32> to vector<2x32xf32>
    %96 = vector.extract_strided_slice %18 {offsets = [70, 0], sizes = [2, 32], strides = [1, 1]} : vector<128x32xf32> to vector<2x32xf32>
    %97 = vector.extract_strided_slice %18 {offsets = [80, 0], sizes = [2, 32], strides = [1, 1]} : vector<128x32xf32> to vector<2x32xf32>
    %98 = vector.extract_strided_slice %18 {offsets = [82, 0], sizes = [2, 32], strides = [1, 1]} : vector<128x32xf32> to vector<2x32xf32>
    %99 = vector.extract_strided_slice %18 {offsets = [84, 0], sizes = [2, 32], strides = [1, 1]} : vector<128x32xf32> to vector<2x32xf32>
    %100 = vector.extract_strided_slice %18 {offsets = [86, 0], sizes = [2, 32], strides = [1, 1]} : vector<128x32xf32> to vector<2x32xf32>
    %101 = tpu.concatenate %85, %86, %87, %88, %89, %90, %91, %92, %93, %94, %95, %96, %97, %98, %99, %100 in 1 : vector<2x32xf32>, vector<2x32xf32>, vector<2x32xf32>, vector<2x32xf32>, vector<2x32xf32>, vector<2x32xf32>, vector<2x32xf32>, vector<2x32xf32>, vector<2x32xf32>, vector<2x32xf32>, vector<2x32xf32>, vector<2x32xf32>, vector<2x32xf32>, vector<2x32xf32>, vector<2x32xf32>, vector<2x32xf32> -> vector<2x512xf32>
    %cst_24 = arith.constant dense<0.000000e+00> : vector<2x64xf32>
    %102 = tpu.matmul %101, %9, %cst_24 {dimension_numbers = #tpu.dot_dimension_numbers<[1], [0], [0], [1], [0, 0, 1, 1], [], []>} : vector<2x512xf32>, vector<512x64xf32>, vector<2x64xf32> -> vector<2x64xf32>
    %103 = vector.broadcast %1 : vector<1x64xf32> to vector<2x64xf32>
    %104 = arith.addf %102, %103 : vector<2x64xf32>
    %cst_25 = arith.constant 0.000000e+00 : f32
    %105 = vector.broadcast %cst_25 : f32 to vector<2x64xf32>
    %106 = arith.maximumf %104, %105 : vector<2x64xf32>
    %107 = vector.extract_strided_slice %18 {offsets = [36, 0], sizes = [2, 32], strides = [1, 1]} : vector<128x32xf32> to vector<2x32xf32>
    %108 = vector.extract_strided_slice %18 {offsets = [38, 0], sizes = [2, 32], strides = [1, 1]} : vector<128x32xf32> to vector<2x32xf32>
    %109 = vector.extract_strided_slice %18 {offsets = [40, 0], sizes = [2, 32], strides = [1, 1]} : vector<128x32xf32> to vector<2x32xf32>
    %110 = vector.extract_strided_slice %18 {offsets = [42, 0], sizes = [2, 32], strides = [1, 1]} : vector<128x32xf32> to vector<2x32xf32>
    %111 = vector.extract_strided_slice %18 {offsets = [52, 0], sizes = [2, 32], strides = [1, 1]} : vector<128x32xf32> to vector<2x32xf32>
    %112 = vector.extract_strided_slice %18 {offsets = [54, 0], sizes = [2, 32], strides = [1, 1]} : vector<128x32xf32> to vector<2x32xf32>
    %113 = vector.extract_strided_slice %18 {offsets = [56, 0], sizes = [2, 32], strides = [1, 1]} : vector<128x32xf32> to vector<2x32xf32>
    %114 = vector.extract_strided_slice %18 {offsets = [58, 0], sizes = [2, 32], strides = [1, 1]} : vector<128x32xf32> to vector<2x32xf32>
    %115 = vector.extract_strided_slice %18 {offsets = [68, 0], sizes = [2, 32], strides = [1, 1]} : vector<128x32xf32> to vector<2x32xf32>
    %116 = vector.extract_strided_slice %18 {offsets = [70, 0], sizes = [2, 32], strides = [1, 1]} : vector<128x32xf32> to vector<2x32xf32>
    %117 = vector.extract_strided_slice %18 {offsets = [72, 0], sizes = [2, 32], strides = [1, 1]} : vector<128x32xf32> to vector<2x32xf32>
    %118 = vector.extract_strided_slice %18 {offsets = [74, 0], sizes = [2, 32], strides = [1, 1]} : vector<128x32xf32> to vector<2x32xf32>
    %119 = vector.extract_strided_slice %18 {offsets = [84, 0], sizes = [2, 32], strides = [1, 1]} : vector<128x32xf32> to vector<2x32xf32>
    %120 = vector.extract_strided_slice %18 {offsets = [86, 0], sizes = [2, 32], strides = [1, 1]} : vector<128x32xf32> to vector<2x32xf32>
    %121 = vector.extract_strided_slice %18 {offsets = [88, 0], sizes = [2, 32], strides = [1, 1]} : vector<128x32xf32> to vector<2x32xf32>
    %122 = vector.extract_strided_slice %18 {offsets = [90, 0], sizes = [2, 32], strides = [1, 1]} : vector<128x32xf32> to vector<2x32xf32>
    %123 = tpu.concatenate %107, %108, %109, %110, %111, %112, %113, %114, %115, %116, %117, %118, %119, %120, %121, %122 in 1 : vector<2x32xf32>, vector<2x32xf32>, vector<2x32xf32>, vector<2x32xf32>, vector<2x32xf32>, vector<2x32xf32>, vector<2x32xf32>, vector<2x32xf32>, vector<2x32xf32>, vector<2x32xf32>, vector<2x32xf32>, vector<2x32xf32>, vector<2x32xf32>, vector<2x32xf32>, vector<2x32xf32>, vector<2x32xf32> -> vector<2x512xf32>
    %cst_26 = arith.constant dense<0.000000e+00> : vector<2x64xf32>
    %124 = tpu.matmul %123, %9, %cst_26 {dimension_numbers = #tpu.dot_dimension_numbers<[1], [0], [0], [1], [0, 0, 1, 1], [], []>} : vector<2x512xf32>, vector<512x64xf32>, vector<2x64xf32> -> vector<2x64xf32>
    %125 = vector.broadcast %1 : vector<1x64xf32> to vector<2x64xf32>
    %126 = arith.addf %124, %125 : vector<2x64xf32>
    %cst_27 = arith.constant 0.000000e+00 : f32
    %127 = vector.broadcast %cst_27 : f32 to vector<2x64xf32>
    %128 = arith.maximumf %126, %127 : vector<2x64xf32>
    %129 = vector.extract_strided_slice %18 {offsets = [40, 0], sizes = [2, 32], strides = [1, 1]} : vector<128x32xf32> to vector<2x32xf32>
    %130 = vector.extract_strided_slice %18 {offsets = [42, 0], sizes = [2, 32], strides = [1, 1]} : vector<128x32xf32> to vector<2x32xf32>
    %131 = vector.extract_strided_slice %18 {offsets = [44, 0], sizes = [2, 32], strides = [1, 1]} : vector<128x32xf32> to vector<2x32xf32>
    %132 = vector.extract_strided_slice %18 {offsets = [46, 0], sizes = [2, 32], strides = [1, 1]} : vector<128x32xf32> to vector<2x32xf32>
    %133 = vector.extract_strided_slice %18 {offsets = [56, 0], sizes = [2, 32], strides = [1, 1]} : vector<128x32xf32> to vector<2x32xf32>
    %134 = vector.extract_strided_slice %18 {offsets = [58, 0], sizes = [2, 32], strides = [1, 1]} : vector<128x32xf32> to vector<2x32xf32>
    %135 = vector.extract_strided_slice %18 {offsets = [60, 0], sizes = [2, 32], strides = [1, 1]} : vector<128x32xf32> to vector<2x32xf32>
    %136 = vector.extract_strided_slice %18 {offsets = [62, 0], sizes = [2, 32], strides = [1, 1]} : vector<128x32xf32> to vector<2x32xf32>
    %137 = vector.extract_strided_slice %18 {offsets = [72, 0], sizes = [2, 32], strides = [1, 1]} : vector<128x32xf32> to vector<2x32xf32>
    %138 = vector.extract_strided_slice %18 {offsets = [74, 0], sizes = [2, 32], strides = [1, 1]} : vector<128x32xf32> to vector<2x32xf32>
    %139 = vector.extract_strided_slice %18 {offsets = [76, 0], sizes = [2, 32], strides = [1, 1]} : vector<128x32xf32> to vector<2x32xf32>
    %140 = vector.extract_strided_slice %18 {offsets = [78, 0], sizes = [2, 32], strides = [1, 1]} : vector<128x32xf32> to vector<2x32xf32>
    %141 = vector.extract_strided_slice %18 {offsets = [88, 0], sizes = [2, 32], strides = [1, 1]} : vector<128x32xf32> to vector<2x32xf32>
    %142 = vector.extract_strided_slice %18 {offsets = [90, 0], sizes = [2, 32], strides = [1, 1]} : vector<128x32xf32> to vector<2x32xf32>
    %143 = vector.extract_strided_slice %18 {offsets = [92, 0], sizes = [2, 32], strides = [1, 1]} : vector<128x32xf32> to vector<2x32xf32>
    %144 = vector.extract_strided_slice %18 {offsets = [94, 0], sizes = [2, 32], strides = [1, 1]} : vector<128x32xf32> to vector<2x32xf32>
    %145 = tpu.concatenate %129, %130, %131, %132, %133, %134, %135, %136, %137, %138, %139, %140, %141, %142, %143, %144 in 1 : vector<2x32xf32>, vector<2x32xf32>, vector<2x32xf32>, vector<2x32xf32>, vector<2x32xf32>, vector<2x32xf32>, vector<2x32xf32>, vector<2x32xf32>, vector<2x32xf32>, vector<2x32xf32>, vector<2x32xf32>, vector<2x32xf32>, vector<2x32xf32>, vector<2x32xf32>, vector<2x32xf32>, vector<2x32xf32> -> vector<2x512xf32>
    %cst_28 = arith.constant dense<0.000000e+00> : vector<2x64xf32>
    %146 = tpu.matmul %145, %9, %cst_28 {dimension_numbers = #tpu.dot_dimension_numbers<[1], [0], [0], [1], [0, 0, 1, 1], [], []>} : vector<2x512xf32>, vector<512x64xf32>, vector<2x64xf32> -> vector<2x64xf32>
    %147 = vector.broadcast %1 : vector<1x64xf32> to vector<2x64xf32>
    %148 = arith.addf %146, %147 : vector<2x64xf32>
    %cst_29 = arith.constant 0.000000e+00 : f32
    %149 = vector.broadcast %cst_29 : f32 to vector<2x64xf32>
    %150 = arith.maximumf %148, %149 : vector<2x64xf32>
    %151 = vector.extract_strided_slice %18 {offsets = [64, 0], sizes = [2, 32], strides = [1, 1]} : vector<128x32xf32> to vector<2x32xf32>
    %152 = vector.extract_strided_slice %18 {offsets = [66, 0], sizes = [2, 32], strides = [1, 1]} : vector<128x32xf32> to vector<2x32xf32>
    %153 = vector.extract_strided_slice %18 {offsets = [68, 0], sizes = [2, 32], strides = [1, 1]} : vector<128x32xf32> to vector<2x32xf32>
    %154 = vector.extract_strided_slice %18 {offsets = [70, 0], sizes = [2, 32], strides = [1, 1]} : vector<128x32xf32> to vector<2x32xf32>
    %155 = vector.extract_strided_slice %18 {offsets = [80, 0], sizes = [2, 32], strides = [1, 1]} : vector<128x32xf32> to vector<2x32xf32>
    %156 = vector.extract_strided_slice %18 {offsets = [82, 0], sizes = [2, 32], strides = [1, 1]} : vector<128x32xf32> to vector<2x32xf32>
    %157 = vector.extract_strided_slice %18 {offsets = [84, 0], sizes = [2, 32], strides = [1, 1]} : vector<128x32xf32> to vector<2x32xf32>
    %158 = vector.extract_strided_slice %18 {offsets = [86, 0], sizes = [2, 32], strides = [1, 1]} : vector<128x32xf32> to vector<2x32xf32>
    %159 = vector.extract_strided_slice %18 {offsets = [96, 0], sizes = [2, 32], strides = [1, 1]} : vector<128x32xf32> to vector<2x32xf32>
    %160 = vector.extract_strided_slice %18 {offsets = [98, 0], sizes = [2, 32], strides = [1, 1]} : vector<128x32xf32> to vector<2x32xf32>
    %161 = vector.extract_strided_slice %18 {offsets = [100, 0], sizes = [2, 32], strides = [1, 1]} : vector<128x32xf32> to vector<2x32xf32>
    %162 = vector.extract_strided_slice %18 {offsets = [102, 0], sizes = [2, 32], strides = [1, 1]} : vector<128x32xf32> to vector<2x32xf32>
    %163 = vector.extract_strided_slice %18 {offsets = [112, 0], sizes = [2, 32], strides = [1, 1]} : vector<128x32xf32> to vector<2x32xf32>
    %164 = vector.extract_strided_slice %18 {offsets = [114, 0], sizes = [2, 32], strides = [1, 1]} : vector<128x32xf32> to vector<2x32xf32>
    %165 = vector.extract_strided_slice %18 {offsets = [116, 0], sizes = [2, 32], strides = [1, 1]} : vector<128x32xf32> to vector<2x32xf32>
    %166 = vector.extract_strided_slice %18 {offsets = [118, 0], sizes = [2, 32], strides = [1, 1]} : vector<128x32xf32> to vector<2x32xf32>
    %167 = tpu.concatenate %151, %152, %153, %154, %155, %156, %157, %158, %159, %160, %161, %162, %163, %164, %165, %166 in 1 : vector<2x32xf32>, vector<2x32xf32>, vector<2x32xf32>, vector<2x32xf32>, vector<2x32xf32>, vector<2x32xf32>, vector<2x32xf32>, vector<2x32xf32>, vector<2x32xf32>, vector<2x32xf32>, vector<2x32xf32>, vector<2x32xf32>, vector<2x32xf32>, vector<2x32xf32>, vector<2x32xf32>, vector<2x32xf32> -> vector<2x512xf32>
    %cst_30 = arith.constant dense<0.000000e+00> : vector<2x64xf32>
    %168 = tpu.matmul %167, %9, %cst_30 {dimension_numbers = #tpu.dot_dimension_numbers<[1], [0], [0], [1], [0, 0, 1, 1], [], []>} : vector<2x512xf32>, vector<512x64xf32>, vector<2x64xf32> -> vector<2x64xf32>
    %169 = vector.broadcast %1 : vector<1x64xf32> to vector<2x64xf32>
    %170 = arith.addf %168, %169 : vector<2x64xf32>
    %cst_31 = arith.constant 0.000000e+00 : f32
    %171 = vector.broadcast %cst_31 : f32 to vector<2x64xf32>
    %172 = arith.maximumf %170, %171 : vector<2x64xf32>
    %173 = vector.extract_strided_slice %18 {offsets = [68, 0], sizes = [2, 32], strides = [1, 1]} : vector<128x32xf32> to vector<2x32xf32>
    %174 = vector.extract_strided_slice %18 {offsets = [70, 0], sizes = [2, 32], strides = [1, 1]} : vector<128x32xf32> to vector<2x32xf32>
    %175 = vector.extract_strided_slice %18 {offsets = [72, 0], sizes = [2, 32], strides = [1, 1]} : vector<128x32xf32> to vector<2x32xf32>
    %176 = vector.extract_strided_slice %18 {offsets = [74, 0], sizes = [2, 32], strides = [1, 1]} : vector<128x32xf32> to vector<2x32xf32>
    %177 = vector.extract_strided_slice %18 {offsets = [84, 0], sizes = [2, 32], strides = [1, 1]} : vector<128x32xf32> to vector<2x32xf32>
    %178 = vector.extract_strided_slice %18 {offsets = [86, 0], sizes = [2, 32], strides = [1, 1]} : vector<128x32xf32> to vector<2x32xf32>
    %179 = vector.extract_strided_slice %18 {offsets = [88, 0], sizes = [2, 32], strides = [1, 1]} : vector<128x32xf32> to vector<2x32xf32>
    %180 = vector.extract_strided_slice %18 {offsets = [90, 0], sizes = [2, 32], strides = [1, 1]} : vector<128x32xf32> to vector<2x32xf32>
    %181 = vector.extract_strided_slice %18 {offsets = [100, 0], sizes = [2, 32], strides = [1, 1]} : vector<128x32xf32> to vector<2x32xf32>
    %182 = vector.extract_strided_slice %18 {offsets = [102, 0], sizes = [2, 32], strides = [1, 1]} : vector<128x32xf32> to vector<2x32xf32>
    %183 = vector.extract_strided_slice %18 {offsets = [104, 0], sizes = [2, 32], strides = [1, 1]} : vector<128x32xf32> to vector<2x32xf32>
    %184 = vector.extract_strided_slice %18 {offsets = [106, 0], sizes = [2, 32], strides = [1, 1]} : vector<128x32xf32> to vector<2x32xf32>
    %185 = vector.extract_strided_slice %18 {offsets = [116, 0], sizes = [2, 32], strides = [1, 1]} : vector<128x32xf32> to vector<2x32xf32>
    %186 = vector.extract_strided_slice %18 {offsets = [118, 0], sizes = [2, 32], strides = [1, 1]} : vector<128x32xf32> to vector<2x32xf32>
    %187 = vector.extract_strided_slice %18 {offsets = [120, 0], sizes = [2, 32], strides = [1, 1]} : vector<128x32xf32> to vector<2x32xf32>
    %188 = vector.extract_strided_slice %18 {offsets = [122, 0], sizes = [2, 32], strides = [1, 1]} : vector<128x32xf32> to vector<2x32xf32>
    %189 = tpu.concatenate %173, %174, %175, %176, %177, %178, %179, %180, %181, %182, %183, %184, %185, %186, %187, %188 in 1 : vector<2x32xf32>, vector<2x32xf32>, vector<2x32xf32>, vector<2x32xf32>, vector<2x32xf32>, vector<2x32xf32>, vector<2x32xf32>, vector<2x32xf32>, vector<2x32xf32>, vector<2x32xf32>, vector<2x32xf32>, vector<2x32xf32>, vector<2x32xf32>, vector<2x32xf32>, vector<2x32xf32>, vector<2x32xf32> -> vector<2x512xf32>
    %cst_32 = arith.constant dense<0.000000e+00> : vector<2x64xf32>
    %190 = tpu.matmul %189, %9, %cst_32 {dimension_numbers = #tpu.dot_dimension_numbers<[1], [0], [0], [1], [0, 0, 1, 1], [], []>} : vector<2x512xf32>, vector<512x64xf32>, vector<2x64xf32> -> vector<2x64xf32>
    %191 = vector.broadcast %1 : vector<1x64xf32> to vector<2x64xf32>
    %192 = arith.addf %190, %191 : vector<2x64xf32>
    %cst_33 = arith.constant 0.000000e+00 : f32
    %193 = vector.broadcast %cst_33 : f32 to vector<2x64xf32>
    %194 = arith.maximumf %192, %193 : vector<2x64xf32>
    %195 = vector.extract_strided_slice %18 {offsets = [72, 0], sizes = [2, 32], strides = [1, 1]} : vector<128x32xf32> to vector<2x32xf32>
    %196 = vector.extract_strided_slice %18 {offsets = [74, 0], sizes = [2, 32], strides = [1, 1]} : vector<128x32xf32> to vector<2x32xf32>
    %197 = vector.extract_strided_slice %18 {offsets = [76, 0], sizes = [2, 32], strides = [1, 1]} : vector<128x32xf32> to vector<2x32xf32>
    %198 = vector.extract_strided_slice %18 {offsets = [78, 0], sizes = [2, 32], strides = [1, 1]} : vector<128x32xf32> to vector<2x32xf32>
    %199 = vector.extract_strided_slice %18 {offsets = [88, 0], sizes = [2, 32], strides = [1, 1]} : vector<128x32xf32> to vector<2x32xf32>
    %200 = vector.extract_strided_slice %18 {offsets = [90, 0], sizes = [2, 32], strides = [1, 1]} : vector<128x32xf32> to vector<2x32xf32>
    %201 = vector.extract_strided_slice %18 {offsets = [92, 0], sizes = [2, 32], strides = [1, 1]} : vector<128x32xf32> to vector<2x32xf32>
    %202 = vector.extract_strided_slice %18 {offsets = [94, 0], sizes = [2, 32], strides = [1, 1]} : vector<128x32xf32> to vector<2x32xf32>
    %203 = vector.extract_strided_slice %18 {offsets = [104, 0], sizes = [2, 32], strides = [1, 1]} : vector<128x32xf32> to vector<2x32xf32>
    %204 = vector.extract_strided_slice %18 {offsets = [106, 0], sizes = [2, 32], strides = [1, 1]} : vector<128x32xf32> to vector<2x32xf32>
    %205 = vector.extract_strided_slice %18 {offsets = [108, 0], sizes = [2, 32], strides = [1, 1]} : vector<128x32xf32> to vector<2x32xf32>
    %206 = vector.extract_strided_slice %18 {offsets = [110, 0], sizes = [2, 32], strides = [1, 1]} : vector<128x32xf32> to vector<2x32xf32>
    %207 = vector.extract_strided_slice %18 {offsets = [120, 0], sizes = [2, 32], strides = [1, 1]} : vector<128x32xf32> to vector<2x32xf32>
    %208 = vector.extract_strided_slice %18 {offsets = [122, 0], sizes = [2, 32], strides = [1, 1]} : vector<128x32xf32> to vector<2x32xf32>
    %209 = vector.extract_strided_slice %18 {offsets = [124, 0], sizes = [2, 32], strides = [1, 1]} : vector<128x32xf32> to vector<2x32xf32>
    %210 = vector.extract_strided_slice %18 {offsets = [126, 0], sizes = [2, 32], strides = [1, 1]} : vector<128x32xf32> to vector<2x32xf32>
    %211 = tpu.concatenate %195, %196, %197, %198, %199, %200, %201, %202, %203, %204, %205, %206, %207, %208, %209, %210 in 1 : vector<2x32xf32>, vector<2x32xf32>, vector<2x32xf32>, vector<2x32xf32>, vector<2x32xf32>, vector<2x32xf32>, vector<2x32xf32>, vector<2x32xf32>, vector<2x32xf32>, vector<2x32xf32>, vector<2x32xf32>, vector<2x32xf32>, vector<2x32xf32>, vector<2x32xf32>, vector<2x32xf32>, vector<2x32xf32> -> vector<2x512xf32>
    %cst_34 = arith.constant dense<0.000000e+00> : vector<2x64xf32>
    %212 = tpu.matmul %211, %9, %cst_34 {dimension_numbers = #tpu.dot_dimension_numbers<[1], [0], [0], [1], [0, 0, 1, 1], [], []>} : vector<2x512xf32>, vector<512x64xf32>, vector<2x64xf32> -> vector<2x64xf32>
    %213 = vector.broadcast %1 : vector<1x64xf32> to vector<2x64xf32>
    %214 = arith.addf %212, %213 : vector<2x64xf32>
    %cst_35 = arith.constant 0.000000e+00 : f32
    %215 = vector.broadcast %cst_35 : f32 to vector<2x64xf32>
    %216 = arith.maximumf %214, %215 : vector<2x64xf32>
    %217 = tpu.concatenate %40, %62, %84, %106, %128, %150, %172, %194, %216 in 1 : vector<2x64xf32>, vector<2x64xf32>, vector<2x64xf32>, vector<2x64xf32>, vector<2x64xf32>, vector<2x64xf32>, vector<2x64xf32>, vector<2x64xf32>, vector<2x64xf32> -> vector<2x576xf32>
    %cst_36 = arith.constant dense<0.000000e+00> : vector<2x64xf32>
    %218 = tpu.matmul %217, %10, %cst_36 {dimension_numbers = #tpu.dot_dimension_numbers<[1], [0], [0], [1], [0, 0, 1, 1], [], []>} : vector<2x576xf32>, vector<576x64xf32>, vector<2x64xf32> -> vector<2x64xf32>
    %219 = vector.broadcast %2 : vector<1x64xf32> to vector<2x64xf32>
    %220 = arith.addf %218, %219 : vector<2x64xf32>
    %cst_37 = arith.constant 0.000000e+00 : f32
    %221 = vector.broadcast %cst_37 : f32 to vector<2x64xf32>
    %222 = arith.maximumf %220, %221 : vector<2x64xf32>
    %c0_38 = arith.constant 0 : index
    %c0_39 = arith.constant 0 : index
    %223 = vector.load %arg2[%c0_38, %c0_39] : memref<2x8xf32, #tpu.memory_space<vmem>>, vector<2x8xf32>
    %c0_40 = arith.constant 0 : index
    %c0_41 = arith.constant 0 : index
    %224 = vector.load %arg7[%c0_40, %c0_41] : memref<8x128xf32, #tpu.memory_space<vmem>>, vector<8x128xf32>
    %cst_42 = arith.constant dense<0.000000e+00> : vector<2x128xf32>
    %225 = tpu.matmul %223, %224, %cst_42 {dimension_numbers = #tpu.dot_dimension_numbers<[1], [0], [0], [1], [0, 0, 1, 1], [], []>} : vector<2x8xf32>, vector<8x128xf32>, vector<2x128xf32> -> vector<2x128xf32>
    %226 = vector.broadcast %3 : vector<1x128xf32> to vector<2x128xf32>
    %227 = arith.addf %225, %226 : vector<2x128xf32>
    %cst_43 = arith.constant 0.000000e+00 : f32
    %228 = vector.broadcast %cst_43 : f32 to vector<2x128xf32>
    %229 = arith.maximumf %227, %228 : vector<2x128xf32>
    %cst_44 = arith.constant dense<0.000000e+00> : vector<2x64xf32>
    %230 = tpu.matmul %229, %11, %cst_44 {dimension_numbers = #tpu.dot_dimension_numbers<[1], [0], [0], [1], [0, 0, 1, 1], [], []>} : vector<2x128xf32>, vector<128x64xf32>, vector<2x64xf32> -> vector<2x64xf32>
    %231 = vector.broadcast %4 : vector<1x64xf32> to vector<2x64xf32>
    %232 = arith.addf %230, %231 : vector<2x64xf32>
    %cst_45 = arith.constant 0.000000e+00 : f32
    %233 = vector.broadcast %cst_45 : f32 to vector<2x64xf32>
    %234 = arith.maximumf %232, %233 : vector<2x64xf32>
    %235 = tpu.concatenate %222, %234 in 1 : vector<2x64xf32>, vector<2x64xf32> -> vector<2x128xf32>
    %c0_46 = arith.constant 0 : index
    %c0_47 = arith.constant 0 : index
    %236 = vector.load %arg6[%c0_46, %c0_47] : memref<128x256xf32, #tpu.memory_space<vmem>>, vector<128x256xf32>
    %cst_48 = arith.constant dense<0.000000e+00> : vector<2x256xf32>
    %237 = tpu.matmul %235, %236, %cst_48 {dimension_numbers = #tpu.dot_dimension_numbers<[1], [0], [0], [1], [0, 0, 1, 1], [], []>} : vector<2x128xf32>, vector<128x256xf32>, vector<2x256xf32> -> vector<2x256xf32>
    %238 = vector.broadcast %5 : vector<1x256xf32> to vector<2x256xf32>
    %239 = arith.addf %237, %238 : vector<2x256xf32>
    %cst_49 = arith.constant 0.000000e+00 : f32
    %240 = vector.broadcast %cst_49 : f32 to vector<2x256xf32>
    %241 = arith.maximumf %239, %240 : vector<2x256xf32>
    %c0_50 = arith.constant 0 : index
    %c0_51 = arith.constant 0 : index
    %242 = vector.load %arg5[%c0_50, %c0_51] : memref<256x512xf32, #tpu.memory_space<vmem>>, vector<256x512xf32>
    %cst_52 = arith.constant dense<0.000000e+00> : vector<2x512xf32>
    %243 = tpu.matmul %241, %242, %cst_52 {dimension_numbers = #tpu.dot_dimension_numbers<[1], [0], [0], [1], [0, 0, 1, 1], [], []>} : vector<2x256xf32>, vector<256x512xf32>, vector<2x512xf32> -> vector<2x512xf32>
    %244 = vector.broadcast %6 : vector<1x512xf32> to vector<2x512xf32>
    %245 = arith.addf %243, %244 : vector<2x512xf32>
    %cst_53 = arith.constant 0.000000e+00 : f32
    %246 = vector.broadcast %cst_53 : f32 to vector<2x512xf32>
    %247 = arith.maximumf %245, %246 : vector<2x512xf32>
    %cst_54 = arith.constant dense<0.000000e+00> : vector<2x4xf32>
    %248 = tpu.matmul %247, %12, %cst_54 {dimension_numbers = #tpu.dot_dimension_numbers<[1], [0], [0], [1], [0, 0, 1, 1], [], []>} : vector<2x512xf32>, vector<512x4xf32>, vector<2x4xf32> -> vector<2x4xf32>
    %249 = vector.broadcast %7 : vector<1x4xf32> to vector<2x4xf32>
    %250 = arith.addf %248, %249 : vector<2x4xf32>
    %c0_55 = arith.constant 0 : index
    %c0_56 = arith.constant 0 : index
    %251 = vector.load %arg8[%c0_55, %c0_56] : memref<2x4xf32, #tpu.memory_space<vmem>>, vector<2x4xf32>
    tpu.vector_store %arg8[%c0_55, %c0_56], %250 {strides = array<i32>} : memref<2x4xf32, #tpu.memory_space<vmem>>, vector<2x4xf32>,
    return
  }
  func.func @transform_0(%arg0: i32) -> (i32, i32) {
    %c0_i32 = arith.constant 0 : i32
    %c0_i32_0 = arith.constant 0 : i32
    %c0_i32_1 = arith.constant 0 : i32
    return %c0_i32, %c0_i32_0 : i32, i32
  }
  func.func @transform_1(%arg0: i32) -> (i32, i32) {
    %c0_i32 = arith.constant 0 : i32
    %c0_i32_0 = arith.constant 0 : i32
    %c0_i32_1 = arith.constant 0 : i32
    return %c0_i32, %c0_i32_0 : i32, i32
  }
  func.func @transform_2(%arg0: i32) -> (i32, i32) {
    %c0_i32 = arith.constant 0 : i32
    %c0_i32_0 = arith.constant 0 : i32
    %c0_i32_1 = arith.constant 0 : i32
    return %c0_i32, %c0_i32_0 : i32, i32
  }
  func.func @transform_3(%arg0: i32) -> (i32, i32) {
    %c0_i32 = arith.constant 0 : i32
    %c0_i32_0 = arith.constant 0 : i32
    %c0_i32_1 = arith.constant 0 : i32
    return %c0_i32, %c0_i32_0 : i32, i32
  }
  func.func @transform_4(%arg0: i32) -> (i32, i32) {
    %c0_i32 = arith.constant 0 : i32
    %c0_i32_0 = arith.constant 0 : i32
    %c0_i32_1 = arith.constant 0 : i32
    return %c0_i32, %c0_i32_0 : i32, i32
  }
  func.func @transform_5(%arg0: i32) -> (i32, i32) {
    %c0_i32 = arith.constant 0 : i32
    %c0_i32_0 = arith.constant 0 : i32
    %c0_i32_1 = arith.constant 0 : i32
    return %c0_i32, %c0_i32_0 : i32, i32
  }
  func.func @transform_6(%arg0: i32) -> (i32, i32) {
    %c0_i32 = arith.constant 0 : i32
    %c0_i32_0 = arith.constant 0 : i32
    %c0_i32_1 = arith.constant 0 : i32
    return %c0_i32, %c0_i32_0 : i32, i32
  }
  func.func @transform_7(%arg0: i32) -> (i32, i32) {
    %c0_i32 = arith.constant 0 : i32
    %c0_i32_0 = arith.constant 0 : i32
    %c0_i32_1 = arith.constant 0 : i32
    return %c0_i32, %c0_i32_0 : i32, i32
  }
}

</mosaic_0001>

<bundles_post_ra>
// kernel: _lambda_.1
= control target key start
LH: loop header
LB: loop body
LE: loop exit
PB: predicated region body
PF: predicated region fallthrough
CT: control target
= control target key end

     0   :  { %s2350_s16 = smov 32   ;;  %s2351_s17 = smov 64   ;;  %vm515_vm0 = vcmask 261120   ;;  %vm517_vm1 = vcmask 523264   ;;  %vm519_vm2 = vcmask 785408   ;;  %vm1626_vm3 = vcmask 64512   ;;  %s5142_s3 = inlined_call_operand.vmem [shape: f32[1984,64], index: 3, kind: input, shape index: {}]   ;;  %s5143_s2 = inlined_call_operand.vmem [shape: f32[1,1536], index: 2, kind: input, shape index: {}]   ;;  %s5144_s0 = inlined_call_operand.vmem [shape: f32[128,256], index: 0, kind: input, shape index: {}]   ;;  %s5145_s6 = inlined_call_operand.vmem [shape: f32[8,128], index: 6, kind: input, shape index: {}]   ;;  %s5146_s1 = inlined_call_operand.vmem [shape: f32[2,8], index: 1, kind: input, shape index: {}]   ;;  %s5147_s5 = inlined_call_operand.vmem [shape: f32[128,256], index: 5, kind: input, shape index: {}]   ;;  %s5148_s4 = inlined_call_operand.vmem [shape: f32[256,512], index: 4, kind: input, shape index: {}]   ;;  %s5149_s7 = inlined_call_operand.vmem [shape: f32[2,4], index: 7, kind: output, shape index: {}]  }
   0x1   :  { %v49_v0 = vld [vmem:[%s5142_s3 + $0x78] sm:$0xff]  ;;  %v48_v1 = vld [vmem:[%s5142_s3 + $0x70] sm:$0xff]  ;;  %v47_v4 = vld [vmem:[%s5142_s3 + $0x68] sm:$0xff]  ;;  %vm2143_vm4 = vcmask 25600  }
   0x2   :  { %v65_v2 = vld [vmem:[%s5142_s3 + $0xf8] sm:$0xff]  ;;  %317 = vmatpush.msra.mxu0 %v49_v0  ;;  %v64_v3 = vld [vmem:[%s5142_s3 + $0xf0] sm:$0xff]  ;;  %v63_v5 = vld [vmem:[%s5142_s3 + $0xe8] sm:$0xff] }
   0x3   :  { %382 = vmatpush.msra.mxu1 %v65_v2  ;;  %v46_v6 = vld [vmem:[%s5142_s3 + $0x60] sm:$0xff]  ;;  %v45_v8 = vld [vmem:[%s5142_s3 + $0x58] sm:$0xff]  ;;  %v44_v10 = vld [vmem:[%s5142_s3 + $0x50] sm:$0xff] }
   0x4   :  { %318 = vmatpush.msra.mxu0 %v48_v1  ;;  %v62_v7 = vld [vmem:[%s5142_s3 + $0xe0] sm:$0xff]  ;;  %v61_v9 = vld [vmem:[%s5142_s3 + $0xd8] sm:$0xff]  ;;  %v60_v11 = vld [vmem:[%s5142_s3 + $0xd0] sm:$0xff] }
   0x5   :  { %383 = vmatpush.msra.mxu1 %v64_v3  ;;  %v43_v12 = vld [vmem:[%s5142_s3 + $0x48] sm:$0xff]  ;;  %v42_v14 = vld [vmem:[%s5142_s3 + $0x40] sm:$0xff]  ;;  %v41_v16 = vld [vmem:[%s5142_s3 + $0x38] sm:$0xff] }
   0x6   :  { %319 = vmatpush.msra.mxu0 %v47_v4  ;;  %v59_v13 = vld [vmem:[%s5142_s3 + $0xc8] sm:$0xff]  ;;  %v58_v15 = vld [vmem:[%s5142_s3 + $0xc0] sm:$0xff]  ;;  %v57_v17 = vld [vmem:[%s5142_s3 + $0xb8] sm:$0xff] }
   0x7   :  { %384 = vmatpush.msra.mxu1 %v63_v5  ;;  %v40_v18 = vld [vmem:[%s5142_s3 + $0x30] sm:$0xff]  ;;  %v39_v20 = vld [vmem:[%s5142_s3 + $0x28] sm:$0xff]  ;;  %v38_v22 = vld [vmem:[%s5142_s3 + $0x20] sm:$0xff] }
   0x8   :  { %320 = vmatpush.msra.mxu0 %v46_v6  ;;  %v56_v19 = vld [vmem:[%s5142_s3 + $0xb0] sm:$0xff]  ;;  %v55_v21 = vld [vmem:[%s5142_s3 + $0xa8] sm:$0xff]  ;;  %v54_v23 = vld [vmem:[%s5142_s3 + $0xa0] sm:$0xff] }
   0x9   :  { %385 = vmatpush.msra.mxu1 %v62_v7  ;;  %v37_v24 = vld [vmem:[%s5142_s3 + $0x18] sm:$0xff]  ;;  %v36_v26 = vld [vmem:[%s5142_s3 + $0x10] sm:$0xff]  ;;  %v35_v28 = vld [vmem:[%s5142_s3 + $0x8] sm:$0xff] }
   0xa   :  { %321 = vmatpush.msra.mxu0 %v45_v8  ;;  %v53_v25 = vld [vmem:[%s5142_s3 + $0x98] sm:$0xff]  ;;  %v52_v27 = vld [vmem:[%s5142_s3 + $0x90] sm:$0xff]  ;;  %v51_v29 = vld [vmem:[%s5142_s3 + $0x88] sm:$0xff] }
   0xb   :  { %386 = vmatpush.msra.mxu1 %v61_v9  ;;  %v34_v30 = vld [vmem:[%s5142_s3] sm:$0xff]  ;;  %v283_v33 = vld [vmem:[%s5144_s0 + $0x8] sm:$0xff]  ;;  %v284_v34 = vld [vmem:[%s5144_s0 + $0x10] sm:$0xff] }
   0xc   :  { %322 = vmatpush.msra.mxu0 %v44_v10  ;;  %v50_v31 = vld [vmem:[%s5142_s3 + $0x80] sm:$0xff]  ;;  %v285_v35 = vld [vmem:[%s5144_s0 + $0x18] sm:$0xff]  ;;  %v287_v37 = vld [vmem:[%s5144_s0 + $0x28] sm:$0xff] }
   0xd   :  { %387 = vmatpush.msra.mxu1 %v60_v11  ;;  %v282_v32 = vld [vmem:[%s5144_s0] sm:$0xff]  ;;  %v288_v38 = vld [vmem:[%s5144_s0 + $0x30] sm:$0xff]  ;;  %v289_v39 = vld [vmem:[%s5144_s0 + $0x38] sm:$0xff] }
   0xe   :  { %323 = vmatpush.msra.mxu0 %v43_v12  ;;  %v286_v36 = vld [vmem:[%s5144_s0 + $0x20] sm:$0xff]  ;;  %v291_v41 = vld [vmem:[%s5144_s0 + $0x48] sm:$0xff]  ;;  %v292_v42 = vld [vmem:[%s5144_s0 + $0x50] sm:$0xff] }
   0xf   :  { %388 = vmatpush.msra.mxu1 %v59_v13  ;;  %v290_v40 = vld [vmem:[%s5144_s0 + $0x40] sm:$0xff]  ;;  %v293_v43 = vld [vmem:[%s5144_s0 + $0x58] sm:$0xff]  ;;  %v295_v45 = vld [vmem:[%s5144_s0 + $0x68] sm:$0xff] }
  0x10   :  { %324 = vmatpush.msra.mxu0 %v42_v14  ;;  %v294_v44 = vld [vmem:[%s5144_s0 + $0x60] sm:$0xff]  ;;  %v296_v46 = vld [vmem:[%s5144_s0 + $0x70] sm:$0xff]  ;;  %v297_v47 = vld [vmem:[%s5144_s0 + $0x78] sm:$0xff] }
  0x11   :  { %389 = vmatpush.msra.mxu1 %v58_v15  ;;  %v298_v48 = vld [vmem:[%s5144_s0 + $0x80] sm:$0xff]  ;;  %v299_v49 = vld [vmem:[%s5144_s0 + $0x88] sm:$0xff]  ;;  %v300_v50 = vld [vmem:[%s5144_s0 + $0x90] sm:$0xff] }
  0x12   :  { %325 = vmatpush.msra.mxu0 %v41_v16  ;;  %v301_v51 = vld [vmem:[%s5144_s0 + $0x98] sm:$0xff]  ;;  %v302_v52 = vld [vmem:[%s5144_s0 + $0xa0] sm:$0xff]  ;;  %v303_v53 = vld [vmem:[%s5144_s0 + $0xa8] sm:$0xff] }
  0x13   :  { %390 = vmatpush.msra.mxu1 %v57_v17  ;;  %v304_v54 = vld [vmem:[%s5144_s0 + $0xb0] sm:$0xff]  ;;  %v305_v55 = vld [vmem:[%s5144_s0 + $0xb8] sm:$0xff]  ;;  %v306_v56 = vld [vmem:[%s5144_s0 + $0xc0] sm:$0xff] }
  0x14   :  { %326 = vmatpush.msra.mxu0 %v40_v18  ;;  %v307_v57 = vld [vmem:[%s5144_s0 + $0xc8] sm:$0xff]  ;;  %v308_v58 = vld [vmem:[%s5144_s0 + $0xd0] sm:$0xff]  ;;  %v309_v59 = vld [vmem:[%s5144_s0 + $0xd8] sm:$0xff] }
  0x15   :  { %391 = vmatpush.msra.mxu1 %v56_v19  ;;  %v310_v60 = vld [vmem:[%s5144_s0 + $0xe0] sm:$0xff]  ;;  %v311_v61 = vld [vmem:[%s5144_s0 + $0xe8] sm:$0xff]  ;;  %v312_v62 = vld [vmem:[%s5144_s0 + $0xf0] sm:$0xff] }
  0x16   :  { %327 = vmatpush.msra.mxu0 %v39_v20  ;;  %v313_v63 = vld [vmem:[%s5144_s0 + $0xf8] sm:$0xff]  ;;  %v2587_v2 = vld [vmem:[%s5143_s2] ss:$0 sm:$0xff]  ;;  %s2349_s0 = smov 96  }
  0x17   :  { %392 = vmatpush.msra.mxu1 %v55_v21 }
  0x18   :  { %328 = vmatpush.msra.mxu0 %v38_v22 }
  0x19   :  { %393 = vmatpush.msra.mxu1 %v54_v23 }
  0x1a   :  { %329 = vmatpush.msra.mxu0 %v37_v24 }
  0x1b   :  { %394 = vmatpush.msra.mxu1 %v53_v25 }
  0x1c   :  { %330 = vmatpush.msra.mxu0 %v36_v26 }
  0x1d   :  { %395 = vmatpush.msra.mxu1 %v52_v27 }
  0x1e   :  { %331 = vmatpush.msra.mxu0 %v35_v28 }
  0x1f   :  { %396 = vmatpush.msra.mxu1 %v51_v29 }
  0x20   :  { %332 = vmatpush.msra.mxu0 %v34_v30 }
  0x21   :  { %397 = vmatpush.msra.mxu1 %v50_v31  ;;  %333 = vmatmul.f32.vlgmr.msra.gmra.mxu0 %v282_v32 }
  0x22   :  { %398 = vmatmul.f32.vlgmr.msra.gmra.mxu1 %v283_v33 }
  0x29   :  { %336 = vmatmul.f32.gmra.mxu0 %v284_v34 }
  0x2a   :  { %401 = vmatmul.f32.gmra.mxu1 %v285_v35 }
  0x31   :  { %339 = vmatmul.f32.gmra.mxu0 %v286_v36 }
  0x32   :  { %404 = vmatmul.f32.gmra.mxu1 %v287_v37 }
  0x39   :  { %342 = vmatmul.f32.gmra.mxu0 %v288_v38 }
  0x3a   :  { %407 = vmatmul.f32.gmra.mxu1 %v289_v39 }
  0x41   :  { %345 = vmatmul.f32.gmra.mxu0 %v290_v40 }
  0x42   :  { %410 = vmatmul.f32.gmra.mxu1 %v291_v41 }
  0x49   :  { %348 = vmatmul.f32.gmra.mxu0 %v292_v42 }
  0x4a   :  { %413 = vmatmul.f32.gmra.mxu1 %v293_v43 }
  0x51   :  { %351 = vmatmul.f32.gmra.mxu0 %v294_v44 }
  0x52   :  { %416 = vmatmul.f32.gmra.mxu1 %v295_v45 }
  0x59   :  { %354 = vmatmul.f32.gmra.mxu0 %v296_v46 }
  0x5a   :  { %419 = vmatmul.f32.gmra.mxu1 %v297_v47 }
  0x61   :  { %357 = vmatmul.f32.gmra.mxu0 %v298_v48 }
  0x62   :  { %422 = vmatmul.f32.gmra.mxu1 %v299_v49 }
  0x69   :  { %360 = vmatmul.f32.gmra.mxu0 %v300_v50 }
  0x6a   :  { %425 = vmatmul.f32.gmra.mxu1 %v301_v51 }
  0x71   :  { %363 = vmatmul.f32.gmra.mxu0 %v302_v52 }
  0x72   :  { %428 = vmatmul.f32.gmra.mxu1 %v303_v53 }
  0x79   :  { %366 = vmatmul.f32.gmra.mxu0 %v304_v54 }
  0x7a   :  { %431 = vmatmul.f32.gmra.mxu1 %v305_v55 }
  0x81   :  { %369 = vmatmul.f32.gmra.mxu0 %v306_v56 }
  0x82   :  { %434 = vmatmul.f32.gmra.mxu1 %v307_v57  ;;  %v2630_v57 = vld [vmem:[%s5142_s3 + $0x178] sm:$0xff] }
  0x83   :  { %533 = vmatpush.msra.mxu2 %v2630_v57  ;;  %779 = vmatpush.msrb.mxu0 %v2630_v57 }
  0x89   :  { %372 = vmatmul.f32.gmra.mxu0 %v308_v58  ;;  %v2635_v58 = vld [vmem:[%s5142_s3 + $0x1f8] sm:$0xff] }
  0x8a   :  { %437 = vmatmul.f32.gmra.mxu1 %v309_v59  ;;  %553 = vmatpush.msra.mxu3 %v2635_v58 }
  0x8b   :  { %799 = vmatpush.msrb.mxu1 %v2635_v58 }
  0x91   :  { %375 = vmatmul.f32.gmra.mxu0 %v310_v60 }
  0x92   :  { %440 = vmatmul.f32.gmra.mxu1 %v311_v61 }
  0x99   :  { %378 = vmatmul.f32.gmra.mxu0 %v312_v62 }
  0x9a   :  { %443 = vmatmul.f32.gmra.mxu1 %v313_v63  ;;  %v2648_v63 = vld [vmem:[%s5142_s3 + $0x170] sm:$0xff] }
  0x9b   :  { %534 = vmatpush.msra.mxu2 %v2648_v63  ;;  %780 = vmatpush.msrb.mxu0 %v2648_v63 }
  0x9e   :  { %v334_v0 = vpop.f32.mrf.mxu0 }
  0x9f   :  { %v399_v1 = vpop.f32.mrf.mxu1  ;;  %v335_v5 = vadd.f32 %v2587_v2, %v334_v0  ;;  %v2653_v0 = vld [vmem:[%s5142_s3 + $0x1f0] sm:$0xff] }
  0xa0   :  { %554 = vmatpush.msra.mxu3 %v2653_v0  ;;  %800 = vmatpush.msrb.mxu1 %v2653_v0 }
  0xa1   :  { %v400_v6 = vadd.f32 %v399_v1, %v335_v5  ;;  %v2658_v1 = vld [vmem:[%s5142_s3 + $0x168] sm:$0xff] }
  0xa2   :  { %535 = vmatpush.msra.mxu2 %v2658_v1  ;;  %781 = vmatpush.msrb.mxu0 %v2658_v1 }
  0xa3   :  { %v2591_v10 = vmax.f32 %v400_v6, 0.0 }
  0xa5   :  { %v472_v13 = vrot.slane %v2591_v10, 6  ;;  %v464_v15 = vrot.slane %v2591_v10, 2  ;;  %v468_v26 = vrot.slane %v2591_v10, 4 }
  0xa6   :  { %v337_v3 = vpop.f32.mrf.mxu0 }
  0xa7   :  { %v402_v4 = vpop.f32.mrf.mxu1  ;;  %v338_v22 = vadd.f32 %v2587_v2, %v337_v3 }
  0xa9   :  { %v403_v25 = vadd.f32 %v402_v4, %v338_v22  ;;  %v2715_v22 = vld [vmem:[%s5142_s3 + $0x1d0] sm:$0xff] }
  0xab   :  { %v2607_v31 = vmax.f32 %v403_v25, 0.0  ;;  %v2724_v25 = vld [vmem:[%s5142_s3 + $0x148] sm:$0xff] }
  0xad   :  { %v615_v33 = vrot.slane %v2607_v31, 4  ;;  %v619_v4 = vrot.slane %v2607_v31, 6 }
  0xae   :  { %v340_v7 = vpop.f32.mrf.mxu0 }
  0xaf   :  { %v405_v8 = vpop.f32.mrf.mxu1  ;;  %v341_v9 = vadd.f32 %v2587_v2, %v340_v7  ;;  %v2671_v7 = vld [vmem:[%s5142_s3 + $0x1e8] sm:$0xff] }
  0xb0   :  { %555 = vmatpush.msra.mxu3 %v2671_v7  ;;  %801 = vmatpush.msrb.mxu1 %v2671_v7 }
  0xb1   :  { %v406_v11 = vadd.f32 %v405_v8, %v341_v9 }
  0xb3   :  { %v2593_v12 = vmax.f32 %v406_v11, 0.0 }
  0xb5   :  { %v485_v14 = vrot.slane %v2593_v12, 6  ;;  %v477_v16 = vrot.slane %v2593_v12, 2  ;;  %v481_v24 = vrot.slane %v2593_v12, 4 }
  0xb6   :  { %v343_v17 = vpop.f32.mrf.mxu0 }
  0xb7   :  { %v408_v18 = vpop.f32.mrf.mxu1  ;;  %v344_v19 = vadd.f32 %v2587_v2, %v343_v17  ;;  %v2164_v20 = vpack.i.bf16 %v485_v14, %v472_v13  ;;  %v2154_v21 = vpack.i.bf16 %v477_v16, %v464_v15  ;;  %v2159_v30 = vpack.i.bf16 %v481_v24, %v468_v26  ;;  %v2679_v15 = vld [vmem:[%s5142_s3 + $0x160] sm:$0xff]  ;;  %v2693_v17 = vld [vmem:[%s5142_s3 + $0x158] sm:$0xff] }
  0xb8   :  { %v2685_v16 = vld [vmem:[%s5142_s3 + $0x1e0] sm:$0xff]  ;;  %5219 = vst [vmem:[#allocation4_spill] sm:$0xff] %v2693_v17  ;;  %536 = vmatpush.msra.mxu2 %v2679_v15  ;;  %v751_v24 = vrot.slane %v2607_v31, 2  ;;  %782 = vmatpush.msrb.mxu0 %v2679_v15 }
  0xb9   :  { %2165 = vrot.lane.b32.xlu1 %v2164_v20, %s2349_s0  ;;  %2155 = vrot.lane.b32.xlu0 %v2154_v21, %s2350_s16  ;;  %v409_v23 = vadd.f32 %v408_v18, %v344_v19  ;;  %v2700_v18 = vld [vmem:[%s5142_s3 + $0x1d8] sm:$0xff]  ;;  %v2708_v21 = vld [vmem:[%s5142_s3 + $0x150] sm:$0xff] }
  0xba   :  { %556 = vmatpush.msra.mxu3 %v2685_v16  ;;  %802 = vmatpush.msrb.mxu1 %v2685_v16 }
  0xbb   :  { %v2605_v29 = vmax.f32 %v409_v23, 0.0  ;;  %537 = vmatpush.msra.mxu2 %v2693_v17  ;;  %783 = vmatpush.msrb.mxu0 %v2693_v17 }
  0xbc   :  { %557 = vmatpush.msra.mxu3 %v2700_v18  ;;  %803 = vmatpush.msrb.mxu1 %v2700_v18 }
  0xbd   :  { %v624_v32 = vrot.slane %v2605_v29, 4  ;;  %v628_v62 = vrot.slane %v2605_v29, 6  ;;  %538 = vmatpush.msra.mxu2 %v2708_v21  ;;  %784 = vmatpush.msrb.mxu0 %v2708_v21 }
  0xbe   :  { %v346_v27 = vpop.f32.mrf.mxu0  ;;  %558 = vmatpush.msra.mxu3 %v2715_v22  ;;  %804 = vmatpush.msrb.mxu1 %v2715_v22 }
  0xbf   :  { %v411_v28 = vpop.f32.mrf.mxu1  ;;  %v2184_v36 = vpack.i.bf16 %v624_v32, %v615_v33  ;;  %v347_v37 = vadd.f32 %v2587_v2, %v346_v27  ;;  %v2189_v13 = vpack.i.bf16 %v628_v62, %v619_v4  ;;  %v2734_v33 = vld [vmem:[%s5142_s3 + $0x1c8] sm:$0xff]  ;;  %539 = vmatpush.msra.mxu2 %v2724_v25  ;;  %785 = vmatpush.msrb.mxu0 %v2724_v25 }
  0xc0   :  { %559 = vmatpush.msra.mxu3 %v2734_v33  ;;  %805 = vmatpush.msrb.mxu1 %v2734_v33 }
  0xc1   :  { %2160 = vrot.lane.b32.xlu0 %v2159_v30, %s2351_s17  ;;  %v412_v38 = vadd.f32 %v411_v28, %v347_v37 }
  0xc3   :  { %v2615_v42 = vmax.f32 %v412_v38, 0.0 }
  0xc5   :  { %v494_v46 = vrot.slane %v2615_v42, 4  ;;  %v490_v48 = vrot.slane %v2615_v42, 2  ;;  %v498_v3 = vrot.slane %v2615_v42, 6 }
  0xc6   :  { %v349_v34 = vpop.f32.mrf.mxu0 }
  0xc7   :  { %v414_v35 = vpop.f32.mrf.mxu1  ;;  %v350_v44 = vadd.f32 %v2587_v2, %v349_v34  ;;  %v2739_v34 = vld [vmem:[%s5142_s3 + $0x140] sm:$0xff] }
  0xc8   :  { %5220 = vst [vmem:[#allocation5_spill] sm:$0xff] %v2739_v34  ;;  %540 = vmatpush.msra.mxu2 %v2739_v34  ;;  %786 = vmatpush.msrb.mxu0 %v2739_v34 }
  0xc9   :  { %2185 = vrot.lane.b32.xlu0 %v2184_v36, %s2351_s17  ;;  %v415_v52 = vadd.f32 %v414_v35, %v350_v44  ;;  %v2749_v35 = vld [vmem:[%s5142_s3 + $0x1c0] sm:$0xff]  ;;  %v2754_v36 = vld [vmem:[%s5142_s3 + $0x138] sm:$0xff]  ;;  %v2782_v44 = vld [vmem:[%s5142_s3 + $0x128] sm:$0xff] }
  0xca   :  { %560 = vmatpush.msra.mxu3 %v2749_v35  ;;  %541 = vmatpush.msra.mxu2 %v2754_v36 }
  0xcb   :  { %v2637_v59 = vmax.f32 %v415_v52, 0.0  ;;  %806 = vmatpush.msrb.mxu1 %v2749_v35  ;;  %v2795_v52 = vld [vmem:[%s5142_s3 + $0x1a8] sm:$0xff]  ;;  %787 = vmatpush.msrb.mxu0 %v2754_v36 }
  0xcd   :  { %5217 = vst [vmem:[#allocation2_spill] sm:$0xff] %v2637_v59  ;;  %v637_v5 = vrot.slane %v2637_v59, 6  ;;  %v759_v20 = vrot.slane %v2637_v59, 2  ;;  %v633_v23 = vrot.slane %v2637_v59, 4 }
  0xce   :  { %v352_v39 = vpop.f32.mrf.mxu0 }
  0xcf   :  { %v417_v40 = vpop.f32.mrf.mxu1  ;;  %v353_v41 = vadd.f32 %v2587_v2, %v352_v39  ;;  %v2204_v32 = vpack.i.bf16 %v751_v24, %v759_v20  ;;  %v2762_v39 = vld [vmem:[%s5142_s3 + $0x1b8] sm:$0xff] }
  0xd0   :  { %561 = vmatpush.msra.mxu3 %v2762_v39  ;;  %807 = vmatpush.msrb.mxu1 %v2762_v39 }
  0xd1   :  { %v418_v43 = vadd.f32 %v417_v40, %v353_v41  ;;  %v2767_v40 = vld [vmem:[%s5142_s3 + $0x130] sm:$0xff]  ;;  %v755_v41 = vrot.slane %v2605_v29, 2 }
  0xd2   :  { %542 = vmatpush.msra.mxu2 %v2767_v40  ;;  %788 = vmatpush.msrb.mxu0 %v2767_v40 }
  0xd3   :  { %v2618_v45 = vmax.f32 %v418_v43, 0.0  ;;  %v2777_v43 = vld [vmem:[%s5142_s3 + $0x1b0] sm:$0xff] }
  0xd4   :  { %5221 = vst [vmem:[#allocation6_spill] sm:$0xff] %v2777_v43  ;;  %562 = vmatpush.msra.mxu3 %v2777_v43  ;;  %543 = vmatpush.msra.mxu2 %v2782_v44 }
  0xd5   :  { %v507_v47 = vrot.slane %v2618_v45, 4  ;;  %v503_v49 = vrot.slane %v2618_v45, 2  ;;  %v511_v61 = vrot.slane %v2618_v45, 6  ;;  %808 = vmatpush.msrb.mxu1 %v2777_v43  ;;  %789 = vmatpush.msrb.mxu0 %v2782_v44 }
  0xd6   :  { %v355_v50 = vpop.f32.mrf.mxu0  ;;  %563 = vmatpush.msra.mxu3 %v2795_v52 }
  0xd7   :  { %v420_v51 = vpop.f32.mrf.mxu1  ;;  %v356_v53 = vadd.f32 %v2587_v2, %v355_v50  ;;  %v2174_v54 = vpack.i.bf16 %v507_v47, %v494_v46  ;;  %v2169_v55 = vpack.i.bf16 %v503_v49, %v490_v48  ;;  %v2179_v11 = vpack.i.bf16 %v511_v61, %v498_v3  ;;  %809 = vmatpush.msrb.mxu1 %v2795_v52 }
  0xd9   :  { %v421_v56 = vadd.f32 %v420_v51, %v356_v53  ;;  %2175 = vrot.lane.b32.xlu2 %v2174_v54, %s2351_s17  ;;  %2170 = vrot.lane.b32.xlu1 %v2169_v55, %s2350_s16  ;;  %v2800_v53 = vld [vmem:[%s5142_s3 + $0x120] sm:$0xff] }
  0xda   :  { %v2810_v55 = vld [vmem:[%s5142_s3 + $0x1a0] sm:$0xff]  ;;  %544 = vmatpush.msra.mxu2 %v2800_v53  ;;  %790 = vmatpush.msrb.mxu0 %v2800_v53 }
  0xdb   :  { %v2639_v60 = vmax.f32 %v421_v56, 0.0  ;;  %v2815_v56 = vld [vmem:[%s5142_s3 + $0x118] sm:$0xff]  ;;  %564 = vmatpush.msra.mxu3 %v2810_v55  ;;  %810 = vmatpush.msrb.mxu1 %v2810_v55 }
  0xdc   :  { %545 = vmatpush.msra.mxu2 %v2815_v56  ;;  %791 = vmatpush.msrb.mxu0 %v2815_v56 }
  0xdd   :  { %5218 = vst [vmem:[#allocation3_spill] sm:$0xff] %v2639_v60  ;;  %v646_v6 = vrot.slane %v2639_v60, 6  ;;  %v642_v19 = vrot.slane %v2639_v60, 4  ;;  %v763_v38 = vrot.slane %v2639_v60, 2  ;;  %v3017_v60 = vld [vmem:[%s5142_s3 + $0x230] sm:$0xff] }
  0xde   :  { %v358_v8 = vpop.f32.mrf.mxu0  ;;  %5238 = vst [vmem:[#allocation23_spill] sm:$0xff] %v3017_v60 }
  0xdf   :  { %v423_v9 = vpop.f32.mrf.mxu1  ;;  %v2199_v14 = vpack.i.bf16 %v646_v6, %v637_v5  ;;  %v359_v28 = vadd.f32 %v2587_v2, %v358_v8  ;;  %v2194_v30 = vpack.i.bf16 %v642_v19, %v633_v23  ;;  %v2209_v51 = vpack.i.bf16 %v755_v41, %v763_v38  ;;  %v2828_v6 = vld [vmem:[%s5142_s3 + $0x198] sm:$0xff]  ;;  %v2833_v8 = vld [vmem:[%s5142_s3 + $0x110] sm:$0xff]  ;;  %v2850_v19 = vld [vmem:[%s5142_s3 + $0x108] sm:$0xff] }
  0xe0   :  { %5224 = vst [vmem:[#allocation9_spill] sm:$0xff] %v2828_v6  ;;  %565 = vmatpush.msra.mxu3 %v2828_v6  ;;  %546 = vmatpush.msra.mxu2 %v2833_v8  ;;  %v2877_v41 = vld [vmem:[%s5142_s3 + $0x180] sm:$0xff] }
  0xe1   :  { %2180 = vrot.lane.b32.xlu2 %v2179_v11, %s2349_s0  ;;  %2190 = vrot.lane.b32.xlu1 %v2189_v13, %s2349_s0  ;;  %v424_v37 = vadd.f32 %v423_v9, %v359_v28 }
  0xe2   :  { %2200 = vrot.lane.b32.xlu0 %v2199_v14, %s2349_s0  ;;  %v2845_v14 = vld [vmem:[%s5142_s3 + $0x190] sm:$0xff]  ;;  %811 = vmatpush.msrb.mxu1 %v2828_v6 }
  0xe3   :  { %v2789_v49 = vmax.f32 %v424_v37, 0.0  ;;  %566 = vmatpush.msra.mxu3 %v2845_v14  ;;  %547 = vmatpush.msra.mxu2 %v2850_v19  ;;  %v2870_v37 = vld [vmem:[%s5142_s3 + $0x100] sm:$0xff] }
  0xe4   :  { %812 = vmatpush.msrb.mxu1 %v2845_v14  ;;  %792 = vmatpush.msrb.mxu0 %v2833_v8 }
  0xe5   :  { %5222 = vst [vmem:[#allocation7_spill] sm:$0xff] %v2789_v49  ;;  %v869_v3 = vrot.slane %v2789_v49, 6  ;;  %v861_v4 = vrot.slane %v2789_v49, 2  ;;  %v865_v5 = vrot.slane %v2789_v49, 4  ;;  %548 = vmatpush.msra.mxu2 %v2870_v37 }
  0xe6   :  { %v361_v26 = vpop.f32.mrf.mxu0  ;;  %793 = vmatpush.msrb.mxu0 %v2850_v19 }
  0xe7   :  { %v426_v27 = vpop.f32.mrf.mxu1  ;;  %v362_v46 = vadd.f32 %v2587_v2, %v361_v26 }
  0xe8   :  { %794 = vmatpush.msrb.mxu0 %v2870_v37 }
  0xe9   :  { %2195 = vrot.lane.b32.xlu2 %v2194_v30, %s2351_s17  ;;  %2205 = vrot.lane.b32.xlu1 %v2204_v32, %s2350_s16  ;;  %v427_v61 = vadd.f32 %v426_v27, %v362_v46  ;;  %v2862_v32 = vld [vmem:[%s5142_s3 + $0x188] sm:$0xff]  ;;  %v2882_v46 = vld [vmem:[%s5142_s3 + $0x278] sm:$0xff] }
  0xea   :  { %567 = vmatpush.msra.mxu3 %v2862_v32  ;;  %573 = vmatpush.msrb.mxu2 %v2882_v46 }
  0xeb   :  { %v2854_v20 = vmax.f32 %v427_v61, 0.0  ;;  %v2900_v61 = vld [vmem:[%s5142_s3 + $0x270] sm:$0xff]  ;;  %813 = vmatpush.msrb.mxu1 %v2862_v32  ;;  %892 = vmatpush.msra.mxu0 %v2630_v57 }
  0xec   :  { %568 = vmatpush.msra.mxu3 %v2877_v41  ;;  %574 = vmatpush.msrb.mxu2 %v2900_v61 }
  0xed   :  { %5225 = vst [vmem:[#allocation10_spill] sm:$0xff] %v2854_v20  ;;  %814 = vmatpush.msrb.mxu1 %v2877_v41  ;;  %893 = vmatpush.msra.mxu0 %v2648_v63 }
  0xee   :  { %v364_v47 = vpop.f32.mrf.mxu0 }
  0xef   :  { %v429_v48 = vpop.f32.mrf.mxu1  ;;  %v365_v50 = vadd.f32 %v2587_v2, %v364_v47  ;;  %v2889_v47 = vld [vmem:[%s5142_s3 + $0x2f8] sm:$0xff]  ;;  %912 = vmatpush.msra.mxu1 %v2635_v58  ;;  %894 = vmatpush.msra.mxu0 %v2658_v1 }
  0xf0   :  { %593 = vmatpush.msrb.mxu3 %v2889_v47 }
  0xf1   :  { %v430_v54 = vadd.f32 %v429_v48, %v365_v50  ;;  %2210 = vrot.lane.b32.xlu2 %v2209_v51, %s2350_s16  ;;  %v1082_v50 = vrot.slane %v2854_v20, 2  ;;  %v974_v51 = vrot.slane %v2854_v20, 4  ;;  %913 = vmatpush.msra.mxu1 %v2653_v0 }
  0xf2   :  { %895 = vmatpush.msra.mxu0 %v2679_v15 }
  0xf3   :  { %v2820_v62 = vmax.f32 %v430_v54, 0.0  ;;  %v978_v54 = vrot.slane %v2854_v20, 6  ;;  %914 = vmatpush.msra.mxu1 %v2671_v7  ;;  %v2989_v20 = vld [vmem:[%s5142_s3 + $0x240] sm:$0xff] }
  0xf4   :  { %5234 = vst [vmem:[#allocation19_spill] sm:$0xff] %v2989_v20  ;;  %896 = vmatpush.msra.mxu0 %v2693_v17 }
  0xf5   :  { %5223 = vst [vmem:[#allocation8_spill] sm:$0xff] %v2820_v62  ;;  %v882_v9 = vrot.slane %v2820_v62, 6  ;;  %v874_v11 = vrot.slane %v2820_v62, 2  ;;  %v878_v13 = vrot.slane %v2820_v62, 4  ;;  %915 = vmatpush.msra.mxu1 %v2685_v16  ;;  %v3010_v62 = vld [vmem:[%s5142_s3 + $0x2b8] sm:$0xff] }
  0xf6   :  { %v367_v23 = vpop.f32.mrf.mxu0  ;;  %5237 = vst [vmem:[#allocation22_spill] sm:$0xff] %v3010_v62  ;;  %897 = vmatpush.msra.mxu0 %v2708_v21 }
  0xf7   :  { %v432_v24 = vpop.f32.mrf.mxu1  ;;  %v368_v26 = vadd.f32 %v2587_v2, %v367_v23  ;;  %v2224_v27 = vpack.i.bf16 %v882_v9, %v869_v3  ;;  %v2214_v28 = vpack.i.bf16 %v874_v11, %v861_v4  ;;  %v2219_v30 = vpack.i.bf16 %v878_v13, %v865_v5  ;;  %v2908_v3 = vld [vmem:[%s5142_s3 + $0x2f0] sm:$0xff]  ;;  %v2917_v11 = vld [vmem:[%s5142_s3 + $0x268] sm:$0xff]  ;;  %916 = vmatpush.msra.mxu1 %v2700_v18 }
  0xf8   :  { %594 = vmatpush.msrb.mxu3 %v2908_v3  ;;  %575 = vmatpush.msrb.mxu2 %v2917_v11 }
  0xf9   :  { %v433_v38 = vadd.f32 %v432_v24, %v368_v26  ;;  %2225 = vrot.lane.b32.xlu2 %v2224_v27, %s2349_s0  ;;  %2215 = vrot.lane.b32.xlu0 %v2214_v28, %s2350_s16  ;;  %v2926_v28 = vld [vmem:[%s5142_s3 + $0x2e8] sm:$0xff] }
  0xfa   :  { %2220 = vrot.lane.b32.xlu1 %v2219_v30, %s2351_s17  ;;  %v2932_v30 = vld [vmem:[%s5142_s3 + $0x260] sm:$0xff]  ;;  %595 = vmatpush.msrb.mxu3 %v2926_v28 }
  0xfb   :  { %v2891_v48 = vmax.f32 %v433_v38, 0.0  ;;  %v2940_v38 = vld [vmem:[%s5142_s3 + $0x2e0] sm:$0xff]  ;;  %576 = vmatpush.msrb.mxu2 %v2932_v30  ;;  %917 = vmatpush.msra.mxu1 %v2715_v22 }
  0xfc   :  { %5227 = vst [vmem:[#allocation12_spill] sm:$0xff] %v2940_v38  ;;  %596 = vmatpush.msrb.mxu3 %v2940_v38  ;;  %v3107_v38 = vld [vmem:[%s5142_s3 + $0x288] sm:$0xff]  ;;  %898 = vmatpush.msra.mxu0 %v2724_v25 }
  0xfd   :  { %5226 = vst [vmem:[#allocation11_spill] sm:$0xff] %v2891_v48  ;;  %v1086_v4 = vrot.slane %v2891_v48, 2  ;;  %v983_v5 = vrot.slane %v2891_v48, 4  ;;  %v987_v9 = vrot.slane %v2891_v48, 6  ;;  %v3003_v48 = vld [vmem:[%s5142_s3 + $0x238] sm:$0xff]  ;;  %918 = vmatpush.msra.mxu1 %v2734_v33 }
  0xfe   :  { %v370_v13 = vpop.f32.mrf.mxu0  ;;  %5236 = vst [vmem:[#allocation21_spill] sm:$0xff] %v3003_v48  ;;  %899 = vmatpush.msra.mxu0 %v2739_v34 }
  0xff   :  { %v435_v23 = vpop.f32.mrf.mxu1  ;;  %v2239_v24 = vpack.i.bf16 %v1086_v4, %v1082_v50  ;;  %v2229_v26 = vpack.i.bf16 %v983_v5, %v974_v51  ;;  %v2234_v27 = vpack.i.bf16 %v987_v9, %v978_v54  ;;  %v2947_v50 = vld [vmem:[%s5142_s3 + $0x258] sm:$0xff]  ;;  %v2960_v54 = vld [vmem:[%s5142_s3 + $0x250] sm:$0xff]  ;;  %919 = vmatpush.msra.mxu1 %v2749_v35  ;;  %5249 = vst [vmem:[#allocation34_spill] sm:$0xff] %v3107_v38 }
 0x100   :  { %5228 = vst [vmem:[#allocation13_spill] sm:$0xff] %v2947_v50  ;;  %v2953_v51 = vld [vmem:[%s5142_s3 + $0x2d8] sm:$0xff]  ;;  %577 = vmatpush.msrb.mxu2 %v2947_v50  ;;  %v2967_v4 = vld [vmem:[%s5142_s3 + $0x2d0] sm:$0xff]  ;;  %900 = vmatpush.msra.mxu0 %v2754_v36 }
 0x101   :  { %2240 = vrot.lane.b32.xlu2 %v2239_v24, %s2350_s16  ;;  %2230 = vrot.lane.b32.xlu0 %v2229_v26, %s2351_s17  ;;  %5229 = vst [vmem:[#allocation14_spill] sm:$0xff] %v2953_v51  ;;  %v2974_v24 = vld [vmem:[%s5142_s3 + $0x248] sm:$0xff]  ;;  %v371_v26 = vadd.f32 %v2587_v2, %v370_v13  ;;  %v2996_v13 = vld [vmem:[%s5142_s3 + $0x2c0] sm:$0xff] }
 0x102   :  { %2235 = vrot.lane.b32.xlu1 %v2234_v27, %s2349_s0  ;;  %5230 = vst [vmem:[#allocation15_spill] sm:$0xff] %v2960_v54  ;;  %597 = vmatpush.msrb.mxu3 %v2953_v51  ;;  %v2982_v27 = vld [vmem:[%s5142_s3 + $0x2c8] sm:$0xff] }
 0x103   :  { %5231 = vst [vmem:[#allocation16_spill] sm:$0xff] %v2967_v4  ;;  %578 = vmatpush.msrb.mxu2 %v2960_v54  ;;  %v436_v49 = vadd.f32 %v435_v23, %v371_v26  ;;  %v3024_v23 = vld [vmem:[%s5142_s3 + $0x2b0] sm:$0xff]  ;;  %920 = vmatpush.msra.mxu1 %v2762_v39 }
 0x104   :  { %5232 = vst [vmem:[#allocation17_spill] sm:$0xff] %v2974_v24  ;;  %598 = vmatpush.msrb.mxu3 %v2967_v4  ;;  %901 = vmatpush.msra.mxu0 %v2767_v40 }
 0x105   :  { %5233 = vst [vmem:[#allocation18_spill] sm:$0xff] %v2982_v27  ;;  %579 = vmatpush.msrb.mxu2 %v2974_v24  ;;  %v3042_v24 = vld [vmem:[%s5142_s3 + $0x2a8] sm:$0xff]  ;;  %921 = vmatpush.msra.mxu1 %v2777_v43 }
 0x106   :  { %v373_v5 = vpop.f32.mrf.mxu0  ;;  %5235 = vst [vmem:[#allocation20_spill] sm:$0xff] %v2996_v13  ;;  %599 = vmatpush.msrb.mxu3 %v2982_v27  ;;  %902 = vmatpush.msra.mxu0 %v2782_v44 }
 0x107   :  { %v438_v9 = vpop.f32.mrf.mxu1  ;;  %580 = vmatpush.msrb.mxu2 %v2989_v20  ;;  %5239 = vst [vmem:[#allocation24_spill] sm:$0xff] %v3024_v23  ;;  %v3034_v20 = vmax.f32 %v436_v49, 0.0  ;;  %v3049_v49 = vld [vmem:[%s5142_s3 + $0x220] sm:$0xff]  ;;  %922 = vmatpush.msra.mxu1 %v2795_v52 }
 0x108   :  { %600 = vmatpush.msrb.mxu3 %v2996_v13  ;;  %v3031_v13 = vld [vmem:[%s5142_s3 + $0x228] sm:$0xff]  ;;  %5242 = vst [vmem:[#allocation27_spill] sm:$0xff] %v3042_v24  ;;  %903 = vmatpush.msra.mxu0 %v2800_v53 }
 0x109   :  { %581 = vmatpush.msrb.mxu2 %v3003_v48  ;;  %5240 = vst [vmem:[#allocation25_spill] sm:$0xff] %v3031_v13  ;;  %v374_v48 = vadd.f32 %v2587_v2, %v373_v5  ;;  %923 = vmatpush.msra.mxu1 %v2810_v55 }
 0x10a   :  { %601 = vmatpush.msrb.mxu3 %v3010_v62  ;;  %5241 = vst [vmem:[#allocation26_spill] sm:$0xff] %v3034_v20  ;;  %904 = vmatpush.msra.mxu0 %v2815_v56 }
 0x10b   :  { %582 = vmatpush.msrb.mxu2 %v3017_v60  ;;  %5243 = vst [vmem:[#allocation28_spill] sm:$0xff] %v3049_v49  ;;  %v439_v60 = vadd.f32 %v438_v9, %v374_v48  ;;  %v3081_v48 = vld [vmem:[%s5142_s3 + $0x210] sm:$0xff]  ;;  %924 = vmatpush.msra.mxu1 %v2828_v6 }
 0x10c   :  { %602 = vmatpush.msrb.mxu3 %v3024_v23  ;;  %v3063_v23 = vld [vmem:[%s5142_s3 + $0x218] sm:$0xff]  ;;  %905 = vmatpush.msra.mxu0 %v2833_v8 }
 0x10d   :  { %583 = vmatpush.msrb.mxu2 %v3031_v13  ;;  %5245 = vst [vmem:[#allocation30_spill] sm:$0xff] %v3063_v23  ;;  %v1182_v13 = vrot.slane %v3034_v20, 4  ;;  %v3095_v4 = vmax.f32 %v439_v60, 0.0  ;;  %v3117_v60 = vld [vmem:[%s5142_s3 + $0x200] sm:$0xff]  ;;  %925 = vmatpush.msra.mxu1 %v2845_v14 }
 0x10e   :  { %v376_v26 = vpop.f32.mrf.mxu0  ;;  %603 = vmatpush.msrb.mxu3 %v3042_v24  ;;  %v3074_v24 = vld [vmem:[%s5142_s3 + $0x298] sm:$0xff]  ;;  %5250 = vst [vmem:[#allocation35_spill] sm:$0xff] %v3117_v60  ;;  %906 = vmatpush.msra.mxu0 %v2850_v19 }
 0x10f   :  { %v441_v59 = vpop.f32.mrf.mxu1  ;;  %v377_v27 = vadd.f32 %v2587_v2, %v376_v26  ;;  %v3056_v26 = vld [vmem:[%s5142_s3 + $0x2a0] sm:$0xff]  ;;  %584 = vmatpush.msrb.mxu2 %v3049_v49  ;;  %5247 = vst [vmem:[#allocation32_spill] sm:$0xff] %v3074_v24  ;;  %v3090_v49 = vld [vmem:[%s5142_s3 + $0x290] sm:$0xff]  ;;  %926 = vmatpush.msra.mxu1 %v2862_v32 }
 0x110   :  { %5244 = vst [vmem:[#allocation29_spill] sm:$0xff] %v3056_v26  ;;  %604 = vmatpush.msrb.mxu3 %v3056_v26  ;;  %907 = vmatpush.msra.mxu0 %v2870_v37 }
 0x111   :  { %v442_v5 = vadd.f32 %v441_v59, %v377_v27  ;;  %v1178_v27 = vrot.slane %v3034_v20, 2  ;;  %585 = vmatpush.msrb.mxu2 %v3063_v23  ;;  %5248 = vst [vmem:[#allocation33_spill] sm:$0xff] %v3095_v4  ;;  %v3102_v23 = vld [vmem:[%s5142_s3 + $0x208] sm:$0xff]  ;;  %927 = vmatpush.msra.mxu1 %v2877_v41 }
 0x112   :  { %605 = vmatpush.msrb.mxu3 %v3074_v24 }
 0x113   :  { %v3066_v59 = vmax.f32 %v442_v5, 0.0  ;;  %586 = vmatpush.msrb.mxu2 %v3081_v48 }
 0x114   :  { %606 = vmatpush.msrb.mxu3 %v3090_v49 }
 0x115   :  { %5246 = vst [vmem:[#allocation31_spill] sm:$0xff] %v3066_v59  ;;  %v1191_v9 = vrot.slane %v3066_v59, 2  ;;  %v1195_v5 = vrot.slane %v3066_v59, 4  ;;  %587 = vmatpush.msrb.mxu2 %v3102_v23 }
 0x116   :  { %v379_v26 = vpop.f32.mrf.mxu0  ;;  %607 = vmatpush.msrb.mxu3 %v3107_v38 }
 0x117   :  { %v444_v62 = vpop.f32.mrf.mxu1  ;;  %v380_v54 = vadd.f32 %v2587_v2, %v379_v26  ;;  %v2244_v51 = vpack.i.bf16 %v1191_v9, %v1178_v27  ;;  %v2249_v50 = vpack.i.bf16 %v1195_v5, %v1182_v13  ;;  %v3122_v13 = vld [vmem:[%s5142_s3 + $0x280] sm:$0xff]  ;;  %588 = vmatpush.msrb.mxu2 %v3117_v60  ;;  %v1186_v5 = vrot.slane %v3034_v20, 6 }
 0x118   :  { %5251 = vst [vmem:[#allocation36_spill] sm:$0xff] %v3122_v13  ;;  %608 = vmatpush.msrb.mxu3 %v3122_v13 }
 0x119   :  { %v445_v2 = vadd.f32 %v444_v62, %v380_v54  ;;  %2245 = vrot.lane.b32.xlu0 %v2244_v51, %s2350_s16  ;;  %2250 = vrot.lane.b32.xlu1 %v2249_v50, %s2351_s17  ;;  %v1291_v62 = vrot.slane %v3095_v4, 4  ;;  %v1295_v50 = vrot.slane %v3095_v4, 6 }
 0x11b   :  { %v3126_v26 = vmax.f32 %v445_v2, 0.0  ;;  %v1199_v2 = vrot.slane %v3066_v59, 6 }
 0x11d   :  { %5252 = vst [vmem:[#allocation37_spill] sm:$0xff] %v3126_v26  ;;  %v1300_v51 = vrot.slane %v3126_v26, 4  ;;  %v1304_v54 = vrot.slane %v3126_v26, 6 }
 0x11f   :  { %v2259_v27 = vpack.i.bf16 %v1300_v51, %v1291_v62  ;;  %v2264_v9 = vpack.i.bf16 %v1304_v54, %v1295_v50  ;;  %v2254_v62 = vpack.i.bf16 %v1199_v2, %v1186_v5  ;;  %v1399_v51 = vrot.slane %v3095_v4, 2 }
 0x120   :  { %v1403_v54 = vrot.slane %v3126_v26, 2 }
 0x121   :  { %2260 = vrot.lane.b32.xlu0 %v2259_v27, %s2351_s17  ;;  %2265 = vrot.lane.b32.xlu1 %v2264_v9, %s2349_s0 }
 0x122   :  { %2255 = vrot.lane.b32.xlu2 %v2254_v62, %s2349_s0  ;;  %v2269_v27 = vpack.i.bf16 %v1403_v54, %v1399_v51 }
 0x12a   :  { %2270 = vrot.lane.b32.xlu2 %v2269_v27, %s2350_s16 }
 0x12b   :  { %v2156_v50 = vpop.permute.xlu0 %2155  ;;  %v2166_v2 = vpop.permute.xlu1 %2165 }
 0x12c   :  { %v2158_v9 = vunpack.i.h.bf16 %v2156_v50  ;;  %v2157_v5 = vunpack.i.l.bf16 %v2156_v50  ;;  %v2168_v60 = vunpack.i.h.bf16 %v2166_v2  ;;  %v2167_v38 = vunpack.i.l.bf16 %v2166_v2 }
 0x12e   :  { %v3159_v4 = vsel %vm515_vm0, %v2591_v10, %v2157_v5  ;;  %v3163_v51 = vsel %vm515_vm0, %v2593_v12, %v2158_v9 }
 0x133   :  { %v2176_v62 = vpop.permute.xlu2 %2175  ;;  %v2161_v20 = vpop.permute.xlu0 %2160 }
 0x134   :  { %v2163_v59 = vunpack.i.h.bf16 %v2161_v20  ;;  %v2162_v13 = vunpack.i.l.bf16 %v2161_v20  ;;  %v2178_v9 = vunpack.i.h.bf16 %v2176_v62  ;;  %v2177_v5 = vunpack.i.l.bf16 %v2176_v62 }
 0x136   :  { %v518_v50 = vsel %vm517_vm1, %v3159_v4, %v2162_v13  ;;  %v522_v54 = vsel %vm517_vm1, %v3163_v51, %v2163_v59 }
 0x137   :  { %v520_v27 = vsel %vm519_vm2, %v518_v50, %v2167_v38  ;;  %v523_v20 = vsel %vm519_vm2, %v522_v54, %v2168_v60 }
 0x138   :  { %549 = vmatmul.f32.vlgmr.msra.gmra.mxu2 %v520_v27  ;;  %569 = vmatmul.f32.vlgmr.msra.gmra.mxu3 %v523_v20 }
 0x139   :  { %670 = vmatpush.msra.mxu2 %v2630_v57  ;;  %690 = vmatpush.msra.mxu3 %v2635_v58 }
 0x13b   :  { %671 = vmatpush.msra.mxu2 %v2648_v63  ;;  %691 = vmatpush.msra.mxu3 %v2653_v0  ;;  %v2181_v10 = vpop.permute.xlu2 %2180  ;;  %v2186_v54 = vpop.permute.xlu0 %2185 }
 0x13c   :  { %v2183_v2 = vunpack.i.h.bf16 %v2181_v10  ;;  %v2182_v50 = vunpack.i.l.bf16 %v2181_v10 }
 0x13d   :  { %672 = vmatpush.msra.mxu2 %v2658_v1  ;;  %692 = vmatpush.msra.mxu3 %v2671_v7 }
 0x13f   :  { %673 = vmatpush.msra.mxu2 %v2679_v15  ;;  %693 = vmatpush.msra.mxu3 %v2685_v16 }
 0x141   :  { %674 = vmatpush.msra.mxu2 %v2693_v17  ;;  %694 = vmatpush.msra.mxu3 %v2700_v18 }
 0x143   :  { %675 = vmatpush.msra.mxu2 %v2708_v21  ;;  %695 = vmatpush.msra.mxu3 %v2715_v22  ;;  %v3183_v12 = vpop.permute.xlu2 %2195 }
 0x145   :  { %676 = vmatpush.msra.mxu2 %v2724_v25  ;;  %696 = vmatpush.msra.mxu3 %v2734_v33 }
 0x147   :  { %677 = vmatpush.msra.mxu2 %v2739_v34  ;;  %697 = vmatpush.msra.mxu3 %v2749_v35 }
 0x149   :  { %678 = vmatpush.msra.mxu2 %v2754_v36  ;;  %698 = vmatpush.msra.mxu3 %v2762_v39 }
 0x14b   :  { %679 = vmatpush.msra.mxu2 %v2767_v40  ;;  %699 = vmatpush.msra.mxu3 %v2777_v43  ;;  %v3193_v38 = vpop.permute.xlu2 %2210  ;;  %v2171_v59 = vpop.permute.xlu1 %2170 }
 0x14c   :  { %5253 = vst [vmem:[#allocation38_spill] sm:$0xff] %v3193_v38  ;;  %v2173_v60 = vunpack.i.h.bf16 %v2171_v59  ;;  %v2172_v13 = vunpack.i.l.bf16 %v2171_v59  ;;  %v2213_v27 = vunpack.i.h.bf16 %v3193_v38  ;;  %v2187_v38 = vunpack.i.l.bf16 %v2186_v54 }
 0x14d   :  { %680 = vmatpush.msra.mxu2 %v2782_v44  ;;  %700 = vmatpush.msra.mxu3 %v2795_v52 }
 0x14e   :  { %v3200_v20 = vsel %vm515_vm0, %v2615_v42, %v2172_v13  ;;  %v3204_v26 = vsel %vm515_vm0, %v2618_v45, %v2173_v60  ;;  %v2188_v13 = vunpack.i.h.bf16 %v2186_v54  ;;  %v770_v45 = vsel %vm515_vm0, %v2605_v29, %v2213_v27 }
 0x14f   :  { %681 = vmatpush.msra.mxu2 %v2800_v53  ;;  %701 = vmatpush.msra.mxu3 %v2810_v55  ;;  %v525_v62 = vsel %vm517_vm1, %v3200_v20, %v2177_v5  ;;  %v528_v10 = vsel %vm517_vm1, %v3204_v26, %v2178_v9 }
 0x150   :  { %v3213_v59 = vsel %vm519_vm2, %v525_v62, %v2182_v50  ;;  %v529_v42 = vsel %vm519_vm2, %v528_v10, %v2183_v2  ;;  %v650_v2 = vsel %vm517_vm1, %v3159_v4, %v2187_v38  ;;  %v652_v50 = vsel %vm517_vm1, %v3163_v51, %v2188_v13 }
 0x151   :  { %682 = vmatpush.msra.mxu2 %v2815_v56  ;;  %702 = vmatpush.msra.mxu3 %v2828_v6  ;;  %v771_v54 = vsel %vm517_vm1, %v770_v45, %v2188_v13  ;;  %v5255_v45 = vld [vmem:[#allocation12_spill] sm:$0xff] }
 0x152   :  { %589 = vmatmul.f32.vlgmr.msrb.gmra.mxu2 %v3213_v59  ;;  %609 = vmatmul.f32.vlgmr.msrb.gmra.mxu3 %v529_v42 }
 0x153   :  { %683 = vmatpush.msra.mxu2 %v2833_v8  ;;  %703 = vmatpush.msra.mxu3 %v2845_v14  ;;  %v2191_v60 = vpop.permute.xlu1 %2190 }
 0x154   :  { %v2193_v9 = vunpack.i.h.bf16 %v2191_v60  ;;  %v2192_v5 = vunpack.i.l.bf16 %v2191_v60 }
 0x155   :  { %684 = vmatpush.msra.mxu2 %v2850_v19  ;;  %704 = vmatpush.msra.mxu3 %v2862_v32 }
 0x156   :  { %v651_v29 = vsel %vm519_vm2, %v650_v2, %v2192_v5  ;;  %v653_v27 = vsel %vm519_vm2, %v652_v50, %v2193_v9  ;;  %v772_v62 = vsel %vm519_vm2, %v771_v54, %v2193_v9  ;;  %v5256_v2 = vld [vmem:[#allocation13_spill] sm:$0xff]  ;;  %v5257_v54 = vld [vmem:[#allocation14_spill] sm:$0xff] }
 0x157   :  { %v662_v10 = vrot.slane %v651_v29, 4  ;;  %v663_v60 = vrot.slane %v653_v27, 4  ;;  %685 = vmatpush.msra.mxu2 %v2870_v37  ;;  %705 = vmatpush.msra.mxu3 %v2877_v41  ;;  %v5258_v29 = vld [vmem:[#allocation15_spill] sm:$0xff]  ;;  %v5259_v27 = vld [vmem:[#allocation16_spill] sm:$0xff] }
 0x158   :  { %815 = vmatmul.f32.vlgmr.msrb.gmra.mxu1 %v772_v62  ;;  %v5264_v62 = vld [vmem:[#allocation21_spill] sm:$0xff] }
 0x159   :  { %710 = vmatpush.msrb.mxu2 %v2882_v46  ;;  %730 = vmatpush.msrb.mxu3 %v2889_v47 }
 0x15a   :  { %1021 = vmatpush.msrb.mxu1 %v2635_v58  ;;  %686 = vmatmul.f32.vlgmr.msra.gmra.mxu2 %v662_v10  ;;  %v5265_v10 = vld [vmem:[#allocation22_spill] sm:$0xff] }
 0x15b   :  { %706 = vmatmul.f32.vlgmr.msra.gmra.mxu3 %v663_v60  ;;  %711 = vmatpush.msrb.mxu2 %v2900_v61  ;;  %v3239_v4 = vpop.permute.xlu1 %2205  ;;  %v5266_v60 = vld [vmem:[#allocation23_spill] sm:$0xff] }
 0x15c   :  { %5254 = vst [vmem:[#allocation39_spill] sm:$0xff] %v3239_v4  ;;  %731 = vmatpush.msrb.mxu3 %v2908_v3  ;;  %1022 = vmatpush.msrb.mxu1 %v2653_v0  ;;  %v2208_v51 = vunpack.i.h.bf16 %v3239_v4  ;;  %v5270_v4 = vld [vmem:[#allocation28_spill] sm:$0xff] }
 0x15d   :  { %712 = vmatpush.msrb.mxu2 %v2917_v11 }
 0x15e   :  { %732 = vmatpush.msrb.mxu3 %v2926_v28  ;;  %1023 = vmatpush.msrb.mxu1 %v2671_v7  ;;  %v767_v13 = vsel %vm515_vm0, %v2607_v31, %v2208_v51  ;;  %v5260_v31 = vld [vmem:[#allocation17_spill] sm:$0xff]  ;;  %v5267_v51 = vld [vmem:[#allocation24_spill] sm:$0xff] }
 0x15f   :  { %713 = vmatpush.msrb.mxu2 %v2932_v30  ;;  %v768_v9 = vsel %vm517_vm1, %v767_v13, %v2187_v38  ;;  %v5261_v38 = vld [vmem:[#allocation18_spill] sm:$0xff]  ;;  %v3278_v13 = vpop.permute.xlu0 %2200 }
 0x160   :  { %733 = vmatpush.msrb.mxu3 %v5255_v45  ;;  %1024 = vmatpush.msrb.mxu1 %v2685_v16  ;;  %v769_v50 = vsel %vm519_vm2, %v768_v9, %v2192_v5  ;;  %v5263_v5 = vld [vmem:[#allocation20_spill] sm:$0xff]  ;;  %v5268_v9 = vld [vmem:[#allocation25_spill] sm:$0xff] }
 0x161   :  { %714 = vmatpush.msrb.mxu2 %v5256_v2  ;;  %928 = vmatmul.f32.vlgmr.msra.gmra.mxu1 %v529_v42  ;;  %v5262_v42 = vld [vmem:[#allocation19_spill] sm:$0xff] }
 0x162   :  { %734 = vmatpush.msrb.mxu3 %v5257_v54  ;;  %1025 = vmatpush.msrb.mxu1 %v2700_v18 }
 0x163   :  { %715 = vmatpush.msrb.mxu2 %v5258_v29  ;;  %795 = vmatmul.f32.vlgmr.msrb.gmra.mxu0 %v769_v50  ;;  %v5269_v50 = vld [vmem:[#allocation27_spill] sm:$0xff] }
 0x164   :  { %735 = vmatpush.msrb.mxu3 %v5259_v27  ;;  %1001 = vmatpush.msrb.mxu0 %v2630_v57 }
 0x165   :  { %1026 = vmatpush.msrb.mxu1 %v2715_v22  ;;  %716 = vmatpush.msrb.mxu2 %v5260_v31 }
 0x166   :  { %736 = vmatpush.msrb.mxu3 %v5261_v38  ;;  %1002 = vmatpush.msrb.mxu0 %v2648_v63 }
 0x167   :  { %1027 = vmatpush.msrb.mxu1 %v2734_v33  ;;  %717 = vmatpush.msrb.mxu2 %v5262_v42 }
 0x168   :  { %737 = vmatpush.msrb.mxu3 %v5263_v5  ;;  %1003 = vmatpush.msrb.mxu0 %v2658_v1 }
 0x169   :  { %1028 = vmatpush.msrb.mxu1 %v2749_v35  ;;  %718 = vmatpush.msrb.mxu2 %v5264_v62 }
 0x16a   :  { %738 = vmatpush.msrb.mxu3 %v5265_v10  ;;  %1004 = vmatpush.msrb.mxu0 %v2679_v15 }
 0x16b   :  { %1029 = vmatpush.msrb.mxu1 %v2762_v39  ;;  %719 = vmatpush.msrb.mxu2 %v5266_v60  ;;  %v5271_v60 = vld [vmem:[#allocation29_spill] sm:$0xff] }
 0x16c   :  { %739 = vmatpush.msrb.mxu3 %v5267_v51  ;;  %908 = vmatmul.f32.vlgmr.msra.gmra.mxu0 %v3213_v59 }
 0x16d   :  { %1005 = vmatpush.msrb.mxu0 %v2693_v17  ;;  %1030 = vmatpush.msrb.mxu1 %v2777_v43  ;;  %v5272_v43 = vld [vmem:[#allocation30_spill] sm:$0xff] }
 0x16e   :  { %720 = vmatpush.msrb.mxu2 %v5268_v9  ;;  %740 = vmatpush.msrb.mxu3 %v5269_v50  ;;  %v5211_v9 = vunpack.i.h.bf16 %v3183_v12  ;;  %v5212_v50 = vunpack.i.l.bf16 %v3183_v12 }
 0x16f   :  { %1006 = vmatpush.msrb.mxu0 %v2708_v21  ;;  %1031 = vmatpush.msrb.mxu1 %v2795_v52 }
 0x170   :  { %721 = vmatpush.msrb.mxu2 %v5270_v4  ;;  %741 = vmatpush.msrb.mxu3 %v5271_v60  ;;  %v654_v17 = vsel %vm517_vm1, %v3200_v20, %v5212_v50  ;;  %v656_v59 = vsel %vm517_vm1, %v3204_v26, %v5211_v9  ;;  %v5275_v20 = vld [vmem:[#allocation34_spill] sm:$0xff]  ;;  %v5276_v50 = vld [vmem:[#allocation35_spill] sm:$0xff] }
 0x171   :  { %1007 = vmatpush.msrb.mxu0 %v2724_v25  ;;  %1032 = vmatpush.msrb.mxu1 %v2810_v55 }
 0x172   :  { %722 = vmatpush.msrb.mxu2 %v5272_v43  ;;  %742 = vmatpush.msrb.mxu3 %v3074_v24  ;;  %v5273_v24 = vunpack.i.h.bf16 %v3278_v13 }
 0x173   :  { %1008 = vmatpush.msrb.mxu0 %v2739_v34  ;;  %1033 = vmatpush.msrb.mxu1 %v2828_v6  ;;  %v5274_v6 = vunpack.i.l.bf16 %v3278_v13 }
 0x174   :  { %723 = vmatpush.msrb.mxu2 %v3081_v48  ;;  %743 = vmatpush.msrb.mxu3 %v3090_v49  ;;  %v657_v34 = vsel %vm519_vm2, %v656_v59, %v5273_v24  ;;  %v5277_v24 = vld [vmem:[#allocation36_spill] sm:$0xff]  ;;  %v5293_v59 = vunpack.i.l.bf16 %v3278_v13 }
 0x175   :  { %v655_v43 = vsel %vm519_vm2, %v654_v17, %v5274_v6  ;;  %1009 = vmatpush.msrb.mxu0 %v2754_v36  ;;  %1034 = vmatpush.msrb.mxu1 %v2845_v14  ;;  %v665_v26 = vrot.slane %v657_v34, 4 }
 0x176   :  { %724 = vmatpush.msrb.mxu2 %v3102_v23  ;;  %744 = vmatpush.msrb.mxu3 %v5275_v20  ;;  %v664_v9 = vrot.slane %v655_v43, 4  ;;  %v5291_v43 = vunpack.i.l.bf16 %v3183_v12 }
 0x177   :  { %1010 = vmatpush.msrb.mxu0 %v2767_v40  ;;  %1035 = vmatpush.msrb.mxu1 %v2862_v32 }
 0x178   :  { %725 = vmatpush.msrb.mxu2 %v5276_v50  ;;  %745 = vmatpush.msrb.mxu3 %v5277_v24 }
 0x179   :  { %1011 = vmatpush.msrb.mxu0 %v2782_v44  ;;  %1036 = vmatpush.msrb.mxu1 %v2877_v41 }
 0x17a   :  { %726 = vmatmul.f32.vlgmr.msrb.gmra.mxu2 %v664_v9  ;;  %746 = vmatmul.f32.vlgmr.msrb.gmra.mxu3 %v665_v26 }
 0x17b   :  { %819 = vmatpush.msra.mxu2 %v2882_v46  ;;  %839 = vmatpush.msra.mxu3 %v2889_v47 }
 0x17c   :  { %1037 = vmatmul.f32.vlgmr.msrb.gmra.mxu1 %v665_v26  ;;  %1012 = vmatpush.msrb.mxu0 %v2800_v53 }
 0x17d   :  { %1116 = vmatpush.msra.mxu1 %v2635_v58  ;;  %820 = vmatpush.msra.mxu2 %v2900_v61  ;;  %v5279_v58 = vld [vmem:[#allocation4_spill] sm:$0xff] }
 0x17e   :  { %840 = vmatpush.msra.mxu3 %v2908_v3  ;;  %1013 = vmatpush.msrb.mxu0 %v2815_v56 }
 0x17f   :  { %1117 = vmatpush.msra.mxu1 %v2653_v0  ;;  %821 = vmatpush.msra.mxu2 %v2917_v11  ;;  %v5281_v0 = vld [vmem:[#allocation25_spill] sm:$0xff] }
 0x180   :  { %841 = vmatpush.msra.mxu3 %v2926_v28  ;;  %1014 = vmatpush.msrb.mxu0 %v2833_v8 }
 0x181   :  { %1118 = vmatpush.msra.mxu1 %v2671_v7  ;;  %822 = vmatpush.msra.mxu2 %v2932_v30  ;;  %v5283_v7 = vld [vmem:[#allocation39_spill] sm:$0xff] }
 0x182   :  { %842 = vmatpush.msra.mxu3 %v5255_v45  ;;  %1015 = vmatpush.msrb.mxu0 %v2850_v19 }
 0x183   :  { %1119 = vmatpush.msra.mxu1 %v2685_v16  ;;  %823 = vmatpush.msra.mxu2 %v5256_v2  ;;  %v2207_v16 = vunpack.i.l.bf16 %v5283_v7  ;;  %v3482_v7 = vld [vmem:[%s5142_s3 + $0x168] sm:$0xff] }
 0x184   :  { %843 = vmatpush.msra.mxu3 %v5257_v54  ;;  %1016 = vmatpush.msrb.mxu0 %v2870_v37 }
 0x185   :  { %1120 = vmatpush.msra.mxu1 %v2700_v18  ;;  %824 = vmatpush.msra.mxu2 %v5258_v29  ;;  %v5285_v18 = vld [vmem:[#allocation30_spill] sm:$0xff] }
 0x186   :  { %844 = vmatpush.msra.mxu3 %v5259_v27  ;;  %1017 = vmatmul.f32.vlgmr.msrb.gmra.mxu0 %v664_v9 }
 0x187   :  { %1096 = vmatpush.msra.mxu0 %v2630_v57  ;;  %1121 = vmatpush.msra.mxu1 %v2715_v22  ;;  %v5278_v57 = vld [vmem:[#allocation23_spill] sm:$0xff]  ;;  %v5286_v22 = vld [vmem:[#allocation32_spill] sm:$0xff] }
 0x188   :  { %825 = vmatpush.msra.mxu2 %v5260_v31  ;;  %845 = vmatpush.msra.mxu3 %v5261_v38 }
 0x189   :  { %1097 = vmatpush.msra.mxu0 %v2648_v63  ;;  %1122 = vmatpush.msra.mxu1 %v2734_v33  ;;  %v5280_v63 = vld [vmem:[#allocation6_spill] sm:$0xff] }
 0x18a   :  { %826 = vmatpush.msra.mxu2 %v5262_v42  ;;  %846 = vmatpush.msra.mxu3 %v5263_v5  ;;  %v5287_v33 = vld [vmem:[#allocation2_spill] sm:$0xff] }
 0x18b   :  { %1098 = vmatpush.msra.mxu0 %v2658_v1  ;;  %1123 = vmatpush.msra.mxu1 %v2749_v35  ;;  %v5282_v1 = vld [vmem:[#allocation27_spill] sm:$0xff]  ;;  %v773_v34 = vsel %vm515_vm0, %v5287_v33, %v2207_v16  ;;  %v5289_v35 = vld [vmem:[#allocation9_spill] sm:$0xff]  ;;  %v3488_v16 = vld [vmem:[%s5142_s3 + $0x1c0] sm:$0xff]  ;;  %v2216_v33 = vpop.permute.xlu0 %2215 }
 0x18c   :  { %827 = vmatpush.msra.mxu2 %v5264_v62  ;;  %847 = vmatpush.msra.mxu3 %v5265_v10  ;;  %v774_v6 = vsel %vm517_vm1, %v773_v34, %v5291_v43  ;;  %v3510_v34 = vld [vmem:[%s5142_s3 + $0x158] sm:$0xff]  ;;  %v2221_v43 = vpop.permute.xlu1 %2220 }
 0x18d   :  { %1099 = vmatpush.msra.mxu0 %v2679_v15  ;;  %1124 = vmatpush.msra.mxu1 %v2762_v39  ;;  %v5284_v15 = vld [vmem:[#allocation38_spill] sm:$0xff]  ;;  %v5290_v39 = vld [vmem:[#allocation3_spill] sm:$0xff]  ;;  %v775_v26 = vsel %vm519_vm2, %v774_v6, %v5293_v59  ;;  %v3524_v6 = vld [vmem:[%s5142_s3 + $0x150] sm:$0xff]  ;;  %v2222_v59 = vunpack.i.l.bf16 %v2221_v43 }
 0x18e   :  { %828 = vmatpush.msra.mxu2 %v5278_v57  ;;  %848 = vmatpush.msra.mxu3 %v5267_v51  ;;  %v2212_v17 = vunpack.i.l.bf16 %v5284_v15  ;;  %v3496_v15 = vld [vmem:[%s5142_s3 + $0x160] sm:$0xff] }
 0x18f   :  { %1100 = vmatpush.msra.mxu0 %v5279_v58  ;;  %1125 = vmatpush.msra.mxu1 %v5280_v63  ;;  %v3474_v63 = vld [vmem:[%s5142_s3 + $0x1c8] sm:$0xff] }
 0x190   :  { %829 = vmatpush.msra.mxu2 %v5281_v0  ;;  %849 = vmatpush.msra.mxu3 %v5282_v1 }
 0x191   :  { %1101 = vmatpush.msra.mxu0 %v2708_v21  ;;  %1126 = vmatpush.msra.mxu1 %v2795_v52  ;;  %v5288_v21 = vld [vmem:[#allocation5_spill] sm:$0xff] }
 0x192   :  { %830 = vmatpush.msra.mxu2 %v5270_v4  ;;  %850 = vmatpush.msra.mxu3 %v5271_v60 }
 0x193   :  { %1102 = vmatpush.msra.mxu0 %v2724_v25  ;;  %1127 = vmatpush.msra.mxu1 %v2810_v55  ;;  %v776_v25 = vsel %vm515_vm0, %v5290_v39, %v2212_v17  ;;  %v3502_v17 = vld [vmem:[%s5142_s3 + $0x1b8] sm:$0xff]  ;;  %v2218_v39 = vunpack.i.h.bf16 %v2216_v33 }
 0x194   :  { %831 = vmatpush.msra.mxu2 %v5285_v18  ;;  %851 = vmatpush.msra.mxu3 %v5286_v22 }
 0x195   :  { %1103 = vmatpush.msra.mxu0 %v5288_v21  ;;  %1128 = vmatpush.msra.mxu1 %v5289_v35  ;;  %v3516_v21 = vld [vmem:[%s5142_s3 + $0x1b0] sm:$0xff] }
 0x196   :  { %832 = vmatpush.msra.mxu2 %v3081_v48  ;;  %852 = vmatpush.msra.mxu3 %v3090_v49 }
 0x197   :  { %1104 = vmatpush.msra.mxu0 %v2754_v36  ;;  %1129 = vmatpush.msra.mxu1 %v2845_v14  ;;  %v5292_v36 = vunpack.i.h.bf16 %v3183_v12  ;;  %v3419_v12 = vld [vmem:[%s5142_s3 + $0x1f0] sm:$0xff] }
 0x198   :  { %833 = vmatpush.msra.mxu2 %v3102_v23  ;;  %853 = vmatpush.msra.mxu3 %v5275_v20 }
 0x199   :  { %1105 = vmatpush.msra.mxu0 %v2767_v40  ;;  %1130 = vmatpush.msra.mxu1 %v2862_v32  ;;  %v777_v9 = vsel %vm517_vm1, %v776_v25, %v5292_v36  ;;  %v5294_v40 = vunpack.i.h.bf16 %v3278_v13  ;;  %v3468_v13 = vld [vmem:[%s5142_s3 + $0x170] sm:$0xff]  ;;  %v2217_v25 = vunpack.i.l.bf16 %v2216_v33  ;;  %v3533_v36 = vld [vmem:[%s5142_s3 + $0x148] sm:$0xff]  ;;  %v3550_v33 = vld [vmem:[%s5142_s3 + $0x140] sm:$0xff] }
 0x19a   :  { %834 = vmatpush.msra.mxu2 %v5276_v50  ;;  %854 = vmatpush.msra.mxu3 %v5277_v24 }
 0x19b   :  { %1106 = vmatpush.msra.mxu0 %v2782_v44  ;;  %1131 = vmatpush.msra.mxu1 %v2877_v41  ;;  %v778_v58 = vsel %vm519_vm2, %v777_v9, %v5294_v40  ;;  %v3410_v44 = vld [vmem:[%s5142_s3 + $0x1f8] sm:$0xff]  ;;  %v2223_v9 = vunpack.i.h.bf16 %v2221_v43  ;;  %v5296_v40 = vld [vmem:[#allocation7_spill] sm:$0xff] }
 0x19c   :  { %835 = vmatmul.f32.vlgmr.msra.gmra.mxu2 %v775_v26  ;;  %855 = vmatmul.f32.vlgmr.msra.gmra.mxu3 %v778_v58 }
 0x19d   :  { %932 = vmatpush.msrb.mxu2 %v2882_v46  ;;  %952 = vmatpush.msrb.mxu3 %v2889_v47 }
 0x19e   :  { %1132 = vmatmul.f32.vlgmr.msra.gmra.mxu1 %v778_v58  ;;  %1107 = vmatpush.msra.mxu0 %v2800_v53  ;;  %v3428_v53 = vld [vmem:[%s5142_s3 + $0x1e8] sm:$0xff]  ;;  %v3545_v58 = vsel %vm515_vm0, %v5296_v40, %v2217_v25 }
 0x19f   :  { %1229 = vmatpush.msrb.mxu1 %v3410_v44  ;;  %933 = vmatpush.msrb.mxu2 %v2900_v61 }
 0x1a0   :  { %953 = vmatpush.msrb.mxu3 %v2908_v3  ;;  %1108 = vmatpush.msra.mxu0 %v2815_v56  ;;  %v3437_v56 = vld [vmem:[%s5142_s3 + $0x1e0] sm:$0xff] }
 0x1a1   :  { %1230 = vmatpush.msrb.mxu1 %v3419_v12  ;;  %934 = vmatpush.msrb.mxu2 %v2917_v11 }
 0x1a2   :  { %954 = vmatpush.msrb.mxu3 %v2926_v28  ;;  %1109 = vmatpush.msra.mxu0 %v2833_v8  ;;  %v3446_v8 = vld [vmem:[%s5142_s3 + $0x1d8] sm:$0xff] }
 0x1a3   :  { %1231 = vmatpush.msrb.mxu1 %v3428_v53  ;;  %935 = vmatpush.msrb.mxu2 %v2932_v30 }
 0x1a4   :  { %955 = vmatpush.msrb.mxu3 %v5255_v45  ;;  %1110 = vmatpush.msra.mxu0 %v2850_v19  ;;  %v3454_v19 = vld [vmem:[%s5142_s3 + $0x178] sm:$0xff] }
 0x1a5   :  { %1232 = vmatpush.msrb.mxu1 %v3437_v56  ;;  %936 = vmatpush.msrb.mxu2 %v5256_v2 }
 0x1a6   :  { %956 = vmatpush.msrb.mxu3 %v5257_v54  ;;  %1111 = vmatpush.msra.mxu0 %v2870_v37  ;;  %v3460_v37 = vld [vmem:[%s5142_s3 + $0x1d0] sm:$0xff] }
 0x1a7   :  { %1233 = vmatpush.msrb.mxu1 %v3446_v8  ;;  %937 = vmatpush.msrb.mxu2 %v5258_v29 }
 0x1a8   :  { %957 = vmatpush.msrb.mxu3 %v5259_v27  ;;  %1112 = vmatmul.f32.vlgmr.msra.gmra.mxu0 %v775_v26 }
 0x1a9   :  { %1209 = vmatpush.msrb.mxu0 %v3454_v19  ;;  %1234 = vmatpush.msrb.mxu1 %v3460_v37 }
 0x1aa   :  { %938 = vmatpush.msrb.mxu2 %v5260_v31  ;;  %958 = vmatpush.msrb.mxu3 %v5261_v38 }
 0x1ab   :  { %1210 = vmatpush.msrb.mxu0 %v3468_v13  ;;  %1235 = vmatpush.msrb.mxu1 %v3474_v63 }
 0x1ac   :  { %939 = vmatpush.msrb.mxu2 %v5262_v42  ;;  %959 = vmatpush.msrb.mxu3 %v5263_v5 }
 0x1ad   :  { %1211 = vmatpush.msrb.mxu0 %v3482_v7  ;;  %1236 = vmatpush.msrb.mxu1 %v3488_v16 }
 0x1ae   :  { %940 = vmatpush.msrb.mxu2 %v5264_v62  ;;  %960 = vmatpush.msrb.mxu3 %v5265_v10 }
 0x1af   :  { %1212 = vmatpush.msrb.mxu0 %v3496_v15  ;;  %1237 = vmatpush.msrb.mxu1 %v3502_v17 }
 0x1b0   :  { %941 = vmatpush.msrb.mxu2 %v5278_v57  ;;  %961 = vmatpush.msrb.mxu3 %v5267_v51 }
 0x1b1   :  { %1213 = vmatpush.msrb.mxu0 %v3510_v34  ;;  %1238 = vmatpush.msrb.mxu1 %v3516_v21 }
 0x1b2   :  { %942 = vmatpush.msrb.mxu2 %v5281_v0  ;;  %962 = vmatpush.msrb.mxu3 %v5282_v1 }
 0x1b3   :  { %1214 = vmatpush.msrb.mxu0 %v3524_v6  ;;  %1239 = vmatpush.msrb.mxu1 %v2795_v52  ;;  %v5295_v52 = vld [vmem:[#allocation8_spill] sm:$0xff] }
 0x1b4   :  { %943 = vmatpush.msrb.mxu2 %v5270_v4  ;;  %963 = vmatpush.msrb.mxu3 %v5271_v60  ;;  %v3541_v26 = vsel %vm515_vm0, %v5295_v52, %v2218_v39  ;;  %v3559_v39 = vld [vmem:[%s5143_s2 + $0x1] ss:$0 sm:$0xff]  ;;  %v3564_v52 = vld [vmem:[%s5142_s3 + $0x138] sm:$0xff] }
 0x1b5   :  { %1215 = vmatpush.msrb.mxu0 %v3533_v36  ;;  %1240 = vmatpush.msrb.mxu1 %v2810_v55  ;;  %v2226_v55 = vpop.permute.xlu2 %2225  ;;  %v890_v40 = vsel %vm517_vm1, %v3541_v26, %v2223_v9  ;;  %v3587_v9 = vld [vmem:[%s5142_s3 + $0x128] sm:$0xff] }
 0x1b6   :  { %944 = vmatpush.msrb.mxu2 %v5285_v18  ;;  %964 = vmatpush.msrb.mxu3 %v5286_v22  ;;  %v2228_v25 = vunpack.i.h.bf16 %v2226_v55  ;;  %v2227_v43 = vunpack.i.l.bf16 %v2226_v55  ;;  %v3577_v55 = vld [vmem:[%s5142_s3 + $0x130] sm:$0xff] }
 0x1b7   :  { %1216 = vmatpush.msrb.mxu0 %v3550_v33  ;;  %1241 = vmatpush.msrb.mxu1 %v5289_v35  ;;  %v887_v35 = vsel %vm517_vm1, %v3545_v58, %v2222_v59  ;;  %5297 = vst [vmem:[#allocation12_spill] sm:$0xff] %v3577_v55 }
 0x1b8   :  { %945 = vmatpush.msrb.mxu2 %v3081_v48  ;;  %965 = vmatpush.msrb.mxu3 %v3090_v49  ;;  %v888_v59 = vsel %vm519_vm2, %v887_v35, %v2227_v43  ;;  %v3762_v43 = vld [vmem:[%s5142_s3 + $0x2f0] sm:$0xff]  ;;  %v3776_v35 = vld [vmem:[%s5142_s3 + $0x2e8] sm:$0xff] }
 0x1b9   :  { %1217 = vmatpush.msrb.mxu0 %v3564_v52  ;;  %1242 = vmatpush.msrb.mxu1 %v2845_v14 }
 0x1ba   :  { %946 = vmatpush.msrb.mxu2 %v3102_v23  ;;  %966 = vmatpush.msrb.mxu3 %v5275_v20 }
 0x1bb   :  { %1218 = vmatpush.msrb.mxu0 %v3577_v55  ;;  %1243 = vmatpush.msrb.mxu1 %v2862_v32  ;;  %v550_v14 = vpop.f32.mrf.mxu2  ;;  %v891_v32 = vsel %vm519_vm2, %v890_v40, %v2228_v25  ;;  %v570_v55 = vpop.f32.mrf.mxu3  ;;  %v3790_v40 = vld [vmem:[%s5142_s3 + $0x2e0] sm:$0xff] }
 0x1bc   :  { %947 = vmatpush.msrb.mxu2 %v5276_v50  ;;  %967 = vmatpush.msrb.mxu3 %v5277_v24  ;;  %v551_v20 = vadd.f32 %v3559_v39, %v550_v14  ;;  %v3598_v14 = vld [vmem:[%s5142_s3 + $0x120] sm:$0xff] }
 0x1bd   :  { %1219 = vmatpush.msrb.mxu0 %v3587_v9  ;;  %1244 = vmatpush.msrb.mxu1 %v2877_v41  ;;  %v3607_v41 = vld [vmem:[%s5142_s3 + $0x118] sm:$0xff] }
 0x1be   :  { %948 = vmatmul.f32.vlgmr.msrb.gmra.mxu2 %v888_v59  ;;  %968 = vmatmul.f32.vlgmr.msrb.gmra.mxu3 %v891_v32  ;;  %v571_v50 = vadd.f32 %v570_v55, %v551_v20 }
 0x1bf   :  { %1041 = vmatpush.msra.mxu2 %v2882_v46  ;;  %1061 = vmatpush.msra.mxu3 %v2889_v47  ;;  %v3616_v46 = vld [vmem:[%s5142_s3 + $0x110] sm:$0xff]  ;;  %v3625_v47 = vld [vmem:[%s5142_s3 + $0x108] sm:$0xff] }
 0x1c0   :  { %1245 = vmatmul.f32.vlgmr.msrb.gmra.mxu1 %v891_v32  ;;  %1220 = vmatpush.msrb.mxu0 %v3598_v14 }
 0x1c1   :  { %1338 = vmatpush.msra.mxu1 %v3410_v44  ;;  %1042 = vmatpush.msra.mxu2 %v2900_v61  ;;  %v3634_v61 = vld [vmem:[%s5142_s3 + $0x100] sm:$0xff] }
 0x1c2   :  { %1062 = vmatpush.msra.mxu3 %v2908_v3  ;;  %1221 = vmatpush.msrb.mxu0 %v3607_v41  ;;  %v3652_v3 = vpop.permute.xlu0 %2230 }
 0x1c3   :  { %1339 = vmatpush.msra.mxu1 %v3419_v12  ;;  %1043 = vmatpush.msra.mxu2 %v2917_v11  ;;  %v2233_v11 = vunpack.i.h.bf16 %v3652_v3 }
 0x1c4   :  { %1063 = vmatpush.msra.mxu3 %v2926_v28  ;;  %1222 = vmatpush.msrb.mxu0 %v3616_v46  ;;  %v2232_v28 = vunpack.i.l.bf16 %v3652_v3 }
 0x1c5   :  { %1340 = vmatpush.msra.mxu1 %v3428_v53  ;;  %1044 = vmatpush.msra.mxu2 %v2932_v30  ;;  %v3662_v30 = vpop.permute.xlu1 %2235 }
 0x1c6   :  { %1064 = vmatpush.msra.mxu3 %v5255_v45  ;;  %1223 = vmatpush.msrb.mxu0 %v3625_v47  ;;  %v3670_v45 = vld [vmem:[%s5142_s3 + $0x1a8] sm:$0xff] }
 0x1c7   :  { %1341 = vmatpush.msra.mxu1 %v3437_v56  ;;  %1045 = vmatpush.msra.mxu2 %v5256_v2 }
 0x1c8   :  { %1065 = vmatpush.msra.mxu3 %v5257_v54  ;;  %1224 = vmatpush.msrb.mxu0 %v3634_v61 }
 0x1c9   :  { %1342 = vmatpush.msra.mxu1 %v3446_v8  ;;  %1046 = vmatpush.msra.mxu2 %v5258_v29  ;;  %v2238_v29 = vunpack.i.h.bf16 %v3662_v30 }
 0x1ca   :  { %1066 = vmatpush.msra.mxu3 %v5259_v27  ;;  %1225 = vmatmul.f32.vlgmr.msrb.gmra.mxu0 %v888_v59  ;;  %v2237_v27 = vunpack.i.l.bf16 %v3662_v30  ;;  %v3804_v59 = vld [vmem:[%s5142_s3 + $0x2d8] sm:$0xff] }
 0x1cb   :  { %1318 = vmatpush.msra.mxu0 %v3454_v19  ;;  %1343 = vmatpush.msra.mxu1 %v3460_v37 }
 0x1cc   :  { %1047 = vmatpush.msra.mxu2 %v5260_v31  ;;  %1067 = vmatpush.msra.mxu3 %v5261_v38  ;;  %v3681_v31 = vld [vmem:[%s5142_s3 + $0x1a0] sm:$0xff] }
 0x1cd   :  { %1319 = vmatpush.msra.mxu0 %v3468_v13  ;;  %1344 = vmatpush.msra.mxu1 %v3474_v63 }
 0x1ce   :  { %1048 = vmatpush.msra.mxu2 %v5262_v42  ;;  %1068 = vmatpush.msra.mxu3 %v5263_v5  ;;  %v993_v42 = vsel %vm517_vm1, %v3541_v26, %v2233_v11 }
 0x1cf   :  { %1320 = vmatpush.msra.mxu0 %v3482_v7  ;;  %1345 = vmatpush.msra.mxu1 %v3488_v16 }
 0x1d0   :  { %1049 = vmatpush.msra.mxu2 %v5264_v62  ;;  %1069 = vmatpush.msra.mxu3 %v5265_v10  ;;  %v3700_v62 = vld [vmem:[%s5142_s3 + $0x198] sm:$0xff] }
 0x1d1   :  { %1321 = vmatpush.msra.mxu0 %v3496_v15  ;;  %1346 = vmatpush.msra.mxu1 %v3502_v17 }
 0x1d2   :  { %1050 = vmatpush.msra.mxu2 %v5278_v57  ;;  %1070 = vmatpush.msra.mxu3 %v5267_v51  ;;  %v3715_v51 = vld [vmem:[%s5142_s3 + $0x190] sm:$0xff] }
 0x1d3   :  { %1322 = vmatpush.msra.mxu0 %v3510_v34  ;;  %1347 = vmatpush.msra.mxu1 %v3516_v21 }
 0x1d4   :  { %1051 = vmatpush.msra.mxu2 %v5281_v0  ;;  %1071 = vmatpush.msra.mxu3 %v5282_v1  ;;  %v5300_v0 = vld [vmem:[#allocation35_spill] sm:$0xff] }
 0x1d5   :  { %1323 = vmatpush.msra.mxu0 %v3524_v6  ;;  %1348 = vmatpush.msra.mxu1 %v3670_v45  ;;  %v590_v2 = vpop.f32.mrf.mxu2  ;;  %v610_v38 = vpop.f32.mrf.mxu3 }
 0x1d6   :  { %1052 = vmatpush.msra.mxu2 %v5270_v4  ;;  %1072 = vmatpush.msra.mxu3 %v5271_v60  ;;  %v591_v54 = vadd.f32 %v590_v2, %v571_v50  ;;  %v991_v4 = vsel %vm517_vm1, %v3545_v58, %v2232_v28  ;;  %v994_v60 = vsel %vm519_vm2, %v993_v42, %v2238_v29  ;;  %v3724_v50 = vld [vmem:[%s5142_s3 + $0x188] sm:$0xff]  ;;  %v3754_v58 = vld [vmem:[%s5142_s3 + $0x270] sm:$0xff] }
 0x1d7   :  { %1324 = vmatpush.msra.mxu0 %v3533_v36  ;;  %1349 = vmatpush.msra.mxu1 %v3681_v31  ;;  %v992_v10 = vsel %vm519_vm2, %v991_v4, %v2237_v27  ;;  %v998_v57 = vrot.slane %v994_v60, 4  ;;  %v3813_v2 = vld [vmem:[%s5142_s3 + $0x250] sm:$0xff]  ;;  %v3835_v4 = vld [vmem:[%s5142_s3 + $0x2c8] sm:$0xff] }
 0x1d8   :  { %1053 = vmatpush.msra.mxu2 %v5285_v18  ;;  %1073 = vmatpush.msra.mxu3 %v5286_v22  ;;  %v3694_v5 = vadd.f32 %v610_v38, %v591_v54  ;;  %v997_v20 = vrot.slane %v992_v10, 4  ;;  %v3739_v18 = vld [vmem:[%s5142_s3 + $0x278] sm:$0xff]  ;;  %v816_v22 = vpop.f32.mrf.mxu1  ;;  %v3819_v54 = vld [vmem:[%s5142_s3 + $0x2d0] sm:$0xff]  ;;  %v3891_v10 = vld [vmem:[%s5142_s3 + $0x2a8] sm:$0xff] }
 0x1d9   :  { %1325 = vmatpush.msra.mxu0 %v3550_v33  ;;  %1350 = vmatpush.msra.mxu1 %v3700_v62 }
 0x1da   :  { %1054 = vmatpush.msra.mxu2 %v3081_v48  ;;  %1074 = vmatpush.msra.mxu3 %v3090_v49  ;;  %v5298_v49 = vld [vmem:[#allocation34_spill] sm:$0xff]  ;;  %v5299_v48 = vld [vmem:[#allocation12_spill] sm:$0xff] }
 0x1db   :  { %1326 = vmatpush.msra.mxu0 %v3564_v52  ;;  %1351 = vmatpush.msra.mxu1 %v3715_v51 }
 0x1dc   :  { %1055 = vmatpush.msra.mxu2 %v3102_v23  ;;  %1075 = vmatpush.msra.mxu3 %v5298_v49  ;;  %v3733_v23 = vld [vmem:[%s5142_s3 + $0x180] sm:$0xff] }
 0x1dd   :  { %1327 = vmatpush.msra.mxu0 %v5299_v48  ;;  %1352 = vmatpush.msra.mxu1 %v3724_v50  ;;  %v687_v42 = vpop.f32.mrf.mxu2 }
 0x1de   :  { %1056 = vmatpush.msra.mxu2 %v5300_v0  ;;  %1076 = vmatpush.msra.mxu3 %v5277_v24  ;;  %v3745_v24 = vld [vmem:[%s5142_s3 + $0x2f8] sm:$0xff]  ;;  %v707_v49 = vpop.f32.mrf.mxu3  ;;  %v5301_v0 = vld [vmem:[#allocation11_spill] sm:$0xff] }
 0x1df   :  { %1328 = vmatpush.msra.mxu0 %v3587_v9  ;;  %1353 = vmatpush.msra.mxu1 %v3733_v23 }
 0x1e0   :  { %1057 = vmatmul.f32.vlgmr.msra.gmra.mxu2 %v997_v20  ;;  %1077 = vmatmul.f32.vlgmr.msra.gmra.mxu3 %v998_v57  ;;  %v796_v1 = vpop.f32.mrf.mxu0 }
 0x1e1   :  { %1136 = vmatpush.msrb.mxu2 %v3739_v18  ;;  %1156 = vmatpush.msrb.mxu3 %v3745_v24  ;;  %v797_v26 = vadd.f32 %v3559_v39, %v796_v1 }
 0x1e2   :  { %1354 = vmatmul.f32.vlgmr.msra.gmra.mxu1 %v998_v57  ;;  %1329 = vmatpush.msra.mxu0 %v3598_v14 }
 0x1e3   :  { %1433 = vmatpush.msrb.mxu1 %v3410_v44  ;;  %1137 = vmatpush.msrb.mxu2 %v3754_v58  ;;  %v3757_v25 = vadd.f32 %v816_v22, %v797_v26  ;;  %v3770_v44 = vld [vmem:[%s5142_s3 + $0x268] sm:$0xff]  ;;  %v3936_v22 = vld [vmem:[%s5142_s3 + $0x290] sm:$0xff]  ;;  %v5302_v26 = vld [vmem:[#allocation10_spill] sm:$0xff] }
 0x1e4   :  { %1157 = vmatpush.msrb.mxu3 %v3762_v43  ;;  %1330 = vmatpush.msra.mxu0 %v3607_v41 }
 0x1e5   :  { %1434 = vmatpush.msrb.mxu1 %v3419_v12  ;;  %1138 = vmatpush.msrb.mxu2 %v3770_v44  ;;  %v3784_v12 = vld [vmem:[%s5142_s3 + $0x260] sm:$0xff] }
 0x1e6   :  { %1158 = vmatpush.msrb.mxu3 %v3776_v35  ;;  %1331 = vmatpush.msra.mxu0 %v3616_v46 }
 0x1e7   :  { %1435 = vmatpush.msrb.mxu1 %v3428_v53  ;;  %1139 = vmatpush.msrb.mxu2 %v3784_v12  ;;  %v3798_v53 = vld [vmem:[%s5142_s3 + $0x258] sm:$0xff] }
 0x1e8   :  { %1159 = vmatpush.msrb.mxu3 %v3790_v40  ;;  %1332 = vmatpush.msra.mxu0 %v3625_v47 }
 0x1e9   :  { %1436 = vmatpush.msrb.mxu1 %v3437_v56  ;;  %1140 = vmatpush.msrb.mxu2 %v3798_v53  ;;  %v909_v55 = vpop.f32.mrf.mxu0  ;;  %v929_v56 = vpop.f32.mrf.mxu1 }
 0x1ea   :  { %1160 = vmatpush.msrb.mxu3 %v3804_v59  ;;  %1333 = vmatpush.msra.mxu0 %v3634_v61  ;;  %v910_v32 = vadd.f32 %v3559_v39, %v909_v55  ;;  %v3946_v55 = vld [vmem:[%s5142_s3 + $0x208] sm:$0xff] }
 0x1eb   :  { %1437 = vmatpush.msrb.mxu1 %v3446_v8  ;;  %1141 = vmatpush.msrb.mxu2 %v3813_v2  ;;  %v3829_v8 = vld [vmem:[%s5142_s3 + $0x248] sm:$0xff] }
 0x1ec   :  { %1161 = vmatpush.msrb.mxu3 %v3819_v54  ;;  %1334 = vmatmul.f32.vlgmr.msra.gmra.mxu0 %v997_v20  ;;  %v3822_v38 = vadd.f32 %v929_v56, %v910_v32  ;;  %v3906_v20 = vld [vmem:[%s5142_s3 + $0x2a0] sm:$0xff]  ;;  %v3952_v32 = vld [vmem:[%s5142_s3 + $0x288] sm:$0xff] }
 0x1ed   :  { %1413 = vmatpush.msrb.mxu0 %v3454_v19  ;;  %1438 = vmatpush.msrb.mxu1 %v3460_v37  ;;  %v3843_v19 = vld [vmem:[%s5142_s3 + $0x240] sm:$0xff] }
 0x1ee   :  { %1142 = vmatpush.msrb.mxu2 %v3829_v8  ;;  %1162 = vmatpush.msrb.mxu3 %v3835_v4  ;;  %v3849_v37 = vld [vmem:[%s5142_s3 + $0x2c0] sm:$0xff] }
 0x1ef   :  { %1414 = vmatpush.msrb.mxu0 %v3468_v13  ;;  %1439 = vmatpush.msrb.mxu1 %v3474_v63  ;;  %v3857_v13 = vld [vmem:[%s5142_s3 + $0x238] sm:$0xff] }
 0x1f0   :  { %1143 = vmatpush.msrb.mxu2 %v3843_v19  ;;  %1163 = vmatpush.msrb.mxu3 %v3849_v37  ;;  %v3863_v63 = vld [vmem:[%s5142_s3 + $0x2b8] sm:$0xff] }
 0x1f1   :  { %1415 = vmatpush.msrb.mxu0 %v3482_v7  ;;  %1440 = vmatpush.msrb.mxu1 %v3488_v16  ;;  %v3871_v7 = vld [vmem:[%s5142_s3 + $0x230] sm:$0xff] }
 0x1f2   :  { %1144 = vmatpush.msrb.mxu2 %v3857_v13  ;;  %1164 = vmatpush.msrb.mxu3 %v3863_v63  ;;  %v3877_v16 = vld [vmem:[%s5142_s3 + $0x2b0] sm:$0xff] }
 0x1f3   :  { %1416 = vmatpush.msrb.mxu0 %v3496_v15  ;;  %1441 = vmatpush.msrb.mxu1 %v3502_v17  ;;  %v2241_v15 = vpop.permute.xlu2 %2240  ;;  %v3885_v17 = vld [vmem:[%s5142_s3 + $0x228] sm:$0xff] }
 0x1f4   :  { %1145 = vmatpush.msrb.mxu2 %v3871_v7  ;;  %1165 = vmatpush.msrb.mxu3 %v3877_v16  ;;  %v2243_v60 = vunpack.i.h.bf16 %v2241_v15  ;;  %v2242_v57 = vunpack.i.l.bf16 %v2241_v15  ;;  %v3966_v15 = vld [vmem:[%s5142_s3 + $0x200] sm:$0xff] }
 0x1f5   :  { %1417 = vmatpush.msrb.mxu0 %v3510_v34  ;;  %1442 = vmatpush.msrb.mxu1 %v3516_v21  ;;  %v688_v34 = vadd.f32 %v3559_v39, %v687_v42  ;;  %v3900_v21 = vld [vmem:[%s5142_s3 + $0x220] sm:$0xff] }
 0x1f6   :  { %1146 = vmatpush.msrb.mxu2 %v3885_v17  ;;  %1166 = vmatpush.msrb.mxu3 %v3891_v10  ;;  %v1093_v1 = vsel %vm515_vm0, %v5301_v0, %v2243_v60 }
 0x1f7   :  { %1418 = vmatpush.msrb.mxu0 %v3524_v6  ;;  %1443 = vmatpush.msrb.mxu1 %v3670_v45  ;;  %v3914_v6 = vld [vmem:[%s5142_s3 + $0x218] sm:$0xff] }
 0x1f8   :  { %1147 = vmatpush.msrb.mxu2 %v3900_v21  ;;  %1167 = vmatpush.msrb.mxu3 %v3906_v20  ;;  %v3920_v45 = vld [vmem:[%s5142_s3 + $0x298] sm:$0xff] }
 0x1f9   :  { %1419 = vmatpush.msrb.mxu0 %v3533_v36  ;;  %1444 = vmatpush.msrb.mxu1 %v3681_v31  ;;  %v708_v36 = vadd.f32 %v707_v49, %v688_v34  ;;  %v3930_v31 = vld [vmem:[%s5142_s3 + $0x210] sm:$0xff]  ;;  %v5304_v34 = vld [vmem:[#allocation26_spill] sm:$0xff] }
 0x1fa   :  { %1148 = vmatpush.msrb.mxu2 %v3914_v6  ;;  %1168 = vmatpush.msrb.mxu3 %v3920_v45 }
 0x1fb   :  { %1420 = vmatpush.msrb.mxu0 %v3550_v33  ;;  %1445 = vmatpush.msrb.mxu1 %v3700_v62  ;;  %v1090_v33 = vsel %vm515_vm0, %v5302_v26, %v2242_v57  ;;  %v2256_v0 = vpop.permute.xlu2 %2255 }
 0x1fc   :  { %1149 = vmatpush.msrb.mxu2 %v3930_v31  ;;  %1169 = vmatpush.msrb.mxu3 %v3936_v22 }
 0x1fd   :  { %1421 = vmatpush.msrb.mxu0 %v3564_v52  ;;  %1446 = vmatpush.msrb.mxu1 %v3715_v51  ;;  %v727_v62 = vpop.f32.mrf.mxu2  ;;  %v1091_v52 = vsel %vm517_vm1, %v1090_v33, %v2232_v28  ;;  %v1094_v51 = vsel %vm517_vm1, %v1093_v1, %v2233_v11  ;;  %v747_v42 = vpop.f32.mrf.mxu3  ;;  %v3972_v28 = vld [vmem:[%s5142_s3 + $0x280] sm:$0xff]  ;;  %v2258_v1 = vunpack.i.h.bf16 %v2256_v0 }
 0x1fe   :  { %1150 = vmatpush.msrb.mxu2 %v3946_v55  ;;  %1170 = vmatpush.msrb.mxu3 %v3952_v32  ;;  %v728_v56 = vadd.f32 %v727_v62, %v708_v36  ;;  %v1092_v11 = vsel %vm519_vm2, %v1091_v52, %v2237_v27  ;;  %v5303_v27 = vld [vmem:[#allocation31_spill] sm:$0xff]  ;;  %v2257_v36 = vunpack.i.l.bf16 %v2256_v0 }
 0x1ff   :  { %1422 = vmatpush.msrb.mxu0 %v5299_v48  ;;  %1447 = vmatpush.msrb.mxu1 %v3724_v50  ;;  %v1095_v48 = vsel %vm519_vm2, %v1094_v51, %v2238_v29 }
 0x200   :  { %1151 = vmatpush.msrb.mxu2 %v3966_v15  ;;  %1171 = vmatpush.msrb.mxu3 %v3972_v28  ;;  %v748_v3 = vadd.f32 %v747_v42, %v728_v56 }
 0x201   :  { %1423 = vmatpush.msrb.mxu0 %v3587_v9  ;;  %1448 = vmatpush.msrb.mxu1 %v3733_v23  ;;  %v1038_v23 = vpop.f32.mrf.mxu1 }
 0x202   :  { %1152 = vmatmul.f32.vlgmr.msrb.gmra.mxu2 %v1092_v11  ;;  %1172 = vmatmul.f32.vlgmr.msrb.gmra.mxu3 %v1095_v48  ;;  %v750_v50 = vmax.f32 %v748_v3, 0.0 }
 0x203   :  { %1249 = vmatpush.msra.mxu2 %v3739_v18  ;;  %1269 = vmatpush.msra.mxu3 %v3745_v24  ;;  %v1018_v60 = vpop.f32.mrf.mxu0 }
 0x204   :  { %1449 = vmatmul.f32.vlgmr.msrb.gmra.mxu1 %v1095_v48  ;;  %1424 = vmatpush.msrb.mxu0 %v3598_v14  ;;  %v1019_v9 = vadd.f32 %v3559_v39, %v1018_v60  ;;  %v2246_v14 = vpop.permute.xlu0 %2245 }
 0x205   :  { %1250 = vmatpush.msra.mxu2 %v3754_v58  ;;  %1270 = vmatpush.msra.mxu3 %v3762_v43 }
 0x206   :  { %1425 = vmatpush.msrb.mxu0 %v3607_v41  ;;  %1495 = vrot.lane.b32.xlu0 %v750_v50, %s2351_s17  ;;  %v3991_v30 = vadd.f32 %v1038_v23, %v1019_v9  ;;  %v2248_v41 = vunpack.i.h.bf16 %v2246_v14 }
 0x207   :  { %1251 = vmatpush.msra.mxu2 %v3770_v44  ;;  %1271 = vmatpush.msra.mxu3 %v3776_v35 }
 0x208   :  { %1426 = vmatpush.msrb.mxu0 %v3616_v46  ;;  %v2247_v46 = vunpack.i.l.bf16 %v2246_v14  ;;  %v1206_v49 = vsel %vm515_vm0, %v5303_v27, %v2248_v41 }
 0x209   :  { %1252 = vmatpush.msra.mxu2 %v3784_v12  ;;  %1272 = vmatpush.msra.mxu3 %v3790_v40 }
 0x20a   :  { %1427 = vmatpush.msrb.mxu0 %v3625_v47  ;;  %v2251_v47 = vpop.permute.xlu1 %2250  ;;  %v1203_v57 = vsel %vm515_vm0, %v5304_v34, %v2247_v46 }
 0x20b   :  { %1253 = vmatpush.msra.mxu2 %v3798_v53  ;;  %1273 = vmatpush.msra.mxu3 %v3804_v59  ;;  %v2252_v29 = vunpack.i.l.bf16 %v2251_v47 }
 0x20c   :  { %1428 = vmatpush.msrb.mxu0 %v3634_v61  ;;  %v2253_v61 = vunpack.i.h.bf16 %v2251_v47 }
 0x20d   :  { %1254 = vmatpush.msra.mxu2 %v3813_v2  ;;  %1274 = vmatpush.msra.mxu3 %v3819_v54  ;;  %v1204_v26 = vsel %vm517_vm1, %v1203_v57, %v2252_v29 }
 0x20e   :  { %1429 = vmatmul.f32.vlgmr.msrb.gmra.mxu0 %v1092_v11  ;;  %v1207_v33 = vsel %vm517_vm1, %v1206_v49, %v2253_v61  ;;  %v1205_v51 = vsel %vm519_vm2, %v1204_v26, %v2257_v36  ;;  %v613_v26 = vmax.f32 %v3694_v5, 0.0 }
 0x20f   :  { %1255 = vmatpush.msra.mxu2 %v3829_v8  ;;  %1275 = vmatpush.msra.mxu3 %v3835_v4  ;;  %v1208_v56 = vsel %vm519_vm2, %v1207_v33, %v2258_v1 }
 0x211   :  { %1256 = vmatpush.msra.mxu2 %v3843_v19  ;;  %1276 = vmatpush.msra.mxu3 %v3849_v37 }
 0x212   :  { %v4059_v50 = vpop.permute.xlu1 %2265 }
 0x213   :  { %1257 = vmatpush.msra.mxu2 %v3857_v13  ;;  %1277 = vmatpush.msra.mxu3 %v3863_v63  ;;  %v2268_v60 = vunpack.i.h.bf16 %v4059_v50  ;;  %v2267_v9 = vunpack.i.l.bf16 %v4059_v50 }
 0x215   :  { %1258 = vmatpush.msra.mxu2 %v3871_v7  ;;  %1278 = vmatpush.msra.mxu3 %v3877_v16 }
 0x217   :  { %1259 = vmatpush.msra.mxu2 %v3885_v17  ;;  %1279 = vmatpush.msra.mxu3 %v3891_v10 }
 0x219   :  { %1260 = vmatpush.msra.mxu2 %v3900_v21  ;;  %1280 = vmatpush.msra.mxu3 %v3906_v20 }
 0x21b   :  { %1261 = vmatpush.msra.mxu2 %v3914_v6  ;;  %1281 = vmatpush.msra.mxu3 %v3920_v45  ;;  %v4087_v27 = vpop.f32.mrf.mxu1 }
 0x21d   :  { %1262 = vmatpush.msra.mxu2 %v3930_v31  ;;  %1282 = vmatpush.msra.mxu3 %v3936_v22 }
 0x21f   :  { %1263 = vmatpush.msra.mxu2 %v3946_v55  ;;  %1283 = vmatpush.msra.mxu3 %v3952_v32  ;;  %v836_v62 = vpop.f32.mrf.mxu2  ;;  %v856_v42 = vpop.f32.mrf.mxu3 }
 0x220   :  { %v837_v52 = vadd.f32 %v836_v62, %v3757_v25  ;;  %v4051_v25 = vpop.permute.xlu0 %2260 }
 0x221   :  { %1264 = vmatpush.msra.mxu2 %v3966_v15  ;;  %1284 = vmatpush.msra.mxu3 %v3972_v28  ;;  %v2263_v11 = vunpack.i.h.bf16 %v4051_v25  ;;  %v2262_v48 = vunpack.i.l.bf16 %v4051_v25 }
 0x222   :  { %1265 = vmatmul.f32.vlgmr.msra.gmra.mxu2 %v1205_v51  ;;  %1285 = vmatmul.f32.vlgmr.msra.gmra.mxu3 %v1208_v56  ;;  %v4033_v3 = vadd.f32 %v856_v42, %v837_v52 }
 0x223   :  { %1358 = vmatpush.msrb.mxu2 %v3739_v18  ;;  %1378 = vmatpush.msrb.mxu3 %v3745_v24  ;;  %v1308_v23 = vsel %vm517_vm1, %v1203_v57, %v2262_v48  ;;  %v1310_v14 = vsel %vm517_vm1, %v1206_v49, %v2263_v11  ;;  %v145_v57 = vld [vmem:[%s5142_s3 + $0x378] sm:$0xff] }
 0x224   :  { %v1309_v41 = vsel %vm519_vm2, %v1308_v23, %v2267_v9  ;;  %v1311_v46 = vsel %vm519_vm2, %v1310_v14, %v2268_v60  ;;  %1520 = vmatpush.msra.mxu0 %v145_v57  ;;  %v200_v23 = vld [vmem:[%s5142_s3 + $0x530] sm:$0xff]  ;;  %v177_v14 = vld [vmem:[%s5142_s3 + $0x478] sm:$0xff] }
 0x225   :  { %1359 = vmatpush.msrb.mxu2 %v3754_v58  ;;  %1379 = vmatpush.msrb.mxu3 %v3762_v43  ;;  %v4083_v47 = vpop.f32.mrf.mxu0  ;;  %v1314_v61 = vrot.slane %v1309_v41, 4  ;;  %v1315_v29 = vrot.slane %v1311_v46, 4  ;;  %v199_v41 = vld [vmem:[%s5142_s3 + $0x528] sm:$0xff]  ;;  %v198_v46 = vld [vmem:[%s5142_s3 + $0x520] sm:$0xff]  ;;  %v176_v57 = vld [vmem:[%s5142_s3 + $0x470] sm:$0xff] }
 0x226   :  { %v1114_v52 = vadd.f32 %v3559_v39, %v4083_v47 }
 0x227   :  { %1360 = vmatpush.msrb.mxu2 %v3770_v44  ;;  %1380 = vmatpush.msrb.mxu3 %v3776_v35 }
 0x229   :  { %1361 = vmatpush.msrb.mxu2 %v3784_v12  ;;  %1381 = vmatpush.msrb.mxu3 %v3790_v40 }
 0x22b   :  { %1362 = vmatpush.msrb.mxu2 %v3798_v53  ;;  %1382 = vmatpush.msrb.mxu3 %v3804_v59 }
 0x22d   :  { %1363 = vmatpush.msrb.mxu2 %v3813_v2  ;;  %1383 = vmatpush.msrb.mxu3 %v3819_v54 }
 0x22f   :  { %1364 = vmatpush.msrb.mxu2 %v3829_v8  ;;  %1384 = vmatpush.msrb.mxu3 %v3835_v4 }
 0x231   :  { %1365 = vmatpush.msrb.mxu2 %v3843_v19  ;;  %1385 = vmatpush.msrb.mxu3 %v3849_v37 }
 0x233   :  { %1366 = vmatpush.msrb.mxu2 %v3857_v13  ;;  %1386 = vmatpush.msrb.mxu3 %v3863_v63 }
 0x235   :  { %1367 = vmatpush.msrb.mxu2 %v3871_v7  ;;  %1387 = vmatpush.msrb.mxu3 %v3877_v16 }
 0x237   :  { %1368 = vmatpush.msrb.mxu2 %v3885_v17  ;;  %1388 = vmatpush.msrb.mxu3 %v3891_v10 }
 0x239   :  { %1369 = vmatpush.msrb.mxu2 %v3900_v21  ;;  %1389 = vmatpush.msrb.mxu3 %v3906_v20 }
 0x23b   :  { %1370 = vmatpush.msrb.mxu2 %v3914_v6  ;;  %1390 = vmatpush.msrb.mxu3 %v3920_v45 }
 0x23d   :  { %1371 = vmatpush.msrb.mxu2 %v3930_v31  ;;  %1391 = vmatpush.msrb.mxu3 %v3936_v22 }
 0x23f   :  { %1372 = vmatpush.msrb.mxu2 %v3946_v55  ;;  %1392 = vmatpush.msrb.mxu3 %v3952_v32 }
 0x241   :  { %1373 = vmatpush.msrb.mxu2 %v3966_v15  ;;  %1393 = vmatpush.msrb.mxu3 %v3972_v28  ;;  %v949_v49 = vpop.f32.mrf.mxu2  ;;  %v969_v0 = vpop.f32.mrf.mxu3 }
 0x242   :  { %1374 = vmatmul.f32.vlgmr.msrb.gmra.mxu2 %v1314_v61  ;;  %1394 = vmatmul.f32.vlgmr.msrb.gmra.mxu3 %v1315_v29  ;;  %v950_v34 = vadd.f32 %v949_v49, %v3822_v38  ;;  %v197_v49 = vld [vmem:[%s5142_s3 + $0x518] sm:$0xff] }
 0x243   :  { %1453 = vmatpush.msra.mxu2 %v3739_v18  ;;  %1473 = vmatpush.msra.mxu3 %v3745_v24  ;;  %v144_v18 = vld [vmem:[%s5142_s3 + $0x370] sm:$0xff]  ;;  %v1246_v24 = vpop.f32.mrf.mxu1 }
 0x244   :  { %v4097_v1 = vadd.f32 %v969_v0, %v950_v34  ;;  %1521 = vmatpush.msra.mxu0 %v144_v18  ;;  %v175_v18 = vld [vmem:[%s5142_s3 + $0x468] sm:$0xff] }
 0x245   :  { %1454 = vmatpush.msra.mxu2 %v3754_v58  ;;  %1474 = vmatpush.msra.mxu3 %v3762_v43  ;;  %v143_v58 = vld [vmem:[%s5142_s3 + $0x368] sm:$0xff] }
 0x246   :  { %1522 = vmatpush.msra.mxu0 %v143_v58  ;;  %v195_v58 = vld [vmem:[%s5142_s3 + $0x508] sm:$0xff] }
 0x247   :  { %1455 = vmatpush.msra.mxu2 %v3770_v44  ;;  %1475 = vmatpush.msra.mxu3 %v3776_v35  ;;  %v1226_v38 = vpop.f32.mrf.mxu0  ;;  %v142_v44 = vld [vmem:[%s5142_s3 + $0x360] sm:$0xff]  ;;  %v141_v35 = vld [vmem:[%s5142_s3 + $0x358] sm:$0xff] }
 0x248   :  { %v1227_v36 = vadd.f32 %v3559_v39, %v1226_v38  ;;  %1523 = vmatpush.msra.mxu0 %v142_v44  ;;  %v196_v38 = vld [vmem:[%s5142_s3 + $0x510] sm:$0xff]  ;;  %v972_v44 = vmax.f32 %v4097_v1, 0.0 }
 0x249   :  { %1456 = vmatpush.msra.mxu2 %v3784_v12  ;;  %1476 = vmatpush.msra.mxu3 %v3790_v40  ;;  %v140_v12 = vld [vmem:[%s5142_s3 + $0x350] sm:$0xff]  ;;  %v139_v40 = vld [vmem:[%s5142_s3 + $0x348] sm:$0xff] }
 0x24a   :  { %v4112_v43 = vadd.f32 %v1246_v24, %v1227_v36  ;;  %1524 = vmatpush.msra.mxu0 %v141_v35  ;;  %v172_v1 = vld [vmem:[%s5142_s3 + $0x450] sm:$0xff] }
 0x24b   :  { %1457 = vmatpush.msra.mxu2 %v3798_v53  ;;  %1477 = vmatpush.msra.mxu3 %v3804_v59  ;;  %v138_v53 = vld [vmem:[%s5142_s3 + $0x340] sm:$0xff]  ;;  %v2271_v59 = vpop.permute.xlu2 %2270 }
 0x24c   :  { %1525 = vmatpush.msra.mxu0 %v140_v12  ;;  %v194_v12 = vld [vmem:[%s5142_s3 + $0x500] sm:$0xff] }
 0x24d   :  { %1458 = vmatpush.msra.mxu2 %v3813_v2  ;;  %1478 = vmatpush.msra.mxu3 %v3819_v54  ;;  %v137_v2 = vld [vmem:[%s5142_s3 + $0x338] sm:$0xff]  ;;  %v2273_v54 = vunpack.i.h.bf16 %v2271_v59 }
 0x24e   :  { %1526 = vmatpush.msra.mxu0 %v139_v40  ;;  %v173_v40 = vld [vmem:[%s5142_s3 + $0x458] sm:$0xff] }
 0x24f   :  { %1459 = vmatpush.msra.mxu2 %v3829_v8  ;;  %1479 = vmatpush.msra.mxu3 %v3835_v4  ;;  %v2272_v8 = vunpack.i.l.bf16 %v2271_v59  ;;  %v136_v4 = vld [vmem:[%s5142_s3 + $0x330] sm:$0xff]  ;;  %v1622_v59 = vld [vmem:[%s5145_s6] sm:$0xff] }
 0x250   :  { %1527 = vmatpush.msra.mxu0 %v138_v53 }
 0x251   :  { %1460 = vmatpush.msra.mxu2 %v3843_v19  ;;  %1480 = vmatpush.msra.mxu3 %v3849_v37  ;;  %v135_v19 = vld [vmem:[%s5142_s3 + $0x328] sm:$0xff]  ;;  %v5305_v37 = vld [vmem:[#allocation37_spill] sm:$0xff] }
 0x252   :  { %1528 = vmatpush.msra.mxu0 %v137_v2  ;;  %v171_v2 = vld [vmem:[%s5142_s3 + $0x448] sm:$0xff] }
 0x253   :  { %1461 = vmatpush.msra.mxu2 %v3857_v13  ;;  %1481 = vmatpush.msra.mxu3 %v3863_v63  ;;  %v1410_v13 = vsel %vm515_vm0, %v5305_v37, %v2273_v54  ;;  %v5306_v63 = vld [vmem:[#allocation33_spill] sm:$0xff]  ;;  %v170_v54 = vld [vmem:[%s5142_s3 + $0x440] sm:$0xff] }
 0x254   :  { %1529 = vmatpush.msra.mxu0 %v136_v4  ;;  %v168_v4 = vld [vmem:[%s5142_s3 + $0x430] sm:$0xff]  ;;  %v166_v37 = vld [vmem:[%s5142_s3 + $0x420] sm:$0xff] }
 0x255   :  { %1462 = vmatpush.msra.mxu2 %v3871_v7  ;;  %1482 = vmatpush.msra.mxu3 %v3877_v16  ;;  %v1407_v7 = vsel %vm515_vm0, %v5306_v63, %v2272_v8  ;;  %v134_v16 = vld [vmem:[%s5142_s3 + $0x320] sm:$0xff]  ;;  %v169_v8 = vld [vmem:[%s5142_s3 + $0x438] sm:$0xff]  ;;  %v164_v63 = vld [vmem:[%s5142_s3 + $0x410] sm:$0xff] }
 0x256   :  { %1530 = vmatpush.msra.mxu0 %v135_v19  ;;  %v167_v19 = vld [vmem:[%s5142_s3 + $0x428] sm:$0xff] }
 0x257   :  { %1463 = vmatpush.msra.mxu2 %v3885_v17  ;;  %1483 = vmatpush.msra.mxu3 %v3891_v10  ;;  %v133_v17 = vld [vmem:[%s5142_s3 + $0x318] sm:$0xff]  ;;  %v1408_v10 = vsel %vm517_vm1, %v1407_v7, %v2262_v48 }
 0x258   :  { %1531 = vmatpush.msra.mxu0 %v134_v16  ;;  %v163_v16 = vld [vmem:[%s5142_s3 + $0x408] sm:$0xff] }
 0x259   :  { %1464 = vmatpush.msra.mxu2 %v3900_v21  ;;  %1484 = vmatpush.msra.mxu3 %v3906_v20  ;;  %v1411_v21 = vsel %vm517_vm1, %v1410_v13, %v2263_v11  ;;  %v1409_v20 = vsel %vm519_vm2, %v1408_v10, %v2267_v9  ;;  %v201_v9 = vld [vmem:[%s5142_s3 + $0x538] sm:$0xff] }
 0x25a   :  { %1532 = vmatpush.msra.mxu0 %v133_v17  ;;  %v165_v13 = vld [vmem:[%s5142_s3 + $0x418] sm:$0xff]  ;;  %v162_v17 = vld [vmem:[%s5142_s3 + $0x400] sm:$0xff] }
 0x25b   :  { %1465 = vmatpush.msra.mxu2 %v3914_v6  ;;  %1485 = vmatpush.msra.mxu3 %v3920_v45  ;;  %v1412_v6 = vsel %vm519_vm2, %v1411_v21, %v2268_v60  ;;  %v132_v45 = vld [vmem:[%s5142_s3 + $0x310] sm:$0xff]  ;;  %v161_v21 = vld [vmem:[%s5142_s3 + $0x3f8] sm:$0xff] }
 0x25c   :  { %1533 = vmatpush.msra.mxu0 %v132_v45  ;;  %1540 = vmatpush.msra.mxu1 %v161_v21  ;;  %v192_v45 = vld [vmem:[%s5142_s3 + $0x4f0] sm:$0xff]  ;;  %v203_v21 = vld [vmem:[%s5142_s3 + $0x548] sm:$0xff] }
 0x25d   :  { %1466 = vmatpush.msra.mxu2 %v3930_v31  ;;  %1486 = vmatpush.msra.mxu3 %v3936_v22  ;;  %v131_v31 = vld [vmem:[%s5142_s3 + $0x308] sm:$0xff] }
 0x25e   :  { %1534 = vmatpush.msra.mxu0 %v131_v31  ;;  %v191_v31 = vld [vmem:[%s5142_s3 + $0x4e8] sm:$0xff] }
 0x25f   :  { %1467 = vmatpush.msra.mxu2 %v3946_v55  ;;  %1487 = vmatpush.msra.mxu3 %v3952_v32  ;;  %v130_v32 = vld [vmem:[%s5142_s3 + $0x300] sm:$0xff]  ;;  %v1355_v29 = vpop.f32.mrf.mxu1 }
 0x260   :  { %1535 = vmatpush.msra.mxu0 %v130_v32  ;;  %v158_v32 = vld [vmem:[%s5142_s3 + $0x3e0] sm:$0xff] }
 0x261   :  { %1468 = vmatpush.msra.mxu2 %v3966_v15  ;;  %1488 = vmatpush.msra.mxu3 %v3972_v28 }
 0x262   :  { %1469 = vmatmul.f32.vlgmr.msra.gmra.mxu2 %v1409_v20  ;;  %1489 = vmatmul.f32.vlgmr.msra.gmra.mxu3 %v1412_v6  ;;  %v193_v20 = vld [vmem:[%s5142_s3 + $0x4f8] sm:$0xff]  ;;  %v160_v6 = vld [vmem:[%s5142_s3 + $0x3f0] sm:$0xff] }
 0x263   :  { %v1058_v22 = vpop.f32.mrf.mxu2  ;;  %v1078_v15 = vpop.f32.mrf.mxu3  ;;  %1608 = vmatpush.msrb.mxu0 %v201_v9  ;;  %1560 = vmatpush.msrb.mxu2 %v177_v14  ;;  %v153_v9 = vld [vmem:[%s5142_s3 + $0x3b8] sm:$0xff]  ;;  %v152_v14 = vld [vmem:[%s5142_s3 + $0x3b0] sm:$0xff] }
 0x264   :  { %v1059_v55 = vadd.f32 %v1058_v22, %v3991_v30  ;;  %v1134_v30 = vadd.f32 %v4087_v27, %v1114_v52  ;;  %1580 = vmatpush.msrb.mxu3 %v193_v20  ;;  %1541 = vmatpush.msra.mxu1 %v160_v6  ;;  %v189_v52 = vld [vmem:[%s5142_s3 + $0x4d8] sm:$0xff]  ;;  %v202_v20 = vld [vmem:[%s5142_s3 + $0x540] sm:$0xff] }
 0x265   :  { %1609 = vmatpush.msrb.mxu0 %v200_v23  ;;  %1561 = vmatpush.msrb.mxu2 %v176_v57  ;;  %v185_v23 = vld [vmem:[%s5142_s3 + $0x4b8] sm:$0xff]  ;;  %v148_v57 = vld [vmem:[%s5142_s3 + $0x390] sm:$0xff] }
 0x266   :  { %v4194_v28 = vadd.f32 %v1078_v15, %v1059_v55  ;;  %1581 = vmatpush.msrb.mxu3 %v192_v45  ;;  %v190_v15 = vld [vmem:[%s5142_s3 + $0x4e0] sm:$0xff] }
 0x267   :  { %1610 = vmatpush.msrb.mxu0 %v199_v41  ;;  %1562 = vmatpush.msrb.mxu2 %v175_v18  ;;  %v184_v41 = vld [vmem:[%s5142_s3 + $0x4b0] sm:$0xff] }
 0x268   :  { %1582 = vmatpush.msrb.mxu3 %v191_v31 }
 0x269   :  { %1611 = vmatpush.msrb.mxu0 %v198_v46  ;;  %v1335_v47 = vpop.f32.mrf.mxu0  ;;  %v1621_v46 = vld [vmem:[%s5146_s1] sm:$0x3] }
 0x26a   :  { %v1336_v61 = vadd.f32 %v3559_v39, %v1335_v47  ;;  %1583 = vmatpush.msrb.mxu3 %v190_v15  ;;  %v151_v47 = vld [vmem:[%s5142_s3 + $0x3a8] sm:$0xff]  ;;  %v1711_v15 = vld [vmem:[%s5147_s5 + $0xf8] sm:$0xff] }
 0x26b   :  { %1612 = vmatpush.msrb.mxu0 %v197_v49  ;;  %v149_v49 = vld [vmem:[%s5142_s3 + $0x398] sm:$0xff] }
 0x26c   :  { %v1356_v27 = vadd.f32 %v1355_v29, %v1336_v61  ;;  %1584 = vmatpush.msrb.mxu3 %v189_v52  ;;  %v183_v61 = vld [vmem:[%s5142_s3 + $0x4a8] sm:$0xff]  ;;  %v150_v29 = vld [vmem:[%s5142_s3 + $0x3a0] sm:$0xff]  ;;  %v1707_v52 = vld [vmem:[%s5147_s5 + $0xd8] sm:$0xff] }
 0x26d   :  { %1613 = vmatpush.msrb.mxu0 %v196_v38  ;;  %v1081_v38 = vmax.f32 %v4194_v28, 0.0  ;;  %v178_v28 = vld [vmem:[%s5142_s3 + $0x480] sm:$0xff] }
 0x26f   :  { %1614 = vmatpush.msrb.mxu0 %v195_v58  ;;  %v179_v58 = vld [vmem:[%s5142_s3 + $0x488] sm:$0xff] }
 0x271   :  { %1615 = vmatpush.msrb.mxu0 %v194_v12  ;;  %v215_v12 = vld [vmem:[%s5142_s3 + $0x5a8] sm:$0xff] }
 0x278   :  { %v1496_v33 = vpop.permute.xlu0 %1495 }
 0x279   :  { %v1510_v62 = vsel %vm517_vm1, %v613_v26, %v1496_v33 }
 0x27a   :  { %1536 = vmatmul.f32.vlgmr.msra.gmra.mxu0 %v1510_v62  ;;  %v157_v62 = vld [vmem:[%s5142_s3 + $0x3d8] sm:$0xff] }
 0x27b   :  { %1645 = vmatpush.msra.mxu0 %v1622_v59  ;;  %v212_v59 = vld [vmem:[%s5142_s3 + $0x590] sm:$0xff] }
 0x281   :  { %v1450_v22 = vpop.f32.mrf.mxu1 }
 0x285   :  { %v1153_v51 = vpop.f32.mrf.mxu2  ;;  %v1173_v42 = vpop.f32.mrf.mxu3 }
 0x286   :  { %v1154_v56 = vadd.f32 %v1153_v51, %v1134_v30 }
 0x288   :  { %v1174_v25 = vadd.f32 %v1173_v42, %v1154_v56  ;;  %v156_v56 = vld [vmem:[%s5142_s3 + $0x3d0] sm:$0xff] }
 0x289   :  { %v188_v42 = vld [vmem:[%s5142_s3 + $0x4d0] sm:$0xff] }
 0x28a   :  { %v1176_v11 = vmax.f32 %v1174_v25, 0.0  ;;  %1585 = vmatpush.msrb.mxu3 %v188_v42  ;;  %v1703_v42 = vld [vmem:[%s5147_s5 + $0xb8] sm:$0xff] }
 0x28b   :  { %v1430_v7 = vpop.f32.mrf.mxu0 }
 0x28c   :  { %1503 = vrot.lane.b32.xlu1 %v1176_v11, %s2351_s17  ;;  %v1431_v10 = vadd.f32 %v3559_v39, %v1430_v7  ;;  %v159_v39 = vld [vmem:[%s5142_s3 + $0x3e8] sm:$0xff] }
 0x28d   :  { %1542 = vmatpush.msra.mxu1 %v159_v39  ;;  %v155_v11 = vld [vmem:[%s5142_s3 + $0x3c8] sm:$0xff]  ;;  %v2282_v39 = vld [vmem:[%s5143_s2 + $0x3] ss:$0 sm:$0xff] }
 0x28e   :  { %v1451_v55 = vadd.f32 %v1450_v22, %v1431_v10  ;;  %v204_v10 = vld [vmem:[%s5142_s3 + $0x550] sm:$0xff] }
 0x28f   :  { %1543 = vmatpush.msra.mxu1 %v158_v32  ;;  %v1710_v32 = vld [vmem:[%s5147_s5 + $0xf0] sm:$0xff] }
 0x291   :  { %1544 = vmatpush.msra.mxu1 %v157_v62  ;;  %v1706_v62 = vld [vmem:[%s5147_s5 + $0xd0] sm:$0xff] }
 0x293   :  { %1545 = vmatpush.msra.mxu1 %v156_v56  ;;  %v1702_v56 = vld [vmem:[%s5147_s5 + $0xb0] sm:$0xff] }
 0x295   :  { %1546 = vmatpush.msra.mxu1 %v155_v11  ;;  %v1701_v11 = vld [vmem:[%s5147_s5 + $0xa8] sm:$0xff] }
 0x2a5   :  { %v1266_v48 = vpop.f32.mrf.mxu2  ;;  %v1286_v5 = vpop.f32.mrf.mxu3 }
 0x2a6   :  { %v1267_v50 = vadd.f32 %v1266_v48, %v4112_v43  ;;  %v174_v43 = vld [vmem:[%s5142_s3 + $0x460] sm:$0xff]  ;;  %v187_v48 = vld [vmem:[%s5142_s3 + $0x4c8] sm:$0xff] }
 0x2a7   :  { %1563 = vmatpush.msrb.mxu2 %v174_v43  ;;  %1586 = vmatpush.msrb.mxu3 %v187_v48  ;;  %v146_v43 = vld [vmem:[%s5142_s3 + $0x380] sm:$0xff]  ;;  %v1698_v48 = vld [vmem:[%s5147_s5 + $0x90] sm:$0xff] }
 0x2a8   :  { %v4203_v60 = vadd.f32 %v1286_v5, %v1267_v50  ;;  %v154_v50 = vld [vmem:[%s5142_s3 + $0x3c0] sm:$0xff] }
 0x2a9   :  { %1564 = vmatpush.msrb.mxu2 %v173_v40  ;;  %v186_v5 = vld [vmem:[%s5142_s3 + $0x4c0] sm:$0xff]  ;;  %1547 = vmatpush.msra.mxu1 %v154_v50  ;;  %v1699_v50 = vld [vmem:[%s5147_s5 + $0x98] sm:$0xff] }
 0x2aa   :  { %1587 = vmatpush.msrb.mxu3 %v186_v5  ;;  %v214_v40 = vld [vmem:[%s5142_s3 + $0x5a0] sm:$0xff] }
 0x2ab   :  { %1565 = vmatpush.msrb.mxu2 %v172_v1  ;;  %1548 = vmatpush.msra.mxu1 %v153_v9  ;;  %v211_v1 = vld [vmem:[%s5142_s3 + $0x588] sm:$0xff]  ;;  %v1696_v5 = vld [vmem:[%s5147_s5 + $0x80] sm:$0xff] }
 0x2ac   :  { %1588 = vmatpush.msrb.mxu3 %v185_v23  ;;  %v1697_v9 = vld [vmem:[%s5147_s5 + $0x88] sm:$0xff]  ;;  %v1694_v23 = vld [vmem:[%s5147_s5 + $0x70] sm:$0xff] }
 0x2ad   :  { %1566 = vmatpush.msrb.mxu2 %v171_v2  ;;  %1549 = vmatpush.msra.mxu1 %v152_v14  ;;  %v210_v2 = vld [vmem:[%s5142_s3 + $0x580] sm:$0xff]  ;;  %v1695_v14 = vld [vmem:[%s5147_s5 + $0x78] sm:$0xff] }
 0x2ae   :  { %1589 = vmatpush.msrb.mxu3 %v184_v41  ;;  %v1692_v41 = vld [vmem:[%s5147_s5 + $0x60] sm:$0xff] }
 0x2af   :  { %1567 = vmatpush.msrb.mxu2 %v170_v54  ;;  %1550 = vmatpush.msra.mxu1 %v151_v47  ;;  %v209_v54 = vld [vmem:[%s5142_s3 + $0x578] sm:$0xff]  ;;  %v1690_v47 = vld [vmem:[%s5147_s5 + $0x50] sm:$0xff] }
 0x2b0   :  { %1590 = vmatpush.msrb.mxu3 %v183_v61  ;;  %v1691_v61 = vld [vmem:[%s5147_s5 + $0x58] sm:$0xff] }
 0x2b1   :  { %1568 = vmatpush.msrb.mxu2 %v169_v8  ;;  %1551 = vmatpush.msra.mxu1 %v150_v29 }
 0x2b3   :  { %1569 = vmatpush.msrb.mxu2 %v168_v4  ;;  %1552 = vmatpush.msra.mxu1 %v149_v49  ;;  %v859_v4 = vmax.f32 %v4033_v3, 0.0  ;;  %v206_v3 = vld [vmem:[%s5142_s3 + $0x560] sm:$0xff]  ;;  %v1689_v49 = vld [vmem:[%s5147_s5 + $0x48] sm:$0xff] }
 0x2b5   :  { %1570 = vmatpush.msrb.mxu2 %v167_v19  ;;  %1553 = vmatpush.msra.mxu1 %v148_v57  ;;  %v1289_v19 = vmax.f32 %v4203_v60, 0.0  ;;  %v205_v60 = vld [vmem:[%s5142_s3 + $0x558] sm:$0xff] }
 0x2b6   :  { %v1687_v57 = vld [vmem:[%s5147_s5 + $0x38] sm:$0xff] }
 0x2b7   :  { %1571 = vmatpush.msrb.mxu2 %v166_v37 }
 0x2b9   :  { %1572 = vmatpush.msrb.mxu2 %v165_v13 }
 0x2bb   :  { %1573 = vmatpush.msrb.mxu2 %v164_v63 }
 0x2bd   :  { %1574 = vmatpush.msrb.mxu2 %v163_v16  ;;  %v208_v16 = vld [vmem:[%s5142_s3 + $0x570] sm:$0xff] }
 0x2bf   :  { %1575 = vmatpush.msrb.mxu2 %v162_v17  ;;  %v207_v17 = vld [vmem:[%s5142_s3 + $0x568] sm:$0xff] }
 0x2c5   :  { %v1375_v34 = vpop.f32.mrf.mxu2  ;;  %v1395_v36 = vpop.f32.mrf.mxu3 }
 0x2c6   :  { %v1376_v0 = vadd.f32 %v1375_v34, %v1356_v27  ;;  %v182_v27 = vld [vmem:[%s5142_s3 + $0x4a0] sm:$0xff]  ;;  %v181_v34 = vld [vmem:[%s5142_s3 + $0x498] sm:$0xff] }
 0x2c7   :  { %1591 = vmatpush.msrb.mxu3 %v182_v27  ;;  %v1688_v27 = vld [vmem:[%s5147_s5 + $0x40] sm:$0xff] }
 0x2c8   :  { %v1396_v24 = vadd.f32 %v1395_v36, %v1376_v0  ;;  %v180_v0 = vld [vmem:[%s5142_s3 + $0x490] sm:$0xff] }
 0x2c9   :  { %1592 = vmatpush.msrb.mxu3 %v181_v34  ;;  %v1686_v34 = vld [vmem:[%s5147_s5 + $0x30] sm:$0xff] }
 0x2ca   :  { %v1398_v35 = vmax.f32 %v1396_v24, 0.0  ;;  %v147_v24 = vld [vmem:[%s5142_s3 + $0x388] sm:$0xff] }
 0x2cb   :  { %1593 = vmatpush.msrb.mxu3 %v180_v0  ;;  %1554 = vmatpush.msra.mxu1 %v147_v24  ;;  %v2283_v0 = vld [vmem:[%s5143_s2 + $0x4] ss:$0 sm:$0xff]  ;;  %v1683_v24 = vld [vmem:[%s5147_s5 + $0x18] sm:$0xff] }
 0x2cc   :  { %v2274_v53 = vpack.i.bf16 %v972_v44, %v1398_v35  ;;  %v217_v44 = vld [vmem:[%s5142_s3 + $0x5b8] sm:$0xff]  ;;  %v216_v35 = vld [vmem:[%s5142_s3 + $0x5b0] sm:$0xff] }
 0x2cd   :  { %1594 = vmatpush.msrb.mxu3 %v179_v58  ;;  %1555 = vmatpush.msra.mxu1 %v146_v43 }
 0x2ce   :  { %2275 = vrot.lane.b32.xlu2 %v2274_v53, %s2351_s17  ;;  %1654 = vmatpush.msra.mxu2 %v217_v44  ;;  %v213_v53 = vld [vmem:[%s5142_s3 + $0x598] sm:$0xff]  ;;  %v1680_v44 = vld [vmem:[%s5147_s5] sm:$0xff] }
 0x2cf   :  { %1595 = vmatpush.msrb.mxu3 %v178_v28  ;;  %1737 = vmatpush.msrb.mxu1 %v1711_v15  ;;  %v1800_v15 = vld [vmem:[%s5148_s4 + $0x148] sm:$0xff] }
 0x2d0   :  { %1655 = vmatpush.msra.mxu2 %v216_v35  ;;  %v1681_v35 = vld [vmem:[%s5147_s5 + $0x8] sm:$0xff] }
 0x2d1   :  { %1717 = vmatpush.msra.mxu3 %v1710_v32  ;;  %v1799_v32 = vld [vmem:[%s5148_s4 + $0x140] sm:$0xff] }
 0x2d2   :  { %1656 = vmatpush.msra.mxu2 %v215_v12  ;;  %v1883_v12 = vld [vmem:[%s5148_s4 + $0x3e0] sm:$0xff] }
 0x2d4   :  { %1657 = vmatpush.msra.mxu2 %v214_v40  ;;  %v1884_v40 = vld [vmem:[%s5148_s4 + $0x3e8] sm:$0xff] }
 0x2d6   :  { %1658 = vmatpush.msra.mxu2 %v213_v53  ;;  %v1879_v53 = vld [vmem:[%s5148_s4 + $0x3c0] sm:$0xff] }
 0x2d8   :  { %1659 = vmatpush.msra.mxu2 %v212_v59  ;;  %v1880_v59 = vld [vmem:[%s5148_s4 + $0x3c8] sm:$0xff] }
 0x2da   :  { %1660 = vmatpush.msra.mxu2 %v211_v1  ;;  %v1875_v1 = vld [vmem:[%s5148_s4 + $0x3a0] sm:$0xff] }
 0x2dc   :  { %1661 = vmatpush.msra.mxu2 %v210_v2  ;;  %v1876_v2 = vld [vmem:[%s5148_s4 + $0x3a8] sm:$0xff] }
 0x2de   :  { %1662 = vmatpush.msra.mxu2 %v209_v54  ;;  %v1819_v54 = vld [vmem:[%s5148_s4 + $0x1e0] sm:$0xff] }
 0x2e0   :  { %1663 = vmatpush.msra.mxu2 %v208_v16  ;;  %v1867_v16 = vld [vmem:[%s5148_s4 + $0x360] sm:$0xff] }
 0x2e2   :  { %1664 = vmatpush.msra.mxu2 %v207_v17  ;;  %v1868_v17 = vld [vmem:[%s5148_s4 + $0x368] sm:$0xff] }
 0x2e4   :  { %1665 = vmatpush.msra.mxu2 %v206_v3  ;;  %v1807_v3 = vld [vmem:[%s5148_s4 + $0x180] sm:$0xff] }
 0x2e5   :  { %v1470_v26 = vpop.f32.mrf.mxu2  ;;  %v1490_v30 = vpop.f32.mrf.mxu3 }
 0x2e6   :  { %v1471_v33 = vadd.f32 %v1470_v26, %v1451_v55  ;;  %1666 = vmatpush.msra.mxu2 %v205_v60  ;;  %v1708_v26 = vld [vmem:[%s5147_s5 + $0xe0] sm:$0xff]  ;;  %v1808_v60 = vld [vmem:[%s5148_s4 + $0x188] sm:$0xff] }
 0x2e7   :  { %1718 = vmatpush.msra.mxu3 %v1708_v26 }
 0x2e8   :  { %v1491_v51 = vadd.f32 %v1490_v30, %v1471_v33  ;;  %1667 = vmatpush.msra.mxu2 %v204_v10  ;;  %v1709_v33 = vld [vmem:[%s5147_s5 + $0xe8] sm:$0xff]  ;;  %v1704_v30 = vld [vmem:[%s5147_s5 + $0xc0] sm:$0xff] }
 0x2e9   :  { %1738 = vmatpush.msrb.mxu1 %v1709_v33  ;;  %1719 = vmatpush.msra.mxu3 %v1706_v62  ;;  %v1863_v10 = vld [vmem:[%s5148_s4 + $0x340] sm:$0xff]  ;;  %v1856_v62 = vld [vmem:[%s5148_s4 + $0x308] sm:$0xff] }
 0x2ea   :  { %v1493_v25 = vmax.f32 %v1491_v51, 0.0  ;;  %1668 = vmatpush.msra.mxu2 %v203_v21  ;;  %v1705_v51 = vld [vmem:[%s5147_s5 + $0xc8] sm:$0xff]  ;;  %v1855_v33 = vld [vmem:[%s5148_s4 + $0x300] sm:$0xff] }
 0x2eb   :  { %1739 = vmatpush.msrb.mxu1 %v1707_v52  ;;  %1720 = vmatpush.msra.mxu3 %v1704_v30  ;;  %v1864_v21 = vld [vmem:[%s5148_s4 + $0x348] sm:$0xff]  ;;  %v1795_v30 = vld [vmem:[%s5148_s4 + $0x120] sm:$0xff] }
 0x2ec   :  { %2149 = vmatmul.msk.f32.vlgmr.msrb.gmra.mxu0 %vm517_vm1, %v1493_v25  ;;  %1669 = vmatpush.msra.mxu2 %v202_v20  ;;  %v1700_v25 = vld [vmem:[%s5147_s5 + $0xa0] sm:$0xff] }
 0x2ed   :  { %1740 = vmatpush.msrb.mxu1 %v1705_v51  ;;  %1721 = vmatpush.msra.mxu3 %v1702_v56  ;;  %v2281_v20 = vld [vmem:[%s5143_s2 + $0x2] ss:$0 sm:$0xff]  ;;  %v1796_v51 = vld [vmem:[%s5148_s4 + $0x128] sm:$0xff] }
 0x2ee   :  { %1896 = vmatpush.msrb.mxu0 %v1819_v54  ;;  %v1851_v56 = vld [vmem:[%s5148_s4 + $0x2e0] sm:$0xff]  ;;  %v1885_v54 = vld [vmem:[%s5148_s4 + $0x3f0] sm:$0xff] }
 0x2ef   :  { %1741 = vmatpush.msrb.mxu1 %v1703_v42  ;;  %1722 = vmatpush.msra.mxu3 %v1700_v25  ;;  %v1791_v25 = vld [vmem:[%s5148_s4 + $0x100] sm:$0xff] }
 0x2f1   :  { %1742 = vmatpush.msrb.mxu1 %v1701_v11  ;;  %1723 = vmatpush.msra.mxu3 %v1698_v48  ;;  %v1792_v11 = vld [vmem:[%s5148_s4 + $0x108] sm:$0xff]  ;;  %v1847_v48 = vld [vmem:[%s5148_s4 + $0x2c0] sm:$0xff] }
 0x2f3   :  { %1743 = vmatpush.msrb.mxu1 %v1699_v50  ;;  %1724 = vmatpush.msra.mxu3 %v1696_v5  ;;  %v1848_v50 = vld [vmem:[%s5148_s4 + $0x2c8] sm:$0xff]  ;;  %v1787_v5 = vld [vmem:[%s5148_s4 + $0xe0] sm:$0xff] }
 0x2f4   :  { %2150 = vmatmul.msk.f32.vlgmr.msra.gmra.mxu0 %vm1626_vm3, %v1621_v46  ;;  %v1693_v46 = vld [vmem:[%s5147_s5 + $0x68] sm:$0xff] }
 0x2f5   :  { %1744 = vmatpush.msrb.mxu1 %v1697_v9  ;;  %1725 = vmatpush.msra.mxu3 %v1694_v23  ;;  %v1788_v9 = vld [vmem:[%s5148_s4 + $0xe8] sm:$0xff] }
 0x2f7   :  { %v4438_v6 = vpop.f32.mrf.mxu0  ;;  %1745 = vmatpush.msrb.mxu1 %v1695_v14  ;;  %1726 = vmatpush.msra.mxu3 %v1692_v41  ;;  %v1843_v14 = vld [vmem:[%s5148_s4 + $0x2a0] sm:$0xff]  ;;  %v1844_v41 = vld [vmem:[%s5148_s4 + $0x2a8] sm:$0xff] }
 0x2f8   :  { %v1538_v52 = vadd.f32 %v2281_v20, %v4438_v6  ;;  %v1852_v6 = vld [vmem:[%s5148_s4 + $0x2e8] sm:$0xff]  ;;  %v1874_v20 = vld [vmem:[%s5148_s4 + $0x398] sm:$0xff] }
 0x2f9   :  { %1746 = vmatpush.msrb.mxu1 %v1693_v46  ;;  %1727 = vmatpush.msra.mxu3 %v1690_v47  ;;  %v1783_v47 = vld [vmem:[%s5148_s4 + $0xc0] sm:$0xff] }
 0x2fb   :  { %1747 = vmatpush.msrb.mxu1 %v1691_v61  ;;  %1728 = vmatpush.msra.mxu3 %v1688_v27  ;;  %v1784_v61 = vld [vmem:[%s5148_s4 + $0xc8] sm:$0xff]  ;;  %v1839_v27 = vld [vmem:[%s5148_s4 + $0x280] sm:$0xff] }
 0x2fd   :  { %1748 = vmatpush.msrb.mxu1 %v1689_v49  ;;  %1729 = vmatpush.msra.mxu3 %v1686_v34  ;;  %v1779_v34 = vld [vmem:[%s5148_s4 + $0xa0] sm:$0xff] }
 0x2fe   :  { %v1504_v36 = vpop.permute.xlu1 %1503 }
 0x2ff   :  { %v1512_v18 = vsel %vm517_vm1, %v1081_v38, %v1504_v36  ;;  %v1684_v38 = vld [vmem:[%s5147_s5 + $0x20] sm:$0xff]  ;;  %v1685_v36 = vld [vmem:[%s5147_s5 + $0x28] sm:$0xff]  ;;  %1749 = vmatpush.msrb.mxu1 %v1687_v57 }
 0x300   :  { %1576 = vmatmul.f32.vlgmr.msrb.gmra.mxu2 %v1512_v18  ;;  %v1682_v18 = vld [vmem:[%s5147_s5 + $0x10] sm:$0xff]  ;;  %1730 = vmatpush.msra.mxu3 %v1684_v38  ;;  %v1780_v57 = vld [vmem:[%s5148_s4 + $0xa8] sm:$0xff] }
 0x301   :  { %1750 = vmatpush.msrb.mxu1 %v1685_v36  ;;  %1916 = vmatpush.msrb.mxu2 %v1883_v12  ;;  %v1836_v38 = vld [vmem:[%s5148_s4 + $0x268] sm:$0xff]  ;;  %v1775_v36 = vld [vmem:[%s5148_s4 + $0x80] sm:$0xff] }
 0x302   :  { %1731 = vmatpush.msra.mxu3 %v1682_v18  ;;  %v1776_v18 = vld [vmem:[%s5148_s4 + $0x88] sm:$0xff]  ;;  %v1767_v12 = vld [vmem:[%s5148_s4 + $0x40] sm:$0xff] }
 0x303   :  { %1751 = vmatpush.msrb.mxu1 %v1683_v24  ;;  %1917 = vmatpush.msrb.mxu2 %v1879_v53  ;;  %v1831_v24 = vld [vmem:[%s5148_s4 + $0x240] sm:$0xff] }
 0x304   :  { %1732 = vmatpush.msra.mxu3 %v1680_v44  ;;  %v1772_v44 = vld [vmem:[%s5148_s4 + $0x68] sm:$0xff]  ;;  %v1823_v53 = vld [vmem:[%s5148_s4 + $0x200] sm:$0xff] }
 0x305   :  { %1752 = vmatpush.msrb.mxu1 %v1681_v35  ;;  %1918 = vmatpush.msrb.mxu2 %v1875_v1  ;;  %v1827_v35 = vld [vmem:[%s5148_s4 + $0x220] sm:$0xff] }
 0x328   :  { %v2276_v8 = vpop.permute.xlu2 %2275 }
 0x329   :  { %v2278_v37 = vunpack.i.h.bf16 %v2276_v8  ;;  %v2277_v13 = vunpack.i.l.bf16 %v2276_v8  ;;  %v1820_v8 = vld [vmem:[%s5148_s4 + $0x1e8] sm:$0xff] }
 0x32b   :  { %v1511_v63 = vsel %vm517_vm1, %v859_v4, %v2278_v37  ;;  %v1513_v7 = vsel %vm517_vm1, %v1289_v19, %v2277_v13  ;;  %v1815_v4 = vld [vmem:[%s5148_s4 + $0x1c0] sm:$0xff]  ;;  %v1872_v37 = vld [vmem:[%s5148_s4 + $0x388] sm:$0xff] }
 0x32c   :  { %1556 = vmatmul.f32.vlgmr.msra.gmra.mxu1 %v1511_v63  ;;  %1596 = vmatmul.f32.vlgmr.msrb.gmra.mxu3 %v1513_v7  ;;  %v1871_v19 = vld [vmem:[%s5148_s4 + $0x380] sm:$0xff]  ;;  %v1816_v13 = vld [vmem:[%s5148_s4 + $0x1c8] sm:$0xff] }
 0x32d   :  { %1956 = vmatpush.msra.mxu1 %v1884_v40  ;;  %1936 = vmatpush.msrb.mxu3 %v1820_v8  ;;  %v1811_v63 = vld [vmem:[%s5148_s4 + $0x1a0] sm:$0xff]  ;;  %v1812_v7 = vld [vmem:[%s5148_s4 + $0x1a8] sm:$0xff]  ;;  %v1886_v8 = vld [vmem:[%s5148_s4 + $0x3f8] sm:$0xff] }
 0x32e   :  { %1897 = vmatpush.msrb.mxu0 %v1815_v4  ;;  %1919 = vmatpush.msrb.mxu2 %v1871_v19  ;;  %v1768_v40 = vld [vmem:[%s5148_s4 + $0x48] sm:$0xff]  ;;  %v1763_v19 = vld [vmem:[%s5148_s4 + $0x20] sm:$0xff] }
 0x32f   :  { %1957 = vmatpush.msra.mxu1 %v1880_v59  ;;  %1937 = vmatpush.msrb.mxu3 %v1816_v13  ;;  %v1824_v59 = vld [vmem:[%s5148_s4 + $0x208] sm:$0xff]  ;;  %v1881_v13 = vld [vmem:[%s5148_s4 + $0x3d0] sm:$0xff] }
 0x330   :  { %1898 = vmatpush.msrb.mxu0 %v1811_v63  ;;  %1920 = vmatpush.msrb.mxu2 %v1867_v16  ;;  %v1882_v63 = vld [vmem:[%s5148_s4 + $0x3d8] sm:$0xff]  ;;  %v1760_v16 = vld [vmem:[%s5148_s4 + $0x8] sm:$0xff] }
 0x331   :  { %1958 = vmatpush.msra.mxu1 %v1876_v2  ;;  %1938 = vmatpush.msrb.mxu3 %v1812_v7  ;;  %v1759_v7 = vld [vmem:[%s5148_s4] sm:$0xff] }
 0x332   :  { %1899 = vmatpush.msrb.mxu0 %v1807_v3  ;;  %1921 = vmatpush.msrb.mxu2 %v1863_v10  ;;  %v1878_v3 = vld [vmem:[%s5148_s4 + $0x3b8] sm:$0xff] }
 0x333   :  { %1959 = vmatpush.msra.mxu1 %v1872_v37  ;;  %1939 = vmatpush.msrb.mxu3 %v1808_v60  ;;  %v1764_v37 = vld [vmem:[%s5148_s4 + $0x28] sm:$0xff]  ;;  %v1821_v60 = vld [vmem:[%s5148_s4 + $0x1f0] sm:$0xff]  ;;  %v1822_v10 = vld [vmem:[%s5148_s4 + $0x1f8] sm:$0xff] }
 0x335   :  { %1960 = vmatpush.msra.mxu1 %v1868_v17  ;;  %v1877_v17 = vld [vmem:[%s5148_s4 + $0x3b0] sm:$0xff] }
 0x337   :  { %1961 = vmatpush.msra.mxu1 %v1864_v21  ;;  %v1873_v21 = vld [vmem:[%s5148_s4 + $0x390] sm:$0xff] }
 0x369   :  { %v4440_v45 = vpop.f32.mrf.mxu0 }
 0x371   :  { %v1647_v31 = vpop.f32.mrf.mxu0 }
 0x372   :  { %v1648_v22 = vadd.f32 %v2282_v39, %v1647_v31  ;;  %v1803_v39 = vld [vmem:[%s5148_s4 + $0x160] sm:$0xff]  ;;  %v1804_v31 = vld [vmem:[%s5148_s4 + $0x168] sm:$0xff] }
 0x373   :  { %1900 = vmatpush.msrb.mxu0 %v1803_v39  ;;  %1940 = vmatpush.msrb.mxu3 %v1804_v31  ;;  %v1817_v39 = vld [vmem:[%s5148_s4 + $0x1d0] sm:$0xff]  ;;  %v1818_v31 = vld [vmem:[%s5148_s4 + $0x1d8] sm:$0xff] }
 0x374   :  { %v1650_v55 = vmax.f32 %v1648_v22, 0.0  ;;  %v1859_v22 = vld [vmem:[%s5148_s4 + $0x320] sm:$0xff] }
 0x375   :  { %1922 = vmatpush.msrb.mxu2 %v1859_v22  ;;  %1901 = vmatpush.msrb.mxu0 %v1799_v32  ;;  %v1869_v22 = vld [vmem:[%s5148_s4 + $0x370] sm:$0xff] }
 0x376   :  { %1670 = vmatmul.f32.vlgmr.msra.gmra.mxu2 %v1650_v55  ;;  %v1860_v55 = vld [vmem:[%s5148_s4 + $0x328] sm:$0xff]  ;;  %1941 = vmatpush.msrb.mxu3 %v1800_v15  ;;  %v1813_v32 = vld [vmem:[%s5148_s4 + $0x1b0] sm:$0xff]  ;;  %v1814_v15 = vld [vmem:[%s5148_s4 + $0x1b8] sm:$0xff] }
 0x377   :  { %1962 = vmatpush.msra.mxu1 %v1860_v55  ;;  %1923 = vmatpush.msrb.mxu2 %v1855_v33  ;;  %v1870_v55 = vld [vmem:[%s5148_s4 + $0x378] sm:$0xff] }
 0x378   :  { %1902 = vmatpush.msrb.mxu0 %v1795_v30  ;;  %1942 = vmatpush.msrb.mxu3 %v1796_v51  ;;  %v1866_v33 = vld [vmem:[%s5148_s4 + $0x358] sm:$0xff]  ;;  %v1861_v30 = vld [vmem:[%s5148_s4 + $0x330] sm:$0xff] }
 0x379   :  { %1963 = vmatpush.msra.mxu1 %v1856_v62  ;;  %1924 = vmatpush.msrb.mxu2 %v1851_v56  ;;  %v1809_v62 = vld [vmem:[%s5148_s4 + $0x190] sm:$0xff]  ;;  %v1862_v51 = vld [vmem:[%s5148_s4 + $0x338] sm:$0xff] }
 0x37a   :  { %1903 = vmatpush.msrb.mxu0 %v1791_v25  ;;  %1943 = vmatpush.msrb.mxu3 %v1792_v11  ;;  %v1805_v56 = vld [vmem:[%s5148_s4 + $0x170] sm:$0xff]  ;;  %v1858_v25 = vld [vmem:[%s5148_s4 + $0x318] sm:$0xff] }
 0x37b   :  { %1964 = vmatpush.msra.mxu1 %v1852_v6  ;;  %1925 = vmatpush.msrb.mxu2 %v1847_v48  ;;  %v1806_v6 = vld [vmem:[%s5148_s4 + $0x178] sm:$0xff]  ;;  %v1801_v11 = vld [vmem:[%s5148_s4 + $0x150] sm:$0xff] }
 0x37c   :  { %1904 = vmatpush.msrb.mxu0 %v1787_v5  ;;  %1944 = vmatpush.msrb.mxu3 %v1788_v9  ;;  %v1802_v48 = vld [vmem:[%s5148_s4 + $0x158] sm:$0xff]  ;;  %v1797_v9 = vld [vmem:[%s5148_s4 + $0x130] sm:$0xff] }
 0x37d   :  { %1965 = vmatpush.msra.mxu1 %v1848_v50  ;;  %1926 = vmatpush.msrb.mxu2 %v1843_v14  ;;  %v1853_v50 = vld [vmem:[%s5148_s4 + $0x2f0] sm:$0xff]  ;;  %v1854_v5 = vld [vmem:[%s5148_s4 + $0x2f8] sm:$0xff] }
 0x37e   :  { %1905 = vmatpush.msrb.mxu0 %v1783_v47  ;;  %1945 = vmatpush.msrb.mxu3 %v1784_v61  ;;  %v1798_v14 = vld [vmem:[%s5148_s4 + $0x138] sm:$0xff]  ;;  %v1845_v47 = vld [vmem:[%s5148_s4 + $0x2b0] sm:$0xff] }
 0x37f   :  { %1966 = vmatpush.msra.mxu1 %v1844_v41  ;;  %1927 = vmatpush.msrb.mxu2 %v1839_v27  ;;  %v1850_v41 = vld [vmem:[%s5148_s4 + $0x2d8] sm:$0xff] }
 0x380   :  { %1906 = vmatpush.msrb.mxu0 %v1779_v34  ;;  %1946 = vmatpush.msrb.mxu3 %v1780_v57  ;;  %v1794_v61 = vld [vmem:[%s5148_s4 + $0x118] sm:$0xff] }
 0x381   :  { %v1846_v27 = vld [vmem:[%s5148_s4 + $0x2b8] sm:$0xff] }
 0x382   :  { %1907 = vmatpush.msrb.mxu0 %v1775_v36  ;;  %1947 = vmatpush.msrb.mxu3 %v1776_v18  ;;  %v1790_v34 = vld [vmem:[%s5148_s4 + $0xf8] sm:$0xff] }
 0x383   :  { %v4511_v29 = vpop.f32.mrf.mxu2  ;;  %v1842_v57 = vld [vmem:[%s5148_s4 + $0x298] sm:$0xff] }
 0x384   :  { %1948 = vmatpush.msrb.mxu3 %v1772_v44  ;;  %v1786_v36 = vld [vmem:[%s5148_s4 + $0xd8] sm:$0xff]  ;;  %v1777_v44 = vld [vmem:[%s5148_s4 + $0x90] sm:$0xff] }
 0x385   :  { %v1838_v18 = vld [vmem:[%s5148_s4 + $0x278] sm:$0xff] }
 0x386   :  { %1949 = vmatpush.msrb.mxu3 %v1768_v40  ;;  %v1773_v40 = vld [vmem:[%s5148_s4 + $0x70] sm:$0xff] }
 0x388   :  { %1950 = vmatpush.msrb.mxu3 %v1764_v37  ;;  %v1762_v37 = vld [vmem:[%s5148_s4 + $0x18] sm:$0xff] }
 0x38a   :  { %1951 = vmatpush.msrb.mxu3 %v1760_v16 }
 0x3a9   :  { %v1557_v26 = vpop.f32.mrf.mxu1 }
 0x3aa   :  { %v1558_v42 = vadd.f32 %v1557_v26, %v1538_v52  ;;  %v1865_v26 = vld [vmem:[%s5148_s4 + $0x350] sm:$0xff]  ;;  %v1810_v52 = vld [vmem:[%s5148_s4 + $0x198] sm:$0xff] }
 0x3ac   :  { %v1578_v46 = vadd.f32 %v4511_v29, %v1558_v42  ;;  %v1840_v29 = vld [vmem:[%s5148_s4 + $0x288] sm:$0xff]  ;;  %v1857_v42 = vld [vmem:[%s5148_s4 + $0x310] sm:$0xff] }
 0x3ad   :  { %1967 = vmatpush.msra.mxu1 %v1840_v29  ;;  %v1789_v29 = vld [vmem:[%s5148_s4 + $0xf0] sm:$0xff] }
 0x3af   :  { %v1597_v23 = vpop.f32.mrf.mxu3  ;;  %1968 = vmatpush.msra.mxu1 %v1836_v38  ;;  %v1837_v38 = vld [vmem:[%s5148_s4 + $0x270] sm:$0xff] }
 0x3b0   :  { %v1598_v49 = vadd.f32 %v1597_v23, %v1578_v46  ;;  %v1849_v23 = vld [vmem:[%s5148_s4 + $0x2d0] sm:$0xff] }
 0x3b1   :  { %v1793_v46 = vld [vmem:[%s5148_s4 + $0x110] sm:$0xff] }
 0x3f9   :  { %v1671_v58 = vpop.f32.mrf.mxu2 }
 0x3fa   :  { %v1672_v43 = vadd.f32 %v2283_v0, %v1671_v58  ;;  %v1835_v0 = vld [vmem:[%s5148_s4 + $0x260] sm:$0xff]  ;;  %v1832_v58 = vld [vmem:[%s5148_s4 + $0x248] sm:$0xff] }
 0x3fb   :  { %1928 = vmatpush.msrb.mxu2 %v1835_v0  ;;  %1969 = vmatpush.msra.mxu1 %v1832_v58  ;;  %v1785_v0 = vld [vmem:[%s5148_s4 + $0xd0] sm:$0xff] }
 0x3fc   :  { %v1674_v28 = vmax.f32 %v1672_v43, 0.0  ;;  %v1618_v43 = vadd.f32 %v4440_v45, %v1598_v49  ;;  %v1828_v45 = vld [vmem:[%s5148_s4 + $0x228] sm:$0xff]  ;;  %v1841_v49 = vld [vmem:[%s5148_s4 + $0x290] sm:$0xff] }
 0x3fd   :  { %1929 = vmatpush.msrb.mxu2 %v1831_v24  ;;  %1970 = vmatpush.msra.mxu1 %v1828_v45  ;;  %v1781_v24 = vld [vmem:[%s5148_s4 + $0xb0] sm:$0xff]  ;;  %v1778_v45 = vld [vmem:[%s5148_s4 + $0x98] sm:$0xff] }
 0x3fe   :  { %1676 = vrot.lane.b32.xlu0 %v1674_v28, %s2351_s17  ;;  %v1771_v28 = vld [vmem:[%s5148_s4 + $0x60] sm:$0xff]  ;;  %v1620_v1 = vmax.f32 %v1618_v43, 0.0  ;;  %v1833_v58 = vld [vmem:[%s5148_s4 + $0x250] sm:$0xff]  ;;  %v1782_v43 = vld [vmem:[%s5148_s4 + $0xb8] sm:$0xff] }
 0x3ff   :  { %1908 = vmatpush.msrb.mxu0 %v1771_v28  ;;  %1930 = vmatpush.msrb.mxu2 %v1827_v35  ;;  %v1834_v28 = vld [vmem:[%s5148_s4 + $0x258] sm:$0xff]  ;;  %v1829_v35 = vld [vmem:[%s5148_s4 + $0x230] sm:$0xff] }
 0x400   :  { %1971 = vmatpush.msra.mxu1 %v1824_v59  ;;  %v1774_v59 = vld [vmem:[%s5148_s4 + $0x78] sm:$0xff] }
 0x401   :  { %1909 = vmatpush.msrb.mxu0 %v1767_v12  ;;  %1931 = vmatpush.msrb.mxu2 %v1823_v53  ;;  %v1830_v12 = vld [vmem:[%s5148_s4 + $0x238] sm:$0xff]  ;;  %v1825_v53 = vld [vmem:[%s5148_s4 + $0x210] sm:$0xff] }
 0x403   :  { %1996 = vmatpush.msra.mxu2 %v1885_v54  ;;  %1910 = vmatpush.msrb.mxu0 %v1763_v19  ;;  %v1770_v54 = vld [vmem:[%s5148_s4 + $0x58] sm:$0xff]  ;;  %v1761_v19 = vld [vmem:[%s5148_s4 + $0x10] sm:$0xff] }
 0x405   :  { %1997 = vmatpush.msra.mxu2 %v1881_v13  ;;  %1911 = vmatpush.msrb.mxu0 %v1759_v7  ;;  %v31_v13 = vld [vmem:[%s5143_s2 + $0x5] sm:$0x3] }
 0x407   :  { %1998 = vmatpush.msra.mxu2 %v1877_v17  ;;  %1976 = vmatpush.msra.mxu0 %v1821_v60  ;;  %v249_v60 = vld [vmem:[%s5142_s3 + $0x6b8] sm:$0xff] }
 0x409   :  { %1999 = vmatpush.msra.mxu2 %v1873_v21  ;;  %1977 = vmatpush.msra.mxu0 %v1817_v39  ;;  %v248_v21 = vld [vmem:[%s5142_s3 + $0x6b0] sm:$0xff] }
 0x40b   :  { %2000 = vmatpush.msra.mxu2 %v1869_v22  ;;  %1978 = vmatpush.msra.mxu0 %v1813_v32  ;;  %v247_v22 = vld [vmem:[%s5142_s3 + $0x6a8] sm:$0xff]  ;;  %v233_v32 = vld [vmem:[%s5142_s3 + $0x638] sm:$0xff] }
 0x40d   :  { %2001 = vmatpush.msra.mxu2 %v1865_v26  ;;  %1979 = vmatpush.msra.mxu0 %v1809_v62  ;;  %v232_v26 = vld [vmem:[%s5142_s3 + $0x630] sm:$0xff]  ;;  %v246_v62 = vld [vmem:[%s5142_s3 + $0x6a0] sm:$0xff] }
 0x40f   :  { %2002 = vmatpush.msra.mxu2 %v1861_v30  ;;  %1980 = vmatpush.msra.mxu0 %v1805_v56  ;;  %v263_v30 = vld [vmem:[%s5142_s3 + $0x728] sm:$0xff]  ;;  %v230_v56 = vld [vmem:[%s5142_s3 + $0x620] sm:$0xff] }
 0x411   :  { %2003 = vmatpush.msra.mxu2 %v1857_v42  ;;  %1981 = vmatpush.msra.mxu0 %v1801_v11  ;;  %v229_v42 = vld [vmem:[%s5142_s3 + $0x618] sm:$0xff] }
 0x412   :  { %v261_v11 = vld [vmem:[%s5142_s3 + $0x718] sm:$0xff] }
 0x413   :  { %2004 = vmatpush.msra.mxu2 %v1853_v50  ;;  %1982 = vmatpush.msra.mxu0 %v1797_v9  ;;  %v227_v50 = vld [vmem:[%s5142_s3 + $0x608] sm:$0xff]  ;;  %v225_v9 = vld [vmem:[%s5142_s3 + $0x5f8] sm:$0xff] }
 0x415   :  { %2005 = vmatpush.msra.mxu2 %v1849_v23  ;;  %1983 = vmatpush.msra.mxu0 %v1793_v46  ;;  %v224_v23 = vld [vmem:[%s5142_s3 + $0x5f0] sm:$0xff]  ;;  %v279_v46 = vld [vmem:[%s5142_s3 + $0x7a8] sm:$0xff] }
 0x417   :  { %2006 = vmatpush.msra.mxu2 %v1845_v47  ;;  %1984 = vmatpush.msra.mxu0 %v1789_v29  ;;  %v223_v47 = vld [vmem:[%s5142_s3 + $0x5e8] sm:$0xff]  ;;  %v278_v29 = vld [vmem:[%s5142_s3 + $0x7a0] sm:$0xff] }
 0x419   :  { %2007 = vmatpush.msra.mxu2 %v1841_v49  ;;  %1985 = vmatpush.msra.mxu0 %v1785_v0  ;;  %v222_v49 = vld [vmem:[%s5142_s3 + $0x5e0] sm:$0xff]  ;;  %v277_v0 = vld [vmem:[%s5142_s3 + $0x798] sm:$0xff] }
 0x41b   :  { %2008 = vmatpush.msra.mxu2 %v1837_v38  ;;  %1986 = vmatpush.msra.mxu0 %v1781_v24  ;;  %v221_v38 = vld [vmem:[%s5142_s3 + $0x5d8] sm:$0xff]  ;;  %v276_v24 = vld [vmem:[%s5142_s3 + $0x790] sm:$0xff] }
 0x41d   :  { %2009 = vmatpush.msra.mxu2 %v1833_v58  ;;  %1987 = vmatpush.msra.mxu0 %v1777_v44  ;;  %v220_v58 = vld [vmem:[%s5142_s3 + $0x5d0] sm:$0xff]  ;;  %v275_v44 = vld [vmem:[%s5142_s3 + $0x788] sm:$0xff] }
 0x41f   :  { %2010 = vmatpush.msra.mxu2 %v1829_v35  ;;  %1988 = vmatpush.msra.mxu0 %v1773_v40  ;;  %v219_v35 = vld [vmem:[%s5142_s3 + $0x5c8] sm:$0xff]  ;;  %v274_v40 = vld [vmem:[%s5142_s3 + $0x780] sm:$0xff] }
 0x421   :  { %2011 = vmatpush.msra.mxu2 %v1825_v53  ;;  %v218_v53 = vld [vmem:[%s5142_s3 + $0x5c0] sm:$0xff] }
 0x470   :  { %v1677_v2 = vpop.permute.xlu0 %1676 }
 0x471   :  { %v1679_v4 = vsel %vm517_vm1, %v1620_v1, %v1677_v2  ;;  %v1826_v1 = vld [vmem:[%s5148_s4 + $0x218] sm:$0xff]  ;;  %v1769_v2 = vld [vmem:[%s5148_s4 + $0x50] sm:$0xff] }
 0x472   :  { %1733 = vmatmul.f32.vlgmr.msra.gmra.mxu3 %v1679_v4  ;;  %1753 = vmatmul.f32.vlgmr.msrb.gmra.mxu1 %v1679_v4  ;;  %v1766_v4 = vld [vmem:[%s5148_s4 + $0x38] sm:$0xff] }
 0x473   :  { %2036 = vmatpush.msrb.mxu1 %v1886_v8  ;;  %2016 = vmatpush.msra.mxu3 %v1822_v10  ;;  %v1765_v8 = vld [vmem:[%s5148_s4 + $0x30] sm:$0xff]  ;;  %v281_v10 = vld [vmem:[%s5142_s3 + $0x7b8] sm:$0xff] }
 0x474   :  { %1989 = vmatpush.msra.mxu0 %v1769_v2  ;;  %v273_v2 = vld [vmem:[%s5142_s3 + $0x778] sm:$0xff] }
 0x475   :  { %2037 = vmatpush.msrb.mxu1 %v1882_v63  ;;  %2017 = vmatpush.msra.mxu3 %v1818_v31  ;;  %v1714_v63 = vperm.slane %v31_v13, 1 }
 0x476   :  { %1990 = vmatpush.msra.mxu0 %v1765_v8  ;;  %v253_v8 = vld [vmem:[%s5142_s3 + $0x6d8] sm:$0xff] }
 0x477   :  { %2038 = vmatpush.msrb.mxu1 %v1878_v3  ;;  %2018 = vmatpush.msra.mxu3 %v1814_v15  ;;  %v1713_v3 = vperm.slane %v31_v13, 0  ;;  %v265_v15 = vld [vmem:[%s5142_s3 + $0x738] sm:$0xff]  ;;  %v271_v13 = vld [vmem:[%s5142_s3 + $0x768] sm:$0xff] }
 0x478   :  { %1991 = vmatpush.msra.mxu0 %v1761_v19  ;;  %v235_v19 = vld [vmem:[%s5142_s3 + $0x648] sm:$0xff] }
 0x479   :  { %2039 = vmatpush.msrb.mxu1 %v1874_v20  ;;  %2019 = vmatpush.msra.mxu3 %v1810_v52  ;;  %v280_v20 = vld [vmem:[%s5142_s3 + $0x7b0] sm:$0xff]  ;;  %v231_v52 = vld [vmem:[%s5142_s3 + $0x628] sm:$0xff] }
 0x47b   :  { %2040 = vmatpush.msrb.mxu1 %v1870_v55  ;;  %2020 = vmatpush.msra.mxu3 %v1806_v6  ;;  %v262_v6 = vld [vmem:[%s5142_s3 + $0x720] sm:$0xff] }
 0x47d   :  { %2041 = vmatpush.msrb.mxu1 %v1866_v33  ;;  %2021 = vmatpush.msra.mxu3 %v1802_v48  ;;  %v264_v33 = vld [vmem:[%s5142_s3 + $0x730] sm:$0xff] }
 0x47e   :  { %v228_v48 = vld [vmem:[%s5142_s3 + $0x610] sm:$0xff] }
 0x47f   :  { %2042 = vmatpush.msrb.mxu1 %v1862_v51  ;;  %2022 = vmatpush.msra.mxu3 %v1798_v14  ;;  %v245_v51 = vld [vmem:[%s5142_s3 + $0x698] sm:$0xff]  ;;  %v243_v14 = vld [vmem:[%s5142_s3 + $0x688] sm:$0xff] }
 0x481   :  { %2043 = vmatpush.msrb.mxu1 %v1858_v25  ;;  %2023 = vmatpush.msra.mxu3 %v1794_v61  ;;  %v244_v25 = vld [vmem:[%s5142_s3 + $0x690] sm:$0xff]  ;;  %v242_v61 = vld [vmem:[%s5142_s3 + $0x680] sm:$0xff] }
 0x483   :  { %2044 = vmatpush.msrb.mxu1 %v1854_v5  ;;  %2024 = vmatpush.msra.mxu3 %v1790_v34  ;;  %v226_v5 = vld [vmem:[%s5142_s3 + $0x600] sm:$0xff]  ;;  %v241_v34 = vld [vmem:[%s5142_s3 + $0x678] sm:$0xff] }
 0x485   :  { %2045 = vmatpush.msrb.mxu1 %v1850_v41  ;;  %2025 = vmatpush.msra.mxu3 %v1786_v36  ;;  %v260_v41 = vld [vmem:[%s5142_s3 + $0x710] sm:$0xff] }
 0x486   :  { %v240_v36 = vld [vmem:[%s5142_s3 + $0x670] sm:$0xff] }
 0x487   :  { %2046 = vmatpush.msrb.mxu1 %v1846_v27  ;;  %2026 = vmatpush.msra.mxu3 %v1782_v43  ;;  %v259_v27 = vld [vmem:[%s5142_s3 + $0x708] sm:$0xff] }
 0x488   :  { %v239_v43 = vld [vmem:[%s5142_s3 + $0x668] sm:$0xff] }
 0x489   :  { %2047 = vmatpush.msrb.mxu1 %v1842_v57  ;;  %2027 = vmatpush.msra.mxu3 %v1778_v45  ;;  %v258_v57 = vld [vmem:[%s5142_s3 + $0x700] sm:$0xff] }
 0x48a   :  { %v238_v45 = vld [vmem:[%s5142_s3 + $0x660] sm:$0xff] }
 0x48b   :  { %2048 = vmatpush.msrb.mxu1 %v1838_v18  ;;  %2028 = vmatpush.msra.mxu3 %v1774_v59  ;;  %v257_v18 = vld [vmem:[%s5142_s3 + $0x6f8] sm:$0xff] }
 0x48c   :  { %v237_v59 = vld [vmem:[%s5142_s3 + $0x658] sm:$0xff] }
 0x48d   :  { %2049 = vmatpush.msrb.mxu1 %v1834_v28  ;;  %2029 = vmatpush.msra.mxu3 %v1770_v54  ;;  %v256_v28 = vld [vmem:[%s5142_s3 + $0x6f0] sm:$0xff] }
 0x48e   :  { %v236_v54 = vld [vmem:[%s5142_s3 + $0x650] sm:$0xff] }
 0x48f   :  { %2050 = vmatpush.msrb.mxu1 %v1830_v12  ;;  %2030 = vmatpush.msra.mxu3 %v1766_v4  ;;  %v255_v12 = vld [vmem:[%s5142_s3 + $0x6e8] sm:$0xff]  ;;  %v272_v4 = vld [vmem:[%s5142_s3 + $0x770] sm:$0xff] }
 0x491   :  { %2051 = vmatpush.msrb.mxu1 %v1826_v1  ;;  %2031 = vmatpush.msra.mxu3 %v1762_v37  ;;  %v254_v1 = vld [vmem:[%s5142_s3 + $0x6e0] sm:$0xff]  ;;  %v252_v37 = vld [vmem:[%s5142_s3 + $0x6d0] sm:$0xff] }
 0x4ef   :  { %v1754_v7 = vpop.f32.mrf.mxu1 }
 0x4f0   :  { %v1755_v16 = vadd.f32 %v1754_v7, %v1714_v63  ;;  %v234_v63 = vld [vmem:[%s5142_s3 + $0x640] sm:$0xff]  ;;  %v251_v7 = vld [vmem:[%s5142_s3 + $0x6c8] sm:$0xff] }
 0x4f2   :  { %v1758_v17 = vmax.f32 %v1755_v16, 0.0  ;;  %v270_v16 = vld [vmem:[%s5142_s3 + $0x760] sm:$0xff] }
 0x4f4   :  { %1932 = vmatmul.f32.vlgmr.msrb.gmra.mxu2 %v1758_v17  ;;  %1972 = vmatmul.f32.vlgmr.msra.gmra.mxu1 %v1758_v17 }
 0x4f5   :  { %v1734_v39 = vpop.f32.mrf.mxu3  ;;  %2083 = vmatpush.msrb.mxu2 %v249_v60  ;;  %2123 = vmatpush.msra.mxu1 %v281_v10  ;;  %v268_v60 = vld [vmem:[%s5142_s3 + $0x750] sm:$0xff]  ;;  %v267_v10 = vld [vmem:[%s5142_s3 + $0x748] sm:$0xff] }
 0x4f6   :  { %v1735_v31 = vadd.f32 %v1734_v39, %v1713_v3  ;;  %v269_v3 = vld [vmem:[%s5142_s3 + $0x758] sm:$0xff] }
 0x4f7   :  { %2084 = vmatpush.msrb.mxu2 %v248_v21  ;;  %2124 = vmatpush.msra.mxu1 %v280_v20  ;;  %v266_v21 = vld [vmem:[%s5142_s3 + $0x740] sm:$0xff] }
 0x4f8   :  { %v1757_v55 = vmax.f32 %v1735_v31, 0.0  ;;  %v32_v20 = vld [vmem:[%s5143_s2 + $0x7] sm:$0xf] }
 0x4f9   :  { %2085 = vmatpush.msrb.mxu2 %v247_v22  ;;  %2125 = vmatpush.msra.mxu1 %v279_v46  ;;  %v1888_v39 = vperm.slane %v32_v20, 0  ;;  %v2284_v46 = vld [vmem:[%s5143_s2 + $0xb] ss:$0 sm:$0xff] }
 0x4fa   :  { %1912 = vmatmul.f32.vlgmr.msrb.gmra.mxu0 %v1757_v55  ;;  %1952 = vmatmul.f32.vlgmr.msrb.gmra.mxu3 %v1757_v55 }
 0x4fb   :  { %2063 = vmatpush.msrb.mxu0 %v233_v32  ;;  %2103 = vmatpush.msrb.mxu3 %v265_v15  ;;  %v1889_v15 = vperm.slane %v32_v20, 1 }
 0x4fc   :  { %2012 = vmatmul.f32.vlgmr.msra.gmra.mxu2 %v1758_v17  ;;  %2052 = vmatmul.f32.vlgmr.msrb.gmra.mxu1 %v1758_v17  ;;  %v250_v17 = vld [vmem:[%s5142_s3 + $0x6c0] sm:$0xff] }
 0x4fd   :  { %2064 = vmatpush.msrb.mxu0 %v232_v26  ;;  %2104 = vmatpush.msrb.mxu3 %v264_v33  ;;  %v1890_v33 = vperm.slane %v32_v20, 2 }
 0x4fe   :  { %2086 = vmatpush.msrb.mxu2 %v246_v62  ;;  %2126 = vmatpush.msra.mxu1 %v278_v29 }
 0x4ff   :  { %2065 = vmatpush.msrb.mxu0 %v231_v52  ;;  %2105 = vmatpush.msrb.mxu3 %v263_v30 }
 0x500   :  { %2087 = vmatpush.msrb.mxu2 %v245_v51  ;;  %2127 = vmatpush.msra.mxu1 %v277_v0 }
 0x501   :  { %2066 = vmatpush.msrb.mxu0 %v230_v56  ;;  %2106 = vmatpush.msrb.mxu3 %v262_v6 }
 0x502   :  { %1992 = vmatmul.f32.vlgmr.msra.gmra.mxu0 %v1757_v55  ;;  %2032 = vmatmul.f32.vlgmr.msra.gmra.mxu3 %v1757_v55 }
 0x503   :  { %2067 = vmatpush.msrb.mxu0 %v229_v42  ;;  %2088 = vmatpush.msrb.mxu2 %v244_v25 }
 0x504   :  { %2107 = vmatpush.msrb.mxu3 %v261_v11  ;;  %2128 = vmatpush.msra.mxu1 %v276_v24 }
 0x505   :  { %2068 = vmatpush.msrb.mxu0 %v228_v48  ;;  %2089 = vmatpush.msrb.mxu2 %v243_v14  ;;  %v1891_v48 = vperm.slane %v32_v20, 3 }
 0x506   :  { %2108 = vmatpush.msrb.mxu3 %v260_v41  ;;  %2129 = vmatpush.msra.mxu1 %v275_v44 }
 0x507   :  { %2069 = vmatpush.msrb.mxu0 %v227_v50  ;;  %2090 = vmatpush.msrb.mxu2 %v242_v61 }
 0x508   :  { %2109 = vmatpush.msrb.mxu3 %v259_v27  ;;  %2130 = vmatpush.msra.mxu1 %v274_v40 }
 0x509   :  { %2070 = vmatpush.msrb.mxu0 %v226_v5  ;;  %2091 = vmatpush.msrb.mxu2 %v241_v34 }
 0x50a   :  { %2110 = vmatpush.msrb.mxu3 %v258_v57  ;;  %2131 = vmatpush.msra.mxu1 %v273_v2 }
 0x50b   :  { %2071 = vmatpush.msrb.mxu0 %v225_v9  ;;  %2092 = vmatpush.msrb.mxu2 %v240_v36 }
 0x50c   :  { %2111 = vmatpush.msrb.mxu3 %v257_v18  ;;  %2132 = vmatpush.msra.mxu1 %v272_v4 }
 0x50d   :  { %2072 = vmatpush.msrb.mxu0 %v224_v23  ;;  %2093 = vmatpush.msrb.mxu2 %v239_v43 }
 0x50e   :  { %2112 = vmatpush.msrb.mxu3 %v256_v28  ;;  %2133 = vmatpush.msra.mxu1 %v271_v13 }
 0x50f   :  { %2073 = vmatpush.msrb.mxu0 %v223_v47  ;;  %2094 = vmatpush.msrb.mxu2 %v238_v45 }
 0x510   :  { %2113 = vmatpush.msrb.mxu3 %v255_v12  ;;  %2134 = vmatpush.msra.mxu1 %v270_v16 }
 0x511   :  { %2074 = vmatpush.msrb.mxu0 %v222_v49  ;;  %2095 = vmatpush.msrb.mxu2 %v237_v59 }
 0x512   :  { %2114 = vmatpush.msrb.mxu3 %v254_v1  ;;  %2135 = vmatpush.msra.mxu1 %v269_v3 }
 0x513   :  { %2075 = vmatpush.msrb.mxu0 %v221_v38  ;;  %2096 = vmatpush.msrb.mxu2 %v236_v54 }
 0x514   :  { %2115 = vmatpush.msrb.mxu3 %v253_v8  ;;  %2136 = vmatpush.msra.mxu1 %v268_v60 }
 0x515   :  { %2076 = vmatpush.msrb.mxu0 %v220_v58  ;;  %2097 = vmatpush.msrb.mxu2 %v235_v19 }
 0x516   :  { %2116 = vmatpush.msrb.mxu3 %v252_v37  ;;  %2137 = vmatpush.msra.mxu1 %v267_v10 }
 0x517   :  { %2077 = vmatpush.msrb.mxu0 %v219_v35  ;;  %2098 = vmatpush.msrb.mxu2 %v234_v63 }
 0x518   :  { %2117 = vmatpush.msrb.mxu3 %v251_v7  ;;  %2138 = vmatpush.msra.mxu1 %v266_v21 }
 0x519   :  { %2078 = vmatpush.msrb.mxu0 %v218_v53 }
 0x51a   :  { %2118 = vmatpush.msrb.mxu3 %v250_v17 }
 0x571   :  { %v1973_v62 = vpop.f32.mrf.mxu1 }
 0x577   :  { %v1913_v31 = vpop.f32.mrf.mxu0  ;;  %v1933_v22 = vpop.f32.mrf.mxu2 }
 0x578   :  { %v1914_v55 = vadd.f32 %v1913_v31, %v1888_v39 }
 0x579   :  { %v2053_v23 = vpop.f32.mrf.mxu1 }
 0x57a   :  { %v1934_v32 = vadd.f32 %v1933_v22, %v1914_v55 }
 0x57c   :  { %v2056_v26 = vmax.f32 %v1934_v32, 0.0 }
 0x57d   :  { %v1953_v52 = vpop.f32.mrf.mxu3 }
 0x57e   :  { %v1954_v30 = vadd.f32 %v1953_v52, %v1889_v15  ;;  %2079 = vmatmul.f32.vlgmr.msrb.gmra.mxu0 %v2056_v26 }
 0x57f   :  { %v1993_v51 = vpop.f32.mrf.mxu0  ;;  %v2013_v42 = vpop.f32.mrf.mxu2 }
 0x580   :  { %v1974_v56 = vadd.f32 %v1973_v62, %v1954_v30  ;;  %v1994_v6 = vadd.f32 %v1993_v51, %v1890_v33 }
 0x582   :  { %v2057_v25 = vmax.f32 %v1974_v56, 0.0  ;;  %v2014_v11 = vadd.f32 %v2013_v42, %v1994_v6 }
 0x584   :  { %v2058_v50 = vmax.f32 %v2014_v11, 0.0  ;;  %2099 = vmatmul.f32.vlgmr.msrb.gmra.mxu2 %v2057_v25 }
 0x585   :  { %v2033_v5 = vpop.f32.mrf.mxu3 }
 0x586   :  { %v2034_v9 = vadd.f32 %v2033_v5, %v1891_v48  ;;  %2119 = vmatmul.f32.vlgmr.msrb.gmra.mxu3 %v2058_v50 }
 0x588   :  { %v2054_v14 = vadd.f32 %v2053_v23, %v2034_v9 }
 0x58a   :  { %v2059_v41 = vmax.f32 %v2054_v14, 0.0 }
 0x58c   :  { %2139 = vmatmul.f32.vlgmr.msra.gmra.mxu1 %v2059_v41 }
 0x5fb   :  { %v2080_v47 = vpop.f32.mrf.mxu0 }
 0x5fc   :  { %v2081_v61 = vadd.f32 %v2284_v46, %v2080_v47 }
 0x607   :  { %v2100_v27 = vpop.f32.mrf.mxu2 }
 0x608   :  { %v2101_v29 = vadd.f32 %v2100_v27, %v2081_v61 }
 0x609   :  { %v2120_v49 = vpop.f32.mrf.mxu3  ;;  %v2140_v57 = vpop.f32.mrf.mxu1 }
 0x60a   :  { %v2121_v34 = vadd.f32 %v2120_v49, %v2101_v29 }
 0x60c   :  { %v2141_v0 = vadd.f32 %v2140_v57, %v2121_v34 }
 0x60e   :  { %2144 = vst.msk [vmem:[%s5149_s7] sm:$0x3] %vm2143_vm4, %v2141_v0 }

</bundles_post_ra>
